<compile_context>
chip_gen: v5e
topology: v5e:2x2
jax: 0.10.0
libtpu: 0.0.40
codegen_flags: <defaults>
</compile_context>

<pallas_src>
import functools

import jax
import jax.numpy as jnp
from jax.experimental import pallas as pl
from jax.experimental.pallas import tpu as pltpu


# ----------------------------------------------------------------------------
# Kernel
# ----------------------------------------------------------------------------
def _layernorm(x, gamma, beta, eps=1e-5):
    mu = jnp.mean(x, axis=-1, keepdims=True)
    var = jnp.mean((x - mu) * (x - mu), axis=-1, keepdims=True)
    return (x - mu) * jax.lax.rsqrt(var + eps) * gamma + beta


def transformer_stack_kernel(x_ref,
                             ln1g_ref, ln1b_ref, wi_ref,
                             wk_ref, bk_ref, wv_ref, bv_ref, wo_ref, bo_ref,
                             ln2g_ref, ln2b_ref,
                             w1_ref, b1_ref, w2_ref, b2_ref,
                             o_ref, *, depth):
    """Full Transformer stack for one (block_b, N, D) batch block."""
    bb, n, d = x_ref.shape
    mlp = w1_ref.shape[-1]

    def layer(l, out):
        # ---------------- attention branch: out += Attn(LN(out)) -----------
        xn = _layernorm(out, ln1g_ref[l], ln1b_ref[l])                # f32

        # fc_i as a VPU/XLU reduction (avoids a lane-width-1 MXU matmul).
        # fc_i bias omitted: a scalar shift is invariant under token softmax.
        logits = jnp.sum(xn * wi_ref[l], axis=-1, keepdims=True)      # (Bb,N,1)
        m = jnp.max(logits, axis=1, keepdims=True)                    # softmax over
        e = jnp.exp(logits - m)                                       # token axis
        denom = jnp.sum(e, axis=1, keepdims=True)                     # (Bb,1,1)
        weight_i = e * pl.reciprocal(denom, approx=True)              # EUP slot

        # Algebraic rewrite: softmax weights sum to 1, so
        #   ctx = sum_n w_n * (xn_n @ Wk + bk) = (sum_n w_n * xn_n) @ Wk + bk
        pooled = jnp.sum(weight_i * xn, axis=1, keepdims=True)        # (Bb,1,D)
        pooled = pooled.reshape(bb, d)
        ctx = jnp.dot(pooled.astype(jnp.bfloat16), wk_ref[l],
                      preferred_element_type=jnp.float32) + bk_ref[l]  # (Bb, D)

        xn_bf = xn.astype(jnp.bfloat16).reshape(bb * n, d)
        v = jnp.dot(xn_bf, wv_ref[l], preferred_element_type=jnp.float32)
        v = (v.reshape(bb, n, d) + bv_ref[l]) * ctx.reshape(bb, 1, d)

        attn = jnp.dot(v.astype(jnp.bfloat16).reshape(bb * n, d), wo_ref[l],
                       preferred_element_type=jnp.float32)
        out = out + attn.reshape(bb, n, d) + bo_ref[l]

        # ---------------- FFN branch: out += FFN(LN(out)) ------------------
        xn2 = _layernorm(out, ln2g_ref[l], ln2b_ref[l])
        h = jnp.dot(xn2.astype(jnp.bfloat16).reshape(bb * n, d), w1_ref[l],
                    preferred_element_type=jnp.float32)
        h = h.reshape(bb, n, mlp) + b1_ref[l]
        h = h * jax.nn.sigmoid(h)                                     # SiLU in f32
        ffn = jnp.dot(h.astype(jnp.bfloat16).reshape(bb * n, mlp), w2_ref[l],
                      preferred_element_type=jnp.float32)
        out = out + ffn.reshape(bb, n, d) + b2_ref[l]
        return out

    out = x_ref[...].astype(jnp.float32)                              # (Bb,N,D)
    if depth <= 4:
        for l in range(depth):                                        # unrolled
            out = layer(l, out)
    else:
        # Bound live ranges per layer; weights indexed dynamically (ref[l]).
        out = jax.lax.fori_loop(0, depth, layer, out)

    o_ref[...] = out.astype(o_ref.dtype)


# ----------------------------------------------------------------------------
# Chip / block-size heuristics
# ----------------------------------------------------------------------------
def _tpu_vmem_and_cores():
    """(per-core VMEM capacity in bytes, has >=2 TensorCores per chip)."""
    vmem_cap = 64 * 1024 * 1024            # conservative default (v7x per-TC)
    try:
        vmem_cap = int(pltpu.get_tpu_info().vmem_capacity_bytes)
    except Exception:
        pass
    kind = ""
    try:
        kind = jax.devices()[0].device_kind.lower()
    except Exception:
        pass
    two_tc = ("v7" in kind) or ("v4" in kind)
    return vmem_cap, two_tc


def _largest_divisor_leq(n, cap):
    best = 1
    for c in range(1, n + 1):
        if n % c == 0 and c <= cap:
            best = c
    return best


def _pick_block_b(batch, n_tokens, d_model, mlp_dim, weight_bytes,
                  vmem_cap, two_tc):
    usable = (vmem_cap * 3) // 4                    # headroom for compiler scratch
    act_budget = max(2 << 20, (usable - 2 * weight_bytes) // 4)
    # rough f32 footprint per batch row: in/out blocks + live layer temporaries
    row_bytes = 4 * n_tokens * (6 * max(d_model, 128) + 2 * max(mlp_dim, 128))
    max_b = max(1, act_budget // row_bytes)
    if two_tc and batch >= 2:
        # dual-TC chip: >= 2 equal-size "parallel" grid steps for megacore
        cap = max(1, min(max_b, batch // 2))
        return _largest_divisor_leq(batch, cap)
    # single TensorCore: one grid step whenever it fits (no pipeline overhead)
    return _largest_divisor_leq(batch, max_b)


# ----------------------------------------------------------------------------
# pallas_call wrapper
# ----------------------------------------------------------------------------
def transformer_forward(x, params, *, block_b=None, donate_input=False):
    """Forward pass.  If donate_input=True, the caller's `x` buffer is aliased
    to the output and MUST NOT be reused afterwards."""
    batch, n_tokens, d_model = x.shape
    weights = tuple(params)
    (ln1g, ln1b, wi, wk, bk, wv, bv, wo, bo,
     ln2g, ln2b, w1, b1, w2, b2) = weights
    depth = int(ln1g.shape[0])
    mlp_dim = int(w1.shape[-1])

    vmem_cap, two_tc = _tpu_vmem_and_cores()
    weight_bytes = sum(int(a.size) * a.dtype.itemsize for a in weights)

    if block_b is None:
        block_b = _pick_block_b(batch, n_tokens, d_model, mlp_dim,
                                weight_bytes, vmem_cap, two_tc)
    assert batch % block_b == 0
    grid = (batch // block_b,)

    block_bytes = block_b * n_tokens * 4 * (max(d_model, 128) + max(mlp_dim, 128))
    vmem_limit = int(min(max(32 << 20,
                             2 * weight_bytes + 8 * block_bytes + (8 << 20)),
                         (vmem_cap * 3) // 4))

    act_bytes = int(x.size) * x.dtype.itemsize
    flops = depth * batch * (n_tokens * (4 * d_model * d_model
                                         + 4 * d_model * mlp_dim
                                         + 4 * d_model)
                             + 2 * d_model * d_model)
    transcendentals = depth * batch * n_tokens * (mlp_dim + 3)

    kernel = functools.partial(transformer_stack_kernel, depth=depth)
    act_spec = pl.BlockSpec((block_b, n_tokens, d_model), lambda b: (b, 0, 0))

    def _build(single_buffer_weights):
        def _const_spec(arr):
            nd = arr.ndim
            idx = lambda *_a, _nd=nd: (0,) * _nd
            if single_buffer_weights:
                # Constant-index block: DMA'd once; single buffer halves its VMEM.
                return pl.BlockSpec(arr.shape, idx, pipeline_mode=pl.Buffered(1))
            return pl.BlockSpec(arr.shape, idx)

        return pl.pallas_call(
            kernel,
            out_shape=jax.ShapeDtypeStruct((batch, n_tokens, d_model), x.dtype),
            grid_spec=pltpu.PrefetchScalarGridSpec(
                num_scalar_prefetch=0,
                grid=grid,
                in_specs=[act_spec] + [_const_spec(a) for a in weights],
                out_specs=act_spec,
            ),
            compiler_params=pltpu.CompilerParams(
                dimension_semantics=("parallel",),
                vmem_limit_bytes=vmem_limit,
            ),
            cost_estimate=pl.CostEstimate(
                flops=int(flops),
                transcendentals=int(transcendentals),
                bytes_accessed=int(2 * act_bytes + weight_bytes),
            ),
            input_output_aliases=({0: 0} if donate_input else {}),
        )

    try:
        return _build(True)(x, *weights)
    except Exception:
        # Fallback if this jax build rejects single-buffered pipeline_mode.
        return _build(False)(x, *weights)


# ----------------------------------------------------------------------------
# Deterministic parameter construction (stacked over a leading depth axis)
# ----------------------------------------------------------------------------
def init_params(key, dim, depth, mlp_dim):
    wi_l, wk_l, wv_l, wo_l, w1_l, b1_l, w2_l, b2_l = ([] for _ in range(8))
    for _ in range(depth):
        key, k1, k2, k3, k4, k5, k6, k7, k8 = jax.random.split(key, 9)
        # MobileViTv2Attention linears: normal std=0.001, bias 0 (torch init).
        # Weights stored pre-transposed as (in, out) so kernels do x @ W.
        wi_l.append(0.001 * jax.random.normal(k1, (1, dim), jnp.float32))
        wk_l.append(0.001 * jax.random.normal(k2, (dim, dim), jnp.float32))
        wv_l.append(0.001 * jax.random.normal(k3, (dim, dim), jnp.float32))
        wo_l.append(0.001 * jax.random.normal(k4, (dim, dim), jnp.float32))
        # FeedForward linears: deterministic small-normal synthetic init.
        w1_l.append(0.02 * jax.random.normal(k5, (dim, mlp_dim), jnp.float32))
        b1_l.append(0.02 * jax.random.normal(k6, (1, mlp_dim), jnp.float32))
        w2_l.append(0.02 * jax.random.normal(k7, (mlp_dim, dim), jnp.float32))
        b2_l.append(0.02 * jax.random.normal(k8, (1, dim), jnp.float32))

    ln1g = jnp.ones((depth, 1, dim), jnp.float32)
    ln1b = jnp.zeros((depth, 1, dim), jnp.float32)
    ln2g = jnp.ones((depth, 1, dim), jnp.float32)
    ln2b = jnp.zeros((depth, 1, dim), jnp.float32)

    wi = jnp.stack(wi_l)                                   # (depth, 1, D)   f32
    wk = jnp.stack(wk_l).astype(jnp.bfloat16)              # (depth, D, D)   bf16
    bk = jnp.zeros((depth, 1, dim), jnp.float32)
    wv = jnp.stack(wv_l).astype(jnp.bfloat16)              # (depth, D, D)   bf16
    bv = jnp.zeros((depth, 1, dim), jnp.float32)
    wo = jnp.stack(wo_l).astype(jnp.bfloat16)              # (depth, D, D)   bf16
    bo = jnp.zeros((depth, 1, dim), jnp.float32)
    w1 = jnp.stack(w1_l).astype(jnp.bfloat16)              # (depth, D, MLP) bf16
    b1 = jnp.stack(b1_l)                                   # (depth, 1, MLP) f32
    w2 = jnp.stack(w2_l).astype(jnp.bfloat16)              # (depth, MLP, D) bf16
    b2 = jnp.stack(b2_l)                                   # (depth, 1, D)   f32

    return (ln1g, ln1b, wi, wk, bk, wv, bv, wo, bo, ln2g, ln2b, w1, b1, w2, b2)


# ----------------------------------------------------------------------------
# Pure-JAX reference: follows the ORIGINAL module formulation (per-token fc_k,
# exact softmax divide) with the same precision recipe; validates the kernel's
# algebraic rewrite and approx-reciprocal numerically.
# ----------------------------------------------------------------------------
def reference_forward(x, params):
    (ln1g, ln1b, wi, wk, bk, wv, bv, wo, bo,
     ln2g, ln2b, w1, b1, w2, b2) = params
    depth = ln1g.shape[0]

    def ln(y, g, b):
        mu = jnp.mean(y, axis=-1, keepdims=True)
        var = jnp.mean((y - mu) ** 2, axis=-1, keepdims=True)
        return (y - mu) * jax.lax.rsqrt(var + 1e-5) * g + b

    out = x
    for l in range(depth):
        xn = ln(out, ln1g[l], ln1b[l])
        logits = jnp.sum(xn * wi[l], axis=-1, keepdims=True)   # fc_i (0 bias)
        w_sm = jax.nn.softmax(logits, axis=1)
        k = jnp.dot(xn.astype(jnp.bfloat16), wk[l],
                    preferred_element_type=jnp.float32) + bk[l]
        v = jnp.dot(xn.astype(jnp.bfloat16), wv[l],
                    preferred_element_type=jnp.float32) + bv[l]
        ctx = jnp.sum(w_sm * k, axis=1, keepdims=True)
        v = v * ctx
        attn = jnp.dot(v.astype(jnp.bfloat16), wo[l],
                       preferred_element_type=jnp.float32) + bo[l]
        out = out + attn

        xn2 = ln(out, ln2g[l], ln2b[l])
        h = jnp.dot(xn2.astype(jnp.bfloat16), w1[l],
                    preferred_element_type=jnp.float32) + b1[l]
        h = h * jax.nn.sigmoid(h)
        ffn = jnp.dot(h.astype(jnp.bfloat16), w2[l],
                      preferred_element_type=jnp.float32) + b2[l]
        out = out + ffn
    return out


# ----------------------------------------------------------------------------
if __name__ == "__main__":
    B, N, D = 2, 8, 32          # batch, tokens, d_model
    DEPTH, MLP = 2, 64

    key = jax.random.PRNGKey(0)
    kx, kp = jax.random.split(key)
    x = jax.random.normal(kx, (B, N, D), jnp.float32)
    params = init_params(kp, D, DEPTH, MLP)

    # Reference computed first (x is donated to the kernel output below).
    ref = jax.block_until_ready(reference_forward(x, params))

    out = transformer_forward(x, params, donate_input=True)
    out = jax.block_until_ready(out)

    assert out.shape == (B, N, D)
    max_err = float(jnp.max(jnp.abs(out - ref)))
    assert jnp.allclose(out, ref, atol=2e-3, rtol=2e-3), \
        f"mismatch vs reference (max abs err {max_err})"

    print("KERNEL_OK")
</pallas_src>

<mosaic_0001>
module attributes {stable_mosaic.version = 11 : i64} {
  func.func @transformer_stack_kernel(%arg0: i32, %arg1: memref<2x8x32xf32, #tpu.memory_space<vmem>>, %arg2: memref<2x1x32xf32, #tpu.memory_space<vmem>>, %arg3: memref<2x1x32xf32, #tpu.memory_space<vmem>>, %arg4: memref<2x1x32xf32, #tpu.memory_space<vmem>>, %arg5: memref<2x32x32xbf16, #tpu.memory_space<vmem>>, %arg6: memref<2x1x32xf32, #tpu.memory_space<vmem>>, %arg7: memref<2x32x32xbf16, #tpu.memory_space<vmem>>, %arg8: memref<2x1x32xf32, #tpu.memory_space<vmem>>, %arg9: memref<2x32x32xbf16, #tpu.memory_space<vmem>>, %arg10: memref<2x1x32xf32, #tpu.memory_space<vmem>>, %arg11: memref<2x1x32xf32, #tpu.memory_space<vmem>>, %arg12: memref<2x1x32xf32, #tpu.memory_space<vmem>>, %arg13: memref<2x32x64xbf16, #tpu.memory_space<vmem>>, %arg14: memref<2x1x64xf32, #tpu.memory_space<vmem>>, %arg15: memref<2x64x32xbf16, #tpu.memory_space<vmem>>, %arg16: memref<2x1x32xf32, #tpu.memory_space<vmem>>, %arg17: memref<2x8x32xf32, #tpu.memory_space<vmem>>) attributes {dimension_semantics = [#tpu.dimension_semantics<parallel>], iteration_bounds = array<i64: 1>, scalar_prefetch = 0 : i64, scratch_operands = 0 : i64, tpu.core_type = #tpu.core_type<tc>, window_params = [{transform_indices = @transform_0, window_bounds = array<i64: 2, 8, 32>}, {pipeline_mode = #tpu.pipeline_mode<synchronous>, transform_indices = @transform_1, window_bounds = array<i64: 2, 1, 32>}, {pipeline_mode = #tpu.pipeline_mode<synchronous>, transform_indices = @transform_2, window_bounds = array<i64: 2, 1, 32>}, {pipeline_mode = #tpu.pipeline_mode<synchronous>, transform_indices = @transform_3, window_bounds = array<i64: 2, 1, 32>}, {pipeline_mode = #tpu.pipeline_mode<synchronous>, transform_indices = @transform_4, window_bounds = array<i64: 2, 32, 32>}, {pipeline_mode = #tpu.pipeline_mode<synchronous>, transform_indices = @transform_5, window_bounds = array<i64: 2, 1, 32>}, {pipeline_mode = #tpu.pipeline_mode<synchronous>, transform_indices = @transform_6, window_bounds = array<i64: 2, 32, 32>}, {pipeline_mode = #tpu.pipeline_mode<synchronous>, transform_indices = @transform_7, window_bounds = array<i64: 2, 1, 32>}, {pipeline_mode = #tpu.pipeline_mode<synchronous>, transform_indices = @transform_8, window_bounds = array<i64: 2, 32, 32>}, {pipeline_mode = #tpu.pipeline_mode<synchronous>, transform_indices = @transform_9, window_bounds = array<i64: 2, 1, 32>}, {pipeline_mode = #tpu.pipeline_mode<synchronous>, transform_indices = @transform_10, window_bounds = array<i64: 2, 1, 32>}, {pipeline_mode = #tpu.pipeline_mode<synchronous>, transform_indices = @transform_11, window_bounds = array<i64: 2, 1, 32>}, {pipeline_mode = #tpu.pipeline_mode<synchronous>, transform_indices = @transform_12, window_bounds = array<i64: 2, 32, 64>}, {pipeline_mode = #tpu.pipeline_mode<synchronous>, transform_indices = @transform_13, window_bounds = array<i64: 2, 1, 64>}, {pipeline_mode = #tpu.pipeline_mode<synchronous>, transform_indices = @transform_14, window_bounds = array<i64: 2, 64, 32>}, {pipeline_mode = #tpu.pipeline_mode<synchronous>, transform_indices = @transform_15, window_bounds = array<i64: 2, 1, 32>}, {transform_indices = @transform_16, window_bounds = array<i64: 2, 8, 32>}]} {
    %c0 = arith.constant 0 : index
    %c0_0 = arith.constant 0 : index
    %c0_1 = arith.constant 0 : index
    %0 = vector.load %arg1[%c0, %c0_0, %c0_1] : memref<2x8x32xf32, #tpu.memory_space<vmem>>, vector<2x8x32xf32>
    %c0_2 = arith.constant 0 : index
    %c0_3 = arith.constant 0 : index
    %c0_4 = arith.constant 0 : index
    %1 = vector.load %arg2[%c0_2, %c0_3, %c0_4] : memref<2x1x32xf32, #tpu.memory_space<vmem>>, vector<1x1x32xf32>
    %2 = vector.shape_cast %1 : vector<1x1x32xf32> to vector<1x32xf32>
    %c0_5 = arith.constant 0 : index
    %c0_6 = arith.constant 0 : index
    %c0_7 = arith.constant 0 : index
    %3 = vector.load %arg3[%c0_5, %c0_6, %c0_7] : memref<2x1x32xf32, #tpu.memory_space<vmem>>, vector<1x1x32xf32>
    %4 = vector.shape_cast %3 : vector<1x1x32xf32> to vector<1x32xf32>
    %cst = arith.constant dense<0.000000e+00> : vector<2x8xf32>
    %5 = vector.multi_reduction <add>, %0, %cst [2] : vector<2x8x32xf32> to vector<2x8xf32>
    %6 = vector.shape_cast %5 : vector<2x8xf32> to vector<2x8x1xf32>
    %cst_8 = arith.constant 3.200000e+01 : f32
    %7 = vector.broadcast %cst_8 : f32 to vector<2x8x1xf32>
    %8 = arith.divf %6, %7 : vector<2x8x1xf32>
    %9 = vector.broadcast %8 : vector<2x8x1xf32> to vector<2x8x32xf32>
    %10 = arith.subf %0, %9 : vector<2x8x32xf32>
    %11 = vector.broadcast %8 : vector<2x8x1xf32> to vector<2x8x32xf32>
    %12 = arith.subf %0, %11 : vector<2x8x32xf32>
    %13 = arith.mulf %10, %12 : vector<2x8x32xf32>
    %cst_9 = arith.constant dense<0.000000e+00> : vector<2x8xf32>
    %14 = vector.multi_reduction <add>, %13, %cst_9 [2] : vector<2x8x32xf32> to vector<2x8xf32>
    %15 = vector.shape_cast %14 : vector<2x8xf32> to vector<2x8x1xf32>
    %cst_10 = arith.constant 3.200000e+01 : f32
    %16 = vector.broadcast %cst_10 : f32 to vector<2x8x1xf32>
    %17 = arith.divf %15, %16 : vector<2x8x1xf32>
    %18 = vector.broadcast %8 : vector<2x8x1xf32> to vector<2x8x32xf32>
    %19 = arith.subf %0, %18 : vector<2x8x32xf32>
    %cst_11 = arith.constant 9.99999974E-6 : f32
    %20 = vector.broadcast %cst_11 : f32 to vector<2x8x1xf32>
    %21 = arith.addf %17, %20 : vector<2x8x1xf32>
    %22 = math.rsqrt %21 : vector<2x8x1xf32>
    %23 = vector.broadcast %22 : vector<2x8x1xf32> to vector<2x8x32xf32>
    %24 = arith.mulf %19, %23 : vector<2x8x32xf32>
    %25 = vector.shape_cast %2 : vector<1x32xf32> to vector<1x1x32xf32>
    %26 = vector.broadcast %25 : vector<1x1x32xf32> to vector<2x8x32xf32>
    %27 = arith.mulf %24, %26 : vector<2x8x32xf32>
    %28 = vector.shape_cast %4 : vector<1x32xf32> to vector<1x1x32xf32>
    %29 = vector.broadcast %28 : vector<1x1x32xf32> to vector<2x8x32xf32>
    %30 = arith.addf %27, %29 : vector<2x8x32xf32>
    %c0_12 = arith.constant 0 : index
    %c0_13 = arith.constant 0 : index
    %c0_14 = arith.constant 0 : index
    %31 = vector.load %arg4[%c0_12, %c0_13, %c0_14] : memref<2x1x32xf32, #tpu.memory_space<vmem>>, vector<1x1x32xf32>
    %32 = vector.shape_cast %31 : vector<1x1x32xf32> to vector<1x32xf32>
    %33 = vector.shape_cast %32 : vector<1x32xf32> to vector<1x1x32xf32>
    %34 = vector.broadcast %33 : vector<1x1x32xf32> to vector<2x8x32xf32>
    %35 = arith.mulf %30, %34 : vector<2x8x32xf32>
    %cst_15 = arith.constant dense<0.000000e+00> : vector<2x8xf32>
    %36 = vector.multi_reduction <add>, %35, %cst_15 [2] : vector<2x8x32xf32> to vector<2x8xf32>
    %37 = vector.shape_cast %36 : vector<2x8xf32> to vector<2x8x1xf32>
    %cst_16 = arith.constant dense<0xFF800000> : vector<2x1xf32>
    %38 = vector.multi_reduction <maximumf>, %37, %cst_16 [1] : vector<2x8x1xf32> to vector<2x1xf32>
    %39 = vector.shape_cast %38 : vector<2x1xf32> to vector<2x1x1xf32>
    %40 = vector.broadcast %39 : vector<2x1x1xf32> to vector<2x8x1xf32>
    %41 = arith.subf %37, %40 : vector<2x8x1xf32>
    %42 = math.exp %41 : vector<2x8x1xf32>
    %cst_17 = arith.constant dense<0.000000e+00> : vector<2x1xf32>
    %43 = vector.multi_reduction <add>, %42, %cst_17 [1] : vector<2x8x1xf32> to vector<2x1xf32>
    %44 = vector.shape_cast %43 : vector<2x1xf32> to vector<2x1x1xf32>
    %45 = tpu.reciprocal %44 {approx = true} : vector<2x1x1xf32> -> vector<2x1x1xf32>
    %46 = vector.broadcast %45 : vector<2x1x1xf32> to vector<2x8x1xf32>
    %47 = arith.mulf %42, %46 : vector<2x8x1xf32>
    %48 = vector.broadcast %47 : vector<2x8x1xf32> to vector<2x8x32xf32>
    %49 = arith.mulf %48, %30 : vector<2x8x32xf32>
    %cst_18 = arith.constant dense<0.000000e+00> : vector<2x32xf32>
    %50 = vector.multi_reduction <add>, %49, %cst_18 [1] : vector<2x8x32xf32> to vector<2x32xf32>
    %51 = vector.shape_cast %50 : vector<2x32xf32> to vector<2x1x32xf32>
    %52 = vector.shape_cast %51 : vector<2x1x32xf32> to vector<2x32xf32>
    %53 = arith.truncf %52 : vector<2x32xf32> to vector<2x32xbf16>
    %c0_19 = arith.constant 0 : index
    %c0_20 = arith.constant 0 : index
    %c0_21 = arith.constant 0 : index
    %54 = vector.load %arg5[%c0_19, %c0_20, %c0_21] : memref<2x32x32xbf16, #tpu.memory_space<vmem>>, vector<1x32x32xbf16>
    %55 = vector.shape_cast %54 : vector<1x32x32xbf16> to vector<32x32xbf16>
    %cst_22 = arith.constant dense<0.000000e+00> : vector<2x32xf32>
    %56 = tpu.matmul %53, %55, %cst_22 {dimension_numbers = #tpu.dot_dimension_numbers<[1], [0], [0], [1], [0, 0, 1, 1], [], []>} : vector<2x32xbf16>, vector<32x32xbf16>, vector<2x32xf32> -> vector<2x32xf32>
    %c0_23 = arith.constant 0 : index
    %c0_24 = arith.constant 0 : index
    %c0_25 = arith.constant 0 : index
    %57 = vector.load %arg6[%c0_23, %c0_24, %c0_25] : memref<2x1x32xf32, #tpu.memory_space<vmem>>, vector<1x1x32xf32>
    %58 = vector.shape_cast %57 : vector<1x1x32xf32> to vector<1x32xf32>
    %59 = vector.broadcast %58 : vector<1x32xf32> to vector<2x32xf32>
    %60 = arith.addf %56, %59 : vector<2x32xf32>
    %61 = arith.truncf %30 : vector<2x8x32xf32> to vector<2x8x32xbf16>
    %62 = vector.shape_cast %61 : vector<2x8x32xbf16> to vector<16x32xbf16>
    %c0_26 = arith.constant 0 : index
    %c0_27 = arith.constant 0 : index
    %c0_28 = arith.constant 0 : index
    %63 = vector.load %arg7[%c0_26, %c0_27, %c0_28] : memref<2x32x32xbf16, #tpu.memory_space<vmem>>, vector<1x32x32xbf16>
    %64 = vector.shape_cast %63 : vector<1x32x32xbf16> to vector<32x32xbf16>
    %cst_29 = arith.constant dense<0.000000e+00> : vector<16x32xf32>
    %65 = tpu.matmul %62, %64, %cst_29 {dimension_numbers = #tpu.dot_dimension_numbers<[1], [0], [0], [1], [0, 0, 1, 1], [], []>} : vector<16x32xbf16>, vector<32x32xbf16>, vector<16x32xf32> -> vector<16x32xf32>
    %66 = vector.shape_cast %65 : vector<16x32xf32> to vector<2x8x32xf32>
    %c0_30 = arith.constant 0 : index
    %c0_31 = arith.constant 0 : index
    %c0_32 = arith.constant 0 : index
    %67 = vector.load %arg8[%c0_30, %c0_31, %c0_32] : memref<2x1x32xf32, #tpu.memory_space<vmem>>, vector<1x1x32xf32>
    %68 = vector.shape_cast %67 : vector<1x1x32xf32> to vector<1x32xf32>
    %69 = vector.shape_cast %68 : vector<1x32xf32> to vector<1x1x32xf32>
    %70 = vector.broadcast %69 : vector<1x1x32xf32> to vector<2x8x32xf32>
    %71 = arith.addf %66, %70 : vector<2x8x32xf32>
    %72 = vector.shape_cast %60 : vector<2x32xf32> to vector<2x1x32xf32>
    %73 = vector.broadcast %72 : vector<2x1x32xf32> to vector<2x8x32xf32>
    %74 = arith.mulf %71, %73 : vector<2x8x32xf32>
    %75 = arith.truncf %74 : vector<2x8x32xf32> to vector<2x8x32xbf16>
    %76 = vector.shape_cast %75 : vector<2x8x32xbf16> to vector<16x32xbf16>
    %c0_33 = arith.constant 0 : index
    %c0_34 = arith.constant 0 : index
    %c0_35 = arith.constant 0 : index
    %77 = vector.load %arg9[%c0_33, %c0_34, %c0_35] : memref<2x32x32xbf16, #tpu.memory_space<vmem>>, vector<1x32x32xbf16>
    %78 = vector.shape_cast %77 : vector<1x32x32xbf16> to vector<32x32xbf16>
    %cst_36 = arith.constant dense<0.000000e+00> : vector<16x32xf32>
    %79 = tpu.matmul %76, %78, %cst_36 {dimension_numbers = #tpu.dot_dimension_numbers<[1], [0], [0], [1], [0, 0, 1, 1], [], []>} : vector<16x32xbf16>, vector<32x32xbf16>, vector<16x32xf32> -> vector<16x32xf32>
    %80 = vector.shape_cast %79 : vector<16x32xf32> to vector<2x8x32xf32>
    %81 = arith.addf %0, %80 : vector<2x8x32xf32>
    %c0_37 = arith.constant 0 : index
    %c0_38 = arith.constant 0 : index
    %c0_39 = arith.constant 0 : index
    %82 = vector.load %arg10[%c0_37, %c0_38, %c0_39] : memref<2x1x32xf32, #tpu.memory_space<vmem>>, vector<1x1x32xf32>
    %83 = vector.shape_cast %82 : vector<1x1x32xf32> to vector<1x32xf32>
    %84 = vector.shape_cast %83 : vector<1x32xf32> to vector<1x1x32xf32>
    %85 = vector.broadcast %84 : vector<1x1x32xf32> to vector<2x8x32xf32>
    %86 = arith.addf %81, %85 : vector<2x8x32xf32>
    %c0_40 = arith.constant 0 : index
    %c0_41 = arith.constant 0 : index
    %c0_42 = arith.constant 0 : index
    %87 = vector.load %arg11[%c0_40, %c0_41, %c0_42] : memref<2x1x32xf32, #tpu.memory_space<vmem>>, vector<1x1x32xf32>
    %88 = vector.shape_cast %87 : vector<1x1x32xf32> to vector<1x32xf32>
    %c0_43 = arith.constant 0 : index
    %c0_44 = arith.constant 0 : index
    %c0_45 = arith.constant 0 : index
    %89 = vector.load %arg12[%c0_43, %c0_44, %c0_45] : memref<2x1x32xf32, #tpu.memory_space<vmem>>, vector<1x1x32xf32>
    %90 = vector.shape_cast %89 : vector<1x1x32xf32> to vector<1x32xf32>
    %cst_46 = arith.constant dense<0.000000e+00> : vector<2x8xf32>
    %91 = vector.multi_reduction <add>, %86, %cst_46 [2] : vector<2x8x32xf32> to vector<2x8xf32>
    %92 = vector.shape_cast %91 : vector<2x8xf32> to vector<2x8x1xf32>
    %cst_47 = arith.constant 3.200000e+01 : f32
    %93 = vector.broadcast %cst_47 : f32 to vector<2x8x1xf32>
    %94 = arith.divf %92, %93 : vector<2x8x1xf32>
    %95 = vector.broadcast %94 : vector<2x8x1xf32> to vector<2x8x32xf32>
    %96 = arith.subf %86, %95 : vector<2x8x32xf32>
    %97 = vector.broadcast %94 : vector<2x8x1xf32> to vector<2x8x32xf32>
    %98 = arith.subf %86, %97 : vector<2x8x32xf32>
    %99 = arith.mulf %96, %98 : vector<2x8x32xf32>
    %cst_48 = arith.constant dense<0.000000e+00> : vector<2x8xf32>
    %100 = vector.multi_reduction <add>, %99, %cst_48 [2] : vector<2x8x32xf32> to vector<2x8xf32>
    %101 = vector.shape_cast %100 : vector<2x8xf32> to vector<2x8x1xf32>
    %cst_49 = arith.constant 3.200000e+01 : f32
    %102 = vector.broadcast %cst_49 : f32 to vector<2x8x1xf32>
    %103 = arith.divf %101, %102 : vector<2x8x1xf32>
    %104 = vector.broadcast %94 : vector<2x8x1xf32> to vector<2x8x32xf32>
    %105 = arith.subf %86, %104 : vector<2x8x32xf32>
    %cst_50 = arith.constant 9.99999974E-6 : f32
    %106 = vector.broadcast %cst_50 : f32 to vector<2x8x1xf32>
    %107 = arith.addf %103, %106 : vector<2x8x1xf32>
    %108 = math.rsqrt %107 : vector<2x8x1xf32>
    %109 = vector.broadcast %108 : vector<2x8x1xf32> to vector<2x8x32xf32>
    %110 = arith.mulf %105, %109 : vector<2x8x32xf32>
    %111 = vector.shape_cast %88 : vector<1x32xf32> to vector<1x1x32xf32>
    %112 = vector.broadcast %111 : vector<1x1x32xf32> to vector<2x8x32xf32>
    %113 = arith.mulf %110, %112 : vector<2x8x32xf32>
    %114 = vector.shape_cast %90 : vector<1x32xf32> to vector<1x1x32xf32>
    %115 = vector.broadcast %114 : vector<1x1x32xf32> to vector<2x8x32xf32>
    %116 = arith.addf %113, %115 : vector<2x8x32xf32>
    %117 = arith.truncf %116 : vector<2x8x32xf32> to vector<2x8x32xbf16>
    %118 = vector.shape_cast %117 : vector<2x8x32xbf16> to vector<16x32xbf16>
    %c0_51 = arith.constant 0 : index
    %c0_52 = arith.constant 0 : index
    %c0_53 = arith.constant 0 : index
    %119 = vector.load %arg13[%c0_51, %c0_52, %c0_53] : memref<2x32x64xbf16, #tpu.memory_space<vmem>>, vector<1x32x64xbf16>
    %120 = vector.shape_cast %119 : vector<1x32x64xbf16> to vector<32x64xbf16>
    %cst_54 = arith.constant dense<0.000000e+00> : vector<16x64xf32>
    %121 = tpu.matmul %118, %120, %cst_54 {dimension_numbers = #tpu.dot_dimension_numbers<[1], [0], [0], [1], [0, 0, 1, 1], [], []>} : vector<16x32xbf16>, vector<32x64xbf16>, vector<16x64xf32> -> vector<16x64xf32>
    %122 = vector.shape_cast %121 : vector<16x64xf32> to vector<2x8x64xf32>
    %c0_55 = arith.constant 0 : index
    %c0_56 = arith.constant 0 : index
    %c0_57 = arith.constant 0 : index
    %123 = vector.load %arg14[%c0_55, %c0_56, %c0_57] : memref<2x1x64xf32, #tpu.memory_space<vmem>>, vector<1x1x64xf32>
    %124 = vector.shape_cast %123 : vector<1x1x64xf32> to vector<1x64xf32>
    %125 = vector.shape_cast %124 : vector<1x64xf32> to vector<1x1x64xf32>
    %126 = vector.broadcast %125 : vector<1x1x64xf32> to vector<2x8x64xf32>
    %127 = arith.addf %122, %126 : vector<2x8x64xf32>
    %128 = arith.negf %127 : vector<2x8x64xf32>
    %129 = math.exp %128 : vector<2x8x64xf32>
    %cst_58 = arith.constant 1.000000e+00 : f32
    %130 = vector.broadcast %cst_58 : f32 to vector<2x8x64xf32>
    %131 = arith.addf %130, %129 : vector<2x8x64xf32>
    %132 = arith.divf %130, %131 : vector<2x8x64xf32>
    %133 = arith.mulf %127, %132 : vector<2x8x64xf32>
    %134 = arith.truncf %133 : vector<2x8x64xf32> to vector<2x8x64xbf16>
    %135 = vector.shape_cast %134 : vector<2x8x64xbf16> to vector<16x64xbf16>
    %c0_59 = arith.constant 0 : index
    %c0_60 = arith.constant 0 : index
    %c0_61 = arith.constant 0 : index
    %136 = vector.load %arg15[%c0_59, %c0_60, %c0_61] : memref<2x64x32xbf16, #tpu.memory_space<vmem>>, vector<1x64x32xbf16>
    %137 = vector.shape_cast %136 : vector<1x64x32xbf16> to vector<64x32xbf16>
    %cst_62 = arith.constant dense<0.000000e+00> : vector<16x32xf32>
    %138 = tpu.matmul %135, %137, %cst_62 {dimension_numbers = #tpu.dot_dimension_numbers<[1], [0], [0], [1], [0, 0, 1, 1], [], []>} : vector<16x64xbf16>, vector<64x32xbf16>, vector<16x32xf32> -> vector<16x32xf32>
    %139 = vector.shape_cast %138 : vector<16x32xf32> to vector<2x8x32xf32>
    %140 = arith.addf %86, %139 : vector<2x8x32xf32>
    %c0_63 = arith.constant 0 : index
    %c0_64 = arith.constant 0 : index
    %c0_65 = arith.constant 0 : index
    %141 = vector.load %arg16[%c0_63, %c0_64, %c0_65] : memref<2x1x32xf32, #tpu.memory_space<vmem>>, vector<1x1x32xf32>
    %142 = vector.shape_cast %141 : vector<1x1x32xf32> to vector<1x32xf32>
    %143 = vector.shape_cast %142 : vector<1x32xf32> to vector<1x1x32xf32>
    %144 = vector.broadcast %143 : vector<1x1x32xf32> to vector<2x8x32xf32>
    %145 = arith.addf %140, %144 : vector<2x8x32xf32>
    %c1 = arith.constant 1 : index
    %c0_66 = arith.constant 0 : index
    %c0_67 = arith.constant 0 : index
    %146 = vector.load %arg2[%c1, %c0_66, %c0_67] : memref<2x1x32xf32, #tpu.memory_space<vmem>>, vector<1x1x32xf32>
    %147 = vector.shape_cast %146 : vector<1x1x32xf32> to vector<1x32xf32>
    %c1_68 = arith.constant 1 : index
    %c0_69 = arith.constant 0 : index
    %c0_70 = arith.constant 0 : index
    %148 = vector.load %arg3[%c1_68, %c0_69, %c0_70] : memref<2x1x32xf32, #tpu.memory_space<vmem>>, vector<1x1x32xf32>
    %149 = vector.shape_cast %148 : vector<1x1x32xf32> to vector<1x32xf32>
    %cst_71 = arith.constant dense<0.000000e+00> : vector<2x8xf32>
    %150 = vector.multi_reduction <add>, %145, %cst_71 [2] : vector<2x8x32xf32> to vector<2x8xf32>
    %151 = vector.shape_cast %150 : vector<2x8xf32> to vector<2x8x1xf32>
    %cst_72 = arith.constant 3.200000e+01 : f32
    %152 = vector.broadcast %cst_72 : f32 to vector<2x8x1xf32>
    %153 = arith.divf %151, %152 : vector<2x8x1xf32>
    %154 = vector.broadcast %153 : vector<2x8x1xf32> to vector<2x8x32xf32>
    %155 = arith.subf %145, %154 : vector<2x8x32xf32>
    %156 = vector.broadcast %153 : vector<2x8x1xf32> to vector<2x8x32xf32>
    %157 = arith.subf %145, %156 : vector<2x8x32xf32>
    %158 = arith.mulf %155, %157 : vector<2x8x32xf32>
    %cst_73 = arith.constant dense<0.000000e+00> : vector<2x8xf32>
    %159 = vector.multi_reduction <add>, %158, %cst_73 [2] : vector<2x8x32xf32> to vector<2x8xf32>
    %160 = vector.shape_cast %159 : vector<2x8xf32> to vector<2x8x1xf32>
    %cst_74 = arith.constant 3.200000e+01 : f32
    %161 = vector.broadcast %cst_74 : f32 to vector<2x8x1xf32>
    %162 = arith.divf %160, %161 : vector<2x8x1xf32>
    %163 = vector.broadcast %153 : vector<2x8x1xf32> to vector<2x8x32xf32>
    %164 = arith.subf %145, %163 : vector<2x8x32xf32>
    %cst_75 = arith.constant 9.99999974E-6 : f32
    %165 = vector.broadcast %cst_75 : f32 to vector<2x8x1xf32>
    %166 = arith.addf %162, %165 : vector<2x8x1xf32>
    %167 = math.rsqrt %166 : vector<2x8x1xf32>
    %168 = vector.broadcast %167 : vector<2x8x1xf32> to vector<2x8x32xf32>
    %169 = arith.mulf %164, %168 : vector<2x8x32xf32>
    %170 = vector.shape_cast %147 : vector<1x32xf32> to vector<1x1x32xf32>
    %171 = vector.broadcast %170 : vector<1x1x32xf32> to vector<2x8x32xf32>
    %172 = arith.mulf %169, %171 : vector<2x8x32xf32>
    %173 = vector.shape_cast %149 : vector<1x32xf32> to vector<1x1x32xf32>
    %174 = vector.broadcast %173 : vector<1x1x32xf32> to vector<2x8x32xf32>
    %175 = arith.addf %172, %174 : vector<2x8x32xf32>
    %c1_76 = arith.constant 1 : index
    %c0_77 = arith.constant 0 : index
    %c0_78 = arith.constant 0 : index
    %176 = vector.load %arg4[%c1_76, %c0_77, %c0_78] : memref<2x1x32xf32, #tpu.memory_space<vmem>>, vector<1x1x32xf32>
    %177 = vector.shape_cast %176 : vector<1x1x32xf32> to vector<1x32xf32>
    %178 = vector.shape_cast %177 : vector<1x32xf32> to vector<1x1x32xf32>
    %179 = vector.broadcast %178 : vector<1x1x32xf32> to vector<2x8x32xf32>
    %180 = arith.mulf %175, %179 : vector<2x8x32xf32>
    %cst_79 = arith.constant dense<0.000000e+00> : vector<2x8xf32>
    %181 = vector.multi_reduction <add>, %180, %cst_79 [2] : vector<2x8x32xf32> to vector<2x8xf32>
    %182 = vector.shape_cast %181 : vector<2x8xf32> to vector<2x8x1xf32>
    %cst_80 = arith.constant dense<0xFF800000> : vector<2x1xf32>
    %183 = vector.multi_reduction <maximumf>, %182, %cst_80 [1] : vector<2x8x1xf32> to vector<2x1xf32>
    %184 = vector.shape_cast %183 : vector<2x1xf32> to vector<2x1x1xf32>
    %185 = vector.broadcast %184 : vector<2x1x1xf32> to vector<2x8x1xf32>
    %186 = arith.subf %182, %185 : vector<2x8x1xf32>
    %187 = math.exp %186 : vector<2x8x1xf32>
    %cst_81 = arith.constant dense<0.000000e+00> : vector<2x1xf32>
    %188 = vector.multi_reduction <add>, %187, %cst_81 [1] : vector<2x8x1xf32> to vector<2x1xf32>
    %189 = vector.shape_cast %188 : vector<2x1xf32> to vector<2x1x1xf32>
    %190 = tpu.reciprocal %189 {approx = true} : vector<2x1x1xf32> -> vector<2x1x1xf32>
    %191 = vector.broadcast %190 : vector<2x1x1xf32> to vector<2x8x1xf32>
    %192 = arith.mulf %187, %191 : vector<2x8x1xf32>
    %193 = vector.broadcast %192 : vector<2x8x1xf32> to vector<2x8x32xf32>
    %194 = arith.mulf %193, %175 : vector<2x8x32xf32>
    %cst_82 = arith.constant dense<0.000000e+00> : vector<2x32xf32>
    %195 = vector.multi_reduction <add>, %194, %cst_82 [1] : vector<2x8x32xf32> to vector<2x32xf32>
    %196 = vector.shape_cast %195 : vector<2x32xf32> to vector<2x1x32xf32>
    %197 = vector.shape_cast %196 : vector<2x1x32xf32> to vector<2x32xf32>
    %198 = arith.truncf %197 : vector<2x32xf32> to vector<2x32xbf16>
    %c1_83 = arith.constant 1 : index
    %c0_84 = arith.constant 0 : index
    %c0_85 = arith.constant 0 : index
    %199 = vector.load %arg5[%c1_83, %c0_84, %c0_85] : memref<2x32x32xbf16, #tpu.memory_space<vmem>>, vector<1x32x32xbf16>
    %200 = vector.shape_cast %199 : vector<1x32x32xbf16> to vector<32x32xbf16>
    %cst_86 = arith.constant dense<0.000000e+00> : vector<2x32xf32>
    %201 = tpu.matmul %198, %200, %cst_86 {dimension_numbers = #tpu.dot_dimension_numbers<[1], [0], [0], [1], [0, 0, 1, 1], [], []>} : vector<2x32xbf16>, vector<32x32xbf16>, vector<2x32xf32> -> vector<2x32xf32>
    %c1_87 = arith.constant 1 : index
    %c0_88 = arith.constant 0 : index
    %c0_89 = arith.constant 0 : index
    %202 = vector.load %arg6[%c1_87, %c0_88, %c0_89] : memref<2x1x32xf32, #tpu.memory_space<vmem>>, vector<1x1x32xf32>
    %203 = vector.shape_cast %202 : vector<1x1x32xf32> to vector<1x32xf32>
    %204 = vector.broadcast %203 : vector<1x32xf32> to vector<2x32xf32>
    %205 = arith.addf %201, %204 : vector<2x32xf32>
    %206 = arith.truncf %175 : vector<2x8x32xf32> to vector<2x8x32xbf16>
    %207 = vector.shape_cast %206 : vector<2x8x32xbf16> to vector<16x32xbf16>
    %c1_90 = arith.constant 1 : index
    %c0_91 = arith.constant 0 : index
    %c0_92 = arith.constant 0 : index
    %208 = vector.load %arg7[%c1_90, %c0_91, %c0_92] : memref<2x32x32xbf16, #tpu.memory_space<vmem>>, vector<1x32x32xbf16>
    %209 = vector.shape_cast %208 : vector<1x32x32xbf16> to vector<32x32xbf16>
    %cst_93 = arith.constant dense<0.000000e+00> : vector<16x32xf32>
    %210 = tpu.matmul %207, %209, %cst_93 {dimension_numbers = #tpu.dot_dimension_numbers<[1], [0], [0], [1], [0, 0, 1, 1], [], []>} : vector<16x32xbf16>, vector<32x32xbf16>, vector<16x32xf32> -> vector<16x32xf32>
    %211 = vector.shape_cast %210 : vector<16x32xf32> to vector<2x8x32xf32>
    %c1_94 = arith.constant 1 : index
    %c0_95 = arith.constant 0 : index
    %c0_96 = arith.constant 0 : index
    %212 = vector.load %arg8[%c1_94, %c0_95, %c0_96] : memref<2x1x32xf32, #tpu.memory_space<vmem>>, vector<1x1x32xf32>
    %213 = vector.shape_cast %212 : vector<1x1x32xf32> to vector<1x32xf32>
    %214 = vector.shape_cast %213 : vector<1x32xf32> to vector<1x1x32xf32>
    %215 = vector.broadcast %214 : vector<1x1x32xf32> to vector<2x8x32xf32>
    %216 = arith.addf %211, %215 : vector<2x8x32xf32>
    %217 = vector.shape_cast %205 : vector<2x32xf32> to vector<2x1x32xf32>
    %218 = vector.broadcast %217 : vector<2x1x32xf32> to vector<2x8x32xf32>
    %219 = arith.mulf %216, %218 : vector<2x8x32xf32>
    %220 = arith.truncf %219 : vector<2x8x32xf32> to vector<2x8x32xbf16>
    %221 = vector.shape_cast %220 : vector<2x8x32xbf16> to vector<16x32xbf16>
    %c1_97 = arith.constant 1 : index
    %c0_98 = arith.constant 0 : index
    %c0_99 = arith.constant 0 : index
    %222 = vector.load %arg9[%c1_97, %c0_98, %c0_99] : memref<2x32x32xbf16, #tpu.memory_space<vmem>>, vector<1x32x32xbf16>
    %223 = vector.shape_cast %222 : vector<1x32x32xbf16> to vector<32x32xbf16>
    %cst_100 = arith.constant dense<0.000000e+00> : vector<16x32xf32>
    %224 = tpu.matmul %221, %223, %cst_100 {dimension_numbers = #tpu.dot_dimension_numbers<[1], [0], [0], [1], [0, 0, 1, 1], [], []>} : vector<16x32xbf16>, vector<32x32xbf16>, vector<16x32xf32> -> vector<16x32xf32>
    %225 = vector.shape_cast %224 : vector<16x32xf32> to vector<2x8x32xf32>
    %226 = arith.addf %145, %225 : vector<2x8x32xf32>
    %c1_101 = arith.constant 1 : index
    %c0_102 = arith.constant 0 : index
    %c0_103 = arith.constant 0 : index
    %227 = vector.load %arg10[%c1_101, %c0_102, %c0_103] : memref<2x1x32xf32, #tpu.memory_space<vmem>>, vector<1x1x32xf32>
    %228 = vector.shape_cast %227 : vector<1x1x32xf32> to vector<1x32xf32>
    %229 = vector.shape_cast %228 : vector<1x32xf32> to vector<1x1x32xf32>
    %230 = vector.broadcast %229 : vector<1x1x32xf32> to vector<2x8x32xf32>
    %231 = arith.addf %226, %230 : vector<2x8x32xf32>
    %c1_104 = arith.constant 1 : index
    %c0_105 = arith.constant 0 : index
    %c0_106 = arith.constant 0 : index
    %232 = vector.load %arg11[%c1_104, %c0_105, %c0_106] : memref<2x1x32xf32, #tpu.memory_space<vmem>>, vector<1x1x32xf32>
    %233 = vector.shape_cast %232 : vector<1x1x32xf32> to vector<1x32xf32>
    %c1_107 = arith.constant 1 : index
    %c0_108 = arith.constant 0 : index
    %c0_109 = arith.constant 0 : index
    %234 = vector.load %arg12[%c1_107, %c0_108, %c0_109] : memref<2x1x32xf32, #tpu.memory_space<vmem>>, vector<1x1x32xf32>
    %235 = vector.shape_cast %234 : vector<1x1x32xf32> to vector<1x32xf32>
    %cst_110 = arith.constant dense<0.000000e+00> : vector<2x8xf32>
    %236 = vector.multi_reduction <add>, %231, %cst_110 [2] : vector<2x8x32xf32> to vector<2x8xf32>
    %237 = vector.shape_cast %236 : vector<2x8xf32> to vector<2x8x1xf32>
    %cst_111 = arith.constant 3.200000e+01 : f32
    %238 = vector.broadcast %cst_111 : f32 to vector<2x8x1xf32>
    %239 = arith.divf %237, %238 : vector<2x8x1xf32>
    %240 = vector.broadcast %239 : vector<2x8x1xf32> to vector<2x8x32xf32>
    %241 = arith.subf %231, %240 : vector<2x8x32xf32>
    %242 = vector.broadcast %239 : vector<2x8x1xf32> to vector<2x8x32xf32>
    %243 = arith.subf %231, %242 : vector<2x8x32xf32>
    %244 = arith.mulf %241, %243 : vector<2x8x32xf32>
    %cst_112 = arith.constant dense<0.000000e+00> : vector<2x8xf32>
    %245 = vector.multi_reduction <add>, %244, %cst_112 [2] : vector<2x8x32xf32> to vector<2x8xf32>
    %246 = vector.shape_cast %245 : vector<2x8xf32> to vector<2x8x1xf32>
    %cst_113 = arith.constant 3.200000e+01 : f32
    %247 = vector.broadcast %cst_113 : f32 to vector<2x8x1xf32>
    %248 = arith.divf %246, %247 : vector<2x8x1xf32>
    %249 = vector.broadcast %239 : vector<2x8x1xf32> to vector<2x8x32xf32>
    %250 = arith.subf %231, %249 : vector<2x8x32xf32>
    %cst_114 = arith.constant 9.99999974E-6 : f32
    %251 = vector.broadcast %cst_114 : f32 to vector<2x8x1xf32>
    %252 = arith.addf %248, %251 : vector<2x8x1xf32>
    %253 = math.rsqrt %252 : vector<2x8x1xf32>
    %254 = vector.broadcast %253 : vector<2x8x1xf32> to vector<2x8x32xf32>
    %255 = arith.mulf %250, %254 : vector<2x8x32xf32>
    %256 = vector.shape_cast %233 : vector<1x32xf32> to vector<1x1x32xf32>
    %257 = vector.broadcast %256 : vector<1x1x32xf32> to vector<2x8x32xf32>
    %258 = arith.mulf %255, %257 : vector<2x8x32xf32>
    %259 = vector.shape_cast %235 : vector<1x32xf32> to vector<1x1x32xf32>
    %260 = vector.broadcast %259 : vector<1x1x32xf32> to vector<2x8x32xf32>
    %261 = arith.addf %258, %260 : vector<2x8x32xf32>
    %262 = arith.truncf %261 : vector<2x8x32xf32> to vector<2x8x32xbf16>
    %263 = vector.shape_cast %262 : vector<2x8x32xbf16> to vector<16x32xbf16>
    %c1_115 = arith.constant 1 : index
    %c0_116 = arith.constant 0 : index
    %c0_117 = arith.constant 0 : index
    %264 = vector.load %arg13[%c1_115, %c0_116, %c0_117] : memref<2x32x64xbf16, #tpu.memory_space<vmem>>, vector<1x32x64xbf16>
    %265 = vector.shape_cast %264 : vector<1x32x64xbf16> to vector<32x64xbf16>
    %cst_118 = arith.constant dense<0.000000e+00> : vector<16x64xf32>
    %266 = tpu.matmul %263, %265, %cst_118 {dimension_numbers = #tpu.dot_dimension_numbers<[1], [0], [0], [1], [0, 0, 1, 1], [], []>} : vector<16x32xbf16>, vector<32x64xbf16>, vector<16x64xf32> -> vector<16x64xf32>
    %267 = vector.shape_cast %266 : vector<16x64xf32> to vector<2x8x64xf32>
    %c1_119 = arith.constant 1 : index
    %c0_120 = arith.constant 0 : index
    %c0_121 = arith.constant 0 : index
    %268 = vector.load %arg14[%c1_119, %c0_120, %c0_121] : memref<2x1x64xf32, #tpu.memory_space<vmem>>, vector<1x1x64xf32>
    %269 = vector.shape_cast %268 : vector<1x1x64xf32> to vector<1x64xf32>
    %270 = vector.shape_cast %269 : vector<1x64xf32> to vector<1x1x64xf32>
    %271 = vector.broadcast %270 : vector<1x1x64xf32> to vector<2x8x64xf32>
    %272 = arith.addf %267, %271 : vector<2x8x64xf32>
    %273 = arith.negf %272 : vector<2x8x64xf32>
    %274 = math.exp %273 : vector<2x8x64xf32>
    %cst_122 = arith.constant 1.000000e+00 : f32
    %275 = vector.broadcast %cst_122 : f32 to vector<2x8x64xf32>
    %276 = arith.addf %275, %274 : vector<2x8x64xf32>
    %277 = arith.divf %275, %276 : vector<2x8x64xf32>
    %278 = arith.mulf %272, %277 : vector<2x8x64xf32>
    %279 = arith.truncf %278 : vector<2x8x64xf32> to vector<2x8x64xbf16>
    %280 = vector.shape_cast %279 : vector<2x8x64xbf16> to vector<16x64xbf16>
    %c1_123 = arith.constant 1 : index
    %c0_124 = arith.constant 0 : index
    %c0_125 = arith.constant 0 : index
    %281 = vector.load %arg15[%c1_123, %c0_124, %c0_125] : memref<2x64x32xbf16, #tpu.memory_space<vmem>>, vector<1x64x32xbf16>
    %282 = vector.shape_cast %281 : vector<1x64x32xbf16> to vector<64x32xbf16>
    %cst_126 = arith.constant dense<0.000000e+00> : vector<16x32xf32>
    %283 = tpu.matmul %280, %282, %cst_126 {dimension_numbers = #tpu.dot_dimension_numbers<[1], [0], [0], [1], [0, 0, 1, 1], [], []>} : vector<16x64xbf16>, vector<64x32xbf16>, vector<16x32xf32> -> vector<16x32xf32>
    %284 = vector.shape_cast %283 : vector<16x32xf32> to vector<2x8x32xf32>
    %285 = arith.addf %231, %284 : vector<2x8x32xf32>
    %c1_127 = arith.constant 1 : index
    %c0_128 = arith.constant 0 : index
    %c0_129 = arith.constant 0 : index
    %286 = vector.load %arg16[%c1_127, %c0_128, %c0_129] : memref<2x1x32xf32, #tpu.memory_space<vmem>>, vector<1x1x32xf32>
    %287 = vector.shape_cast %286 : vector<1x1x32xf32> to vector<1x32xf32>
    %288 = vector.shape_cast %287 : vector<1x32xf32> to vector<1x1x32xf32>
    %289 = vector.broadcast %288 : vector<1x1x32xf32> to vector<2x8x32xf32>
    %290 = arith.addf %285, %289 : vector<2x8x32xf32>
    %c0_130 = arith.constant 0 : index
    %c0_131 = arith.constant 0 : index
    %c0_132 = arith.constant 0 : index
    %291 = vector.load %arg17[%c0_130, %c0_131, %c0_132] : memref<2x8x32xf32, #tpu.memory_space<vmem>>, vector<2x8x32xf32>
    tpu.vector_store %arg17[%c0_130, %c0_131, %c0_132], %290 {strides = array<i32>} : memref<2x8x32xf32, #tpu.memory_space<vmem>>, vector<2x8x32xf32>,
    return
  }
  func.func @transform_0(%arg0: i32) -> (i32, i32, i32) {
    %c0_i32 = arith.constant 0 : i32
    %c0_i32_0 = arith.constant 0 : i32
    %c0_i32_1 = arith.constant 0 : i32
    return %arg0, %c0_i32, %c0_i32_0 : i32, i32, i32
  }
  func.func @transform_1(%arg0: i32) -> (i32, i32, i32) {
    %c0_i32 = arith.constant 0 : i32
    %c0_i32_0 = arith.constant 0 : i32
    %c0_i32_1 = arith.constant 0 : i32
    %c0_i32_2 = arith.constant 0 : i32
    return %c0_i32, %c0_i32_0, %c0_i32_1 : i32, i32, i32
  }
  func.func @transform_2(%arg0: i32) -> (i32, i32, i32) {
    %c0_i32 = arith.constant 0 : i32
    %c0_i32_0 = arith.constant 0 : i32
    %c0_i32_1 = arith.constant 0 : i32
    %c0_i32_2 = arith.constant 0 : i32
    return %c0_i32, %c0_i32_0, %c0_i32_1 : i32, i32, i32
  }
  func.func @transform_3(%arg0: i32) -> (i32, i32, i32) {
    %c0_i32 = arith.constant 0 : i32
    %c0_i32_0 = arith.constant 0 : i32
    %c0_i32_1 = arith.constant 0 : i32
    %c0_i32_2 = arith.constant 0 : i32
    return %c0_i32, %c0_i32_0, %c0_i32_1 : i32, i32, i32
  }
  func.func @transform_4(%arg0: i32) -> (i32, i32, i32) {
    %c0_i32 = arith.constant 0 : i32
    %c0_i32_0 = arith.constant 0 : i32
    %c0_i32_1 = arith.constant 0 : i32
    %c0_i32_2 = arith.constant 0 : i32
    return %c0_i32, %c0_i32_0, %c0_i32_1 : i32, i32, i32
  }
  func.func @transform_5(%arg0: i32) -> (i32, i32, i32) {
    %c0_i32 = arith.constant 0 : i32
    %c0_i32_0 = arith.constant 0 : i32
    %c0_i32_1 = arith.constant 0 : i32
    %c0_i32_2 = arith.constant 0 : i32
    return %c0_i32, %c0_i32_0, %c0_i32_1 : i32, i32, i32
  }
  func.func @transform_6(%arg0: i32) -> (i32, i32, i32) {
    %c0_i32 = arith.constant 0 : i32
    %c0_i32_0 = arith.constant 0 : i32
    %c0_i32_1 = arith.constant 0 : i32
    %c0_i32_2 = arith.constant 0 : i32
    return %c0_i32, %c0_i32_0, %c0_i32_1 : i32, i32, i32
  }
  func.func @transform_7(%arg0: i32) -> (i32, i32, i32) {
    %c0_i32 = arith.constant 0 : i32
    %c0_i32_0 = arith.constant 0 : i32
    %c0_i32_1 = arith.constant 0 : i32
    %c0_i32_2 = arith.constant 0 : i32
    return %c0_i32, %c0_i32_0, %c0_i32_1 : i32, i32, i32
  }
  func.func @transform_8(%arg0: i32) -> (i32, i32, i32) {
    %c0_i32 = arith.constant 0 : i32
    %c0_i32_0 = arith.constant 0 : i32
    %c0_i32_1 = arith.constant 0 : i32
    %c0_i32_2 = arith.constant 0 : i32
    return %c0_i32, %c0_i32_0, %c0_i32_1 : i32, i32, i32
  }
  func.func @transform_9(%arg0: i32) -> (i32, i32, i32) {
    %c0_i32 = arith.constant 0 : i32
    %c0_i32_0 = arith.constant 0 : i32
    %c0_i32_1 = arith.constant 0 : i32
    %c0_i32_2 = arith.constant 0 : i32
    return %c0_i32, %c0_i32_0, %c0_i32_1 : i32, i32, i32
  }
  func.func @transform_10(%arg0: i32) -> (i32, i32, i32) {
    %c0_i32 = arith.constant 0 : i32
    %c0_i32_0 = arith.constant 0 : i32
    %c0_i32_1 = arith.constant 0 : i32
    %c0_i32_2 = arith.constant 0 : i32
    return %c0_i32, %c0_i32_0, %c0_i32_1 : i32, i32, i32
  }
  func.func @transform_11(%arg0: i32) -> (i32, i32, i32) {
    %c0_i32 = arith.constant 0 : i32
    %c0_i32_0 = arith.constant 0 : i32
    %c0_i32_1 = arith.constant 0 : i32
    %c0_i32_2 = arith.constant 0 : i32
    return %c0_i32, %c0_i32_0, %c0_i32_1 : i32, i32, i32
  }
  func.func @transform_12(%arg0: i32) -> (i32, i32, i32) {
    %c0_i32 = arith.constant 0 : i32
    %c0_i32_0 = arith.constant 0 : i32
    %c0_i32_1 = arith.constant 0 : i32
    %c0_i32_2 = arith.constant 0 : i32
    return %c0_i32, %c0_i32_0, %c0_i32_1 : i32, i32, i32
  }
  func.func @transform_13(%arg0: i32) -> (i32, i32, i32) {
    %c0_i32 = arith.constant 0 : i32
    %c0_i32_0 = arith.constant 0 : i32
    %c0_i32_1 = arith.constant 0 : i32
    %c0_i32_2 = arith.constant 0 : i32
    return %c0_i32, %c0_i32_0, %c0_i32_1 : i32, i32, i32
  }
  func.func @transform_14(%arg0: i32) -> (i32, i32, i32) {
    %c0_i32 = arith.constant 0 : i32
    %c0_i32_0 = arith.constant 0 : i32
    %c0_i32_1 = arith.constant 0 : i32
    %c0_i32_2 = arith.constant 0 : i32
    return %c0_i32, %c0_i32_0, %c0_i32_1 : i32, i32, i32
  }
  func.func @transform_15(%arg0: i32) -> (i32, i32, i32) {
    %c0_i32 = arith.constant 0 : i32
    %c0_i32_0 = arith.constant 0 : i32
    %c0_i32_1 = arith.constant 0 : i32
    %c0_i32_2 = arith.constant 0 : i32
    return %c0_i32, %c0_i32_0, %c0_i32_1 : i32, i32, i32
  }
  func.func @transform_16(%arg0: i32) -> (i32, i32, i32) {
    %c0_i32 = arith.constant 0 : i32
    %c0_i32_0 = arith.constant 0 : i32
    %c0_i32_1 = arith.constant 0 : i32
    return %arg0, %c0_i32, %c0_i32_0 : i32, i32, i32
  }
}

module attributes {stable_mosaic.version = 11 : i64} {
  func.func @transformer_stack_kernel(%arg0: i32, %arg1: memref<2x8x32xf32, #tpu.memory_space<vmem>>, %arg2: memref<2x1x32xf32, #tpu.memory_space<vmem>>, %arg3: memref<2x1x32xf32, #tpu.memory_space<vmem>>, %arg4: memref<2x1x32xf32, #tpu.memory_space<vmem>>, %arg5: memref<2x32x32xbf16, #tpu.memory_space<vmem>>, %arg6: memref<2x1x32xf32, #tpu.memory_space<vmem>>, %arg7: memref<2x32x32xbf16, #tpu.memory_space<vmem>>, %arg8: memref<2x1x32xf32, #tpu.memory_space<vmem>>, %arg9: memref<2x32x32xbf16, #tpu.memory_space<vmem>>, %arg10: memref<2x1x32xf32, #tpu.memory_space<vmem>>, %arg11: memref<2x1x32xf32, #tpu.memory_space<vmem>>, %arg12: memref<2x1x32xf32, #tpu.memory_space<vmem>>, %arg13: memref<2x32x64xbf16, #tpu.memory_space<vmem>>, %arg14: memref<2x1x64xf32, #tpu.memory_space<vmem>>, %arg15: memref<2x64x32xbf16, #tpu.memory_space<vmem>>, %arg16: memref<2x1x32xf32, #tpu.memory_space<vmem>>, %arg17: memref<2x8x32xf32, #tpu.memory_space<vmem>>) attributes {dimension_semantics = [#tpu.dimension_semantics<parallel>], iteration_bounds = array<i64: 1>, scalar_prefetch = 0 : i64, scratch_operands = 0 : i64, tpu.core_type = #tpu.core_type<tc>, window_params = [{transform_indices = @transform_0, window_bounds = array<i64: 2, 8, 32>}, {pipeline_mode = #tpu.pipeline_mode<synchronous>, transform_indices = @transform_1, window_bounds = array<i64: 2, 1, 32>}, {pipeline_mode = #tpu.pipeline_mode<synchronous>, transform_indices = @transform_2, window_bounds = array<i64: 2, 1, 32>}, {pipeline_mode = #tpu.pipeline_mode<synchronous>, transform_indices = @transform_3, window_bounds = array<i64: 2, 1, 32>}, {pipeline_mode = #tpu.pipeline_mode<synchronous>, transform_indices = @transform_4, window_bounds = array<i64: 2, 32, 32>}, {pipeline_mode = #tpu.pipeline_mode<synchronous>, transform_indices = @transform_5, window_bounds = array<i64: 2, 1, 32>}, {pipeline_mode = #tpu.pipeline_mode<synchronous>, transform_indices = @transform_6, window_bounds = array<i64: 2, 32, 32>}, {pipeline_mode = #tpu.pipeline_mode<synchronous>, transform_indices = @transform_7, window_bounds = array<i64: 2, 1, 32>}, {pipeline_mode = #tpu.pipeline_mode<synchronous>, transform_indices = @transform_8, window_bounds = array<i64: 2, 32, 32>}, {pipeline_mode = #tpu.pipeline_mode<synchronous>, transform_indices = @transform_9, window_bounds = array<i64: 2, 1, 32>}, {pipeline_mode = #tpu.pipeline_mode<synchronous>, transform_indices = @transform_10, window_bounds = array<i64: 2, 1, 32>}, {pipeline_mode = #tpu.pipeline_mode<synchronous>, transform_indices = @transform_11, window_bounds = array<i64: 2, 1, 32>}, {pipeline_mode = #tpu.pipeline_mode<synchronous>, transform_indices = @transform_12, window_bounds = array<i64: 2, 32, 64>}, {pipeline_mode = #tpu.pipeline_mode<synchronous>, transform_indices = @transform_13, window_bounds = array<i64: 2, 1, 64>}, {pipeline_mode = #tpu.pipeline_mode<synchronous>, transform_indices = @transform_14, window_bounds = array<i64: 2, 64, 32>}, {pipeline_mode = #tpu.pipeline_mode<synchronous>, transform_indices = @transform_15, window_bounds = array<i64: 2, 1, 32>}, {transform_indices = @transform_16, window_bounds = array<i64: 2, 8, 32>}]} {
    %c0 = arith.constant 0 : index
    %c0_0 = arith.constant 0 : index
    %c0_1 = arith.constant 0 : index
    %0 = vector.load %arg1[%c0, %c0_0, %c0_1] : memref<2x8x32xf32, #tpu.memory_space<vmem>>, vector<2x8x32xf32>
    %c0_2 = arith.constant 0 : index
    %c0_3 = arith.constant 0 : index
    %c0_4 = arith.constant 0 : index
    %1 = vector.load %arg2[%c0_2, %c0_3, %c0_4] : memref<2x1x32xf32, #tpu.memory_space<vmem>>, vector<1x1x32xf32>
    %2 = vector.shape_cast %1 : vector<1x1x32xf32> to vector<1x32xf32>
    %c0_5 = arith.constant 0 : index
    %c0_6 = arith.constant 0 : index
    %c0_7 = arith.constant 0 : index
    %3 = vector.load %arg3[%c0_5, %c0_6, %c0_7] : memref<2x1x32xf32, #tpu.memory_space<vmem>>, vector<1x1x32xf32>
    %4 = vector.shape_cast %3 : vector<1x1x32xf32> to vector<1x32xf32>
    %cst = arith.constant dense<0.000000e+00> : vector<2x8xf32>
    %5 = vector.multi_reduction <add>, %0, %cst [2] : vector<2x8x32xf32> to vector<2x8xf32>
    %6 = vector.shape_cast %5 : vector<2x8xf32> to vector<2x8x1xf32>
    %cst_8 = arith.constant 3.200000e+01 : f32
    %7 = vector.broadcast %cst_8 : f32 to vector<2x8x1xf32>
    %8 = arith.divf %6, %7 : vector<2x8x1xf32>
    %9 = vector.broadcast %8 : vector<2x8x1xf32> to vector<2x8x32xf32>
    %10 = arith.subf %0, %9 : vector<2x8x32xf32>
    %11 = vector.broadcast %8 : vector<2x8x1xf32> to vector<2x8x32xf32>
    %12 = arith.subf %0, %11 : vector<2x8x32xf32>
    %13 = arith.mulf %10, %12 : vector<2x8x32xf32>
    %cst_9 = arith.constant dense<0.000000e+00> : vector<2x8xf32>
    %14 = vector.multi_reduction <add>, %13, %cst_9 [2] : vector<2x8x32xf32> to vector<2x8xf32>
    %15 = vector.shape_cast %14 : vector<2x8xf32> to vector<2x8x1xf32>
    %cst_10 = arith.constant 3.200000e+01 : f32
    %16 = vector.broadcast %cst_10 : f32 to vector<2x8x1xf32>
    %17 = arith.divf %15, %16 : vector<2x8x1xf32>
    %18 = vector.broadcast %8 : vector<2x8x1xf32> to vector<2x8x32xf32>
    %19 = arith.subf %0, %18 : vector<2x8x32xf32>
    %cst_11 = arith.constant 9.99999974E-6 : f32
    %20 = vector.broadcast %cst_11 : f32 to vector<2x8x1xf32>
    %21 = arith.addf %17, %20 : vector<2x8x1xf32>
    %22 = math.rsqrt %21 : vector<2x8x1xf32>
    %23 = vector.broadcast %22 : vector<2x8x1xf32> to vector<2x8x32xf32>
    %24 = arith.mulf %19, %23 : vector<2x8x32xf32>
    %25 = vector.shape_cast %2 : vector<1x32xf32> to vector<1x1x32xf32>
    %26 = vector.broadcast %25 : vector<1x1x32xf32> to vector<2x8x32xf32>
    %27 = arith.mulf %24, %26 : vector<2x8x32xf32>
    %28 = vector.shape_cast %4 : vector<1x32xf32> to vector<1x1x32xf32>
    %29 = vector.broadcast %28 : vector<1x1x32xf32> to vector<2x8x32xf32>
    %30 = arith.addf %27, %29 : vector<2x8x32xf32>
    %c0_12 = arith.constant 0 : index
    %c0_13 = arith.constant 0 : index
    %c0_14 = arith.constant 0 : index
    %31 = vector.load %arg4[%c0_12, %c0_13, %c0_14] : memref<2x1x32xf32, #tpu.memory_space<vmem>>, vector<1x1x32xf32>
    %32 = vector.shape_cast %31 : vector<1x1x32xf32> to vector<1x32xf32>
    %33 = vector.shape_cast %32 : vector<1x32xf32> to vector<1x1x32xf32>
    %34 = vector.broadcast %33 : vector<1x1x32xf32> to vector<2x8x32xf32>
    %35 = arith.mulf %30, %34 : vector<2x8x32xf32>
    %cst_15 = arith.constant dense<0.000000e+00> : vector<2x8xf32>
    %36 = vector.multi_reduction <add>, %35, %cst_15 [2] : vector<2x8x32xf32> to vector<2x8xf32>
    %37 = vector.shape_cast %36 : vector<2x8xf32> to vector<2x8x1xf32>
    %cst_16 = arith.constant dense<0xFF800000> : vector<2x1xf32>
    %38 = vector.multi_reduction <maximumf>, %37, %cst_16 [1] : vector<2x8x1xf32> to vector<2x1xf32>
    %39 = vector.shape_cast %38 : vector<2x1xf32> to vector<2x1x1xf32>
    %40 = vector.broadcast %39 : vector<2x1x1xf32> to vector<2x8x1xf32>
    %41 = arith.subf %37, %40 : vector<2x8x1xf32>
    %42 = math.exp %41 : vector<2x8x1xf32>
    %cst_17 = arith.constant dense<0.000000e+00> : vector<2x1xf32>
    %43 = vector.multi_reduction <add>, %42, %cst_17 [1] : vector<2x8x1xf32> to vector<2x1xf32>
    %44 = vector.shape_cast %43 : vector<2x1xf32> to vector<2x1x1xf32>
    %45 = tpu.reciprocal %44 {approx = true} : vector<2x1x1xf32> -> vector<2x1x1xf32>
    %46 = vector.broadcast %45 : vector<2x1x1xf32> to vector<2x8x1xf32>
    %47 = arith.mulf %42, %46 : vector<2x8x1xf32>
    %48 = vector.broadcast %47 : vector<2x8x1xf32> to vector<2x8x32xf32>
    %49 = arith.mulf %48, %30 : vector<2x8x32xf32>
    %cst_18 = arith.constant dense<0.000000e+00> : vector<2x32xf32>
    %50 = vector.multi_reduction <add>, %49, %cst_18 [1] : vector<2x8x32xf32> to vector<2x32xf32>
    %51 = vector.shape_cast %50 : vector<2x32xf32> to vector<2x1x32xf32>
    %52 = vector.shape_cast %51 : vector<2x1x32xf32> to vector<2x32xf32>
    %53 = arith.truncf %52 : vector<2x32xf32> to vector<2x32xbf16>
    %c0_19 = arith.constant 0 : index
    %c0_20 = arith.constant 0 : index
    %c0_21 = arith.constant 0 : index
    %54 = vector.load %arg5[%c0_19, %c0_20, %c0_21] : memref<2x32x32xbf16, #tpu.memory_space<vmem>>, vector<1x32x32xbf16>
    %55 = vector.shape_cast %54 : vector<1x32x32xbf16> to vector<32x32xbf16>
    %cst_22 = arith.constant dense<0.000000e+00> : vector<2x32xf32>
    %56 = tpu.matmul %53, %55, %cst_22 {dimension_numbers = #tpu.dot_dimension_numbers<[1], [0], [0], [1], [0, 0, 1, 1], [], []>} : vector<2x32xbf16>, vector<32x32xbf16>, vector<2x32xf32> -> vector<2x32xf32>
    %c0_23 = arith.constant 0 : index
    %c0_24 = arith.constant 0 : index
    %c0_25 = arith.constant 0 : index
    %57 = vector.load %arg6[%c0_23, %c0_24, %c0_25] : memref<2x1x32xf32, #tpu.memory_space<vmem>>, vector<1x1x32xf32>
    %58 = vector.shape_cast %57 : vector<1x1x32xf32> to vector<1x32xf32>
    %59 = vector.broadcast %58 : vector<1x32xf32> to vector<2x32xf32>
    %60 = arith.addf %56, %59 : vector<2x32xf32>
    %61 = arith.truncf %30 : vector<2x8x32xf32> to vector<2x8x32xbf16>
    %62 = vector.shape_cast %61 : vector<2x8x32xbf16> to vector<16x32xbf16>
    %c0_26 = arith.constant 0 : index
    %c0_27 = arith.constant 0 : index
    %c0_28 = arith.constant 0 : index
    %63 = vector.load %arg7[%c0_26, %c0_27, %c0_28] : memref<2x32x32xbf16, #tpu.memory_space<vmem>>, vector<1x32x32xbf16>
    %64 = vector.shape_cast %63 : vector<1x32x32xbf16> to vector<32x32xbf16>
    %cst_29 = arith.constant dense<0.000000e+00> : vector<16x32xf32>
    %65 = tpu.matmul %62, %64, %cst_29 {dimension_numbers = #tpu.dot_dimension_numbers<[1], [0], [0], [1], [0, 0, 1, 1], [], []>} : vector<16x32xbf16>, vector<32x32xbf16>, vector<16x32xf32> -> vector<16x32xf32>
    %66 = vector.shape_cast %65 : vector<16x32xf32> to vector<2x8x32xf32>
    %c0_30 = arith.constant 0 : index
    %c0_31 = arith.constant 0 : index
    %c0_32 = arith.constant 0 : index
    %67 = vector.load %arg8[%c0_30, %c0_31, %c0_32] : memref<2x1x32xf32, #tpu.memory_space<vmem>>, vector<1x1x32xf32>
    %68 = vector.shape_cast %67 : vector<1x1x32xf32> to vector<1x32xf32>
    %69 = vector.shape_cast %68 : vector<1x32xf32> to vector<1x1x32xf32>
    %70 = vector.broadcast %69 : vector<1x1x32xf32> to vector<2x8x32xf32>
    %71 = arith.addf %66, %70 : vector<2x8x32xf32>
    %72 = vector.shape_cast %60 : vector<2x32xf32> to vector<2x1x32xf32>
    %73 = vector.broadcast %72 : vector<2x1x32xf32> to vector<2x8x32xf32>
    %74 = arith.mulf %71, %73 : vector<2x8x32xf32>
    %75 = arith.truncf %74 : vector<2x8x32xf32> to vector<2x8x32xbf16>
    %76 = vector.shape_cast %75 : vector<2x8x32xbf16> to vector<16x32xbf16>
    %c0_33 = arith.constant 0 : index
    %c0_34 = arith.constant 0 : index
    %c0_35 = arith.constant 0 : index
    %77 = vector.load %arg9[%c0_33, %c0_34, %c0_35] : memref<2x32x32xbf16, #tpu.memory_space<vmem>>, vector<1x32x32xbf16>
    %78 = vector.shape_cast %77 : vector<1x32x32xbf16> to vector<32x32xbf16>
    %cst_36 = arith.constant dense<0.000000e+00> : vector<16x32xf32>
    %79 = tpu.matmul %76, %78, %cst_36 {dimension_numbers = #tpu.dot_dimension_numbers<[1], [0], [0], [1], [0, 0, 1, 1], [], []>} : vector<16x32xbf16>, vector<32x32xbf16>, vector<16x32xf32> -> vector<16x32xf32>
    %80 = vector.shape_cast %79 : vector<16x32xf32> to vector<2x8x32xf32>
    %81 = arith.addf %0, %80 : vector<2x8x32xf32>
    %c0_37 = arith.constant 0 : index
    %c0_38 = arith.constant 0 : index
    %c0_39 = arith.constant 0 : index
    %82 = vector.load %arg10[%c0_37, %c0_38, %c0_39] : memref<2x1x32xf32, #tpu.memory_space<vmem>>, vector<1x1x32xf32>
    %83 = vector.shape_cast %82 : vector<1x1x32xf32> to vector<1x32xf32>
    %84 = vector.shape_cast %83 : vector<1x32xf32> to vector<1x1x32xf32>
    %85 = vector.broadcast %84 : vector<1x1x32xf32> to vector<2x8x32xf32>
    %86 = arith.addf %81, %85 : vector<2x8x32xf32>
    %c0_40 = arith.constant 0 : index
    %c0_41 = arith.constant 0 : index
    %c0_42 = arith.constant 0 : index
    %87 = vector.load %arg11[%c0_40, %c0_41, %c0_42] : memref<2x1x32xf32, #tpu.memory_space<vmem>>, vector<1x1x32xf32>
    %88 = vector.shape_cast %87 : vector<1x1x32xf32> to vector<1x32xf32>
    %c0_43 = arith.constant 0 : index
    %c0_44 = arith.constant 0 : index
    %c0_45 = arith.constant 0 : index
    %89 = vector.load %arg12[%c0_43, %c0_44, %c0_45] : memref<2x1x32xf32, #tpu.memory_space<vmem>>, vector<1x1x32xf32>
    %90 = vector.shape_cast %89 : vector<1x1x32xf32> to vector<1x32xf32>
    %cst_46 = arith.constant dense<0.000000e+00> : vector<2x8xf32>
    %91 = vector.multi_reduction <add>, %86, %cst_46 [2] : vector<2x8x32xf32> to vector<2x8xf32>
    %92 = vector.shape_cast %91 : vector<2x8xf32> to vector<2x8x1xf32>
    %cst_47 = arith.constant 3.200000e+01 : f32
    %93 = vector.broadcast %cst_47 : f32 to vector<2x8x1xf32>
    %94 = arith.divf %92, %93 : vector<2x8x1xf32>
    %95 = vector.broadcast %94 : vector<2x8x1xf32> to vector<2x8x32xf32>
    %96 = arith.subf %86, %95 : vector<2x8x32xf32>
    %97 = vector.broadcast %94 : vector<2x8x1xf32> to vector<2x8x32xf32>
    %98 = arith.subf %86, %97 : vector<2x8x32xf32>
    %99 = arith.mulf %96, %98 : vector<2x8x32xf32>
    %cst_48 = arith.constant dense<0.000000e+00> : vector<2x8xf32>
    %100 = vector.multi_reduction <add>, %99, %cst_48 [2] : vector<2x8x32xf32> to vector<2x8xf32>
    %101 = vector.shape_cast %100 : vector<2x8xf32> to vector<2x8x1xf32>
    %cst_49 = arith.constant 3.200000e+01 : f32
    %102 = vector.broadcast %cst_49 : f32 to vector<2x8x1xf32>
    %103 = arith.divf %101, %102 : vector<2x8x1xf32>
    %104 = vector.broadcast %94 : vector<2x8x1xf32> to vector<2x8x32xf32>
    %105 = arith.subf %86, %104 : vector<2x8x32xf32>
    %cst_50 = arith.constant 9.99999974E-6 : f32
    %106 = vector.broadcast %cst_50 : f32 to vector<2x8x1xf32>
    %107 = arith.addf %103, %106 : vector<2x8x1xf32>
    %108 = math.rsqrt %107 : vector<2x8x1xf32>
    %109 = vector.broadcast %108 : vector<2x8x1xf32> to vector<2x8x32xf32>
    %110 = arith.mulf %105, %109 : vector<2x8x32xf32>
    %111 = vector.shape_cast %88 : vector<1x32xf32> to vector<1x1x32xf32>
    %112 = vector.broadcast %111 : vector<1x1x32xf32> to vector<2x8x32xf32>
    %113 = arith.mulf %110, %112 : vector<2x8x32xf32>
    %114 = vector.shape_cast %90 : vector<1x32xf32> to vector<1x1x32xf32>
    %115 = vector.broadcast %114 : vector<1x1x32xf32> to vector<2x8x32xf32>
    %116 = arith.addf %113, %115 : vector<2x8x32xf32>
    %117 = arith.truncf %116 : vector<2x8x32xf32> to vector<2x8x32xbf16>
    %118 = vector.shape_cast %117 : vector<2x8x32xbf16> to vector<16x32xbf16>
    %c0_51 = arith.constant 0 : index
    %c0_52 = arith.constant 0 : index
    %c0_53 = arith.constant 0 : index
    %119 = vector.load %arg13[%c0_51, %c0_52, %c0_53] : memref<2x32x64xbf16, #tpu.memory_space<vmem>>, vector<1x32x64xbf16>
    %120 = vector.shape_cast %119 : vector<1x32x64xbf16> to vector<32x64xbf16>
    %cst_54 = arith.constant dense<0.000000e+00> : vector<16x64xf32>
    %121 = tpu.matmul %118, %120, %cst_54 {dimension_numbers = #tpu.dot_dimension_numbers<[1], [0], [0], [1], [0, 0, 1, 1], [], []>} : vector<16x32xbf16>, vector<32x64xbf16>, vector<16x64xf32> -> vector<16x64xf32>
    %122 = vector.shape_cast %121 : vector<16x64xf32> to vector<2x8x64xf32>
    %c0_55 = arith.constant 0 : index
    %c0_56 = arith.constant 0 : index
    %c0_57 = arith.constant 0 : index
    %123 = vector.load %arg14[%c0_55, %c0_56, %c0_57] : memref<2x1x64xf32, #tpu.memory_space<vmem>>, vector<1x1x64xf32>
    %124 = vector.shape_cast %123 : vector<1x1x64xf32> to vector<1x64xf32>
    %125 = vector.shape_cast %124 : vector<1x64xf32> to vector<1x1x64xf32>
    %126 = vector.broadcast %125 : vector<1x1x64xf32> to vector<2x8x64xf32>
    %127 = arith.addf %122, %126 : vector<2x8x64xf32>
    %128 = arith.negf %127 : vector<2x8x64xf32>
    %129 = math.exp %128 : vector<2x8x64xf32>
    %cst_58 = arith.constant 1.000000e+00 : f32
    %130 = vector.broadcast %cst_58 : f32 to vector<2x8x64xf32>
    %131 = arith.addf %130, %129 : vector<2x8x64xf32>
    %132 = arith.divf %130, %131 : vector<2x8x64xf32>
    %133 = arith.mulf %127, %132 : vector<2x8x64xf32>
    %134 = arith.truncf %133 : vector<2x8x64xf32> to vector<2x8x64xbf16>
    %135 = vector.shape_cast %134 : vector<2x8x64xbf16> to vector<16x64xbf16>
    %c0_59 = arith.constant 0 : index
    %c0_60 = arith.constant 0 : index
    %c0_61 = arith.constant 0 : index
    %136 = vector.load %arg15[%c0_59, %c0_60, %c0_61] : memref<2x64x32xbf16, #tpu.memory_space<vmem>>, vector<1x64x32xbf16>
    %137 = vector.shape_cast %136 : vector<1x64x32xbf16> to vector<64x32xbf16>
    %cst_62 = arith.constant dense<0.000000e+00> : vector<16x32xf32>
    %138 = tpu.matmul %135, %137, %cst_62 {dimension_numbers = #tpu.dot_dimension_numbers<[1], [0], [0], [1], [0, 0, 1, 1], [], []>} : vector<16x64xbf16>, vector<64x32xbf16>, vector<16x32xf32> -> vector<16x32xf32>
    %139 = vector.shape_cast %138 : vector<16x32xf32> to vector<2x8x32xf32>
    %140 = arith.addf %86, %139 : vector<2x8x32xf32>
    %c0_63 = arith.constant 0 : index
    %c0_64 = arith.constant 0 : index
    %c0_65 = arith.constant 0 : index
    %141 = vector.load %arg16[%c0_63, %c0_64, %c0_65] : memref<2x1x32xf32, #tpu.memory_space<vmem>>, vector<1x1x32xf32>
    %142 = vector.shape_cast %141 : vector<1x1x32xf32> to vector<1x32xf32>
    %143 = vector.shape_cast %142 : vector<1x32xf32> to vector<1x1x32xf32>
    %144 = vector.broadcast %143 : vector<1x1x32xf32> to vector<2x8x32xf32>
    %145 = arith.addf %140, %144 : vector<2x8x32xf32>
    %c1 = arith.constant 1 : index
    %c0_66 = arith.constant 0 : index
    %c0_67 = arith.constant 0 : index
    %146 = vector.load %arg2[%c1, %c0_66, %c0_67] : memref<2x1x32xf32, #tpu.memory_space<vmem>>, vector<1x1x32xf32>
    %147 = vector.shape_cast %146 : vector<1x1x32xf32> to vector<1x32xf32>
    %c1_68 = arith.constant 1 : index
    %c0_69 = arith.constant 0 : index
    %c0_70 = arith.constant 0 : index
    %148 = vector.load %arg3[%c1_68, %c0_69, %c0_70] : memref<2x1x32xf32, #tpu.memory_space<vmem>>, vector<1x1x32xf32>
    %149 = vector.shape_cast %148 : vector<1x1x32xf32> to vector<1x32xf32>
    %cst_71 = arith.constant dense<0.000000e+00> : vector<2x8xf32>
    %150 = vector.multi_reduction <add>, %145, %cst_71 [2] : vector<2x8x32xf32> to vector<2x8xf32>
    %151 = vector.shape_cast %150 : vector<2x8xf32> to vector<2x8x1xf32>
    %cst_72 = arith.constant 3.200000e+01 : f32
    %152 = vector.broadcast %cst_72 : f32 to vector<2x8x1xf32>
    %153 = arith.divf %151, %152 : vector<2x8x1xf32>
    %154 = vector.broadcast %153 : vector<2x8x1xf32> to vector<2x8x32xf32>
    %155 = arith.subf %145, %154 : vector<2x8x32xf32>
    %156 = vector.broadcast %153 : vector<2x8x1xf32> to vector<2x8x32xf32>
    %157 = arith.subf %145, %156 : vector<2x8x32xf32>
    %158 = arith.mulf %155, %157 : vector<2x8x32xf32>
    %cst_73 = arith.constant dense<0.000000e+00> : vector<2x8xf32>
    %159 = vector.multi_reduction <add>, %158, %cst_73 [2] : vector<2x8x32xf32> to vector<2x8xf32>
    %160 = vector.shape_cast %159 : vector<2x8xf32> to vector<2x8x1xf32>
    %cst_74 = arith.constant 3.200000e+01 : f32
    %161 = vector.broadcast %cst_74 : f32 to vector<2x8x1xf32>
    %162 = arith.divf %160, %161 : vector<2x8x1xf32>
    %163 = vector.broadcast %153 : vector<2x8x1xf32> to vector<2x8x32xf32>
    %164 = arith.subf %145, %163 : vector<2x8x32xf32>
    %cst_75 = arith.constant 9.99999974E-6 : f32
    %165 = vector.broadcast %cst_75 : f32 to vector<2x8x1xf32>
    %166 = arith.addf %162, %165 : vector<2x8x1xf32>
    %167 = math.rsqrt %166 : vector<2x8x1xf32>
    %168 = vector.broadcast %167 : vector<2x8x1xf32> to vector<2x8x32xf32>
    %169 = arith.mulf %164, %168 : vector<2x8x32xf32>
    %170 = vector.shape_cast %147 : vector<1x32xf32> to vector<1x1x32xf32>
    %171 = vector.broadcast %170 : vector<1x1x32xf32> to vector<2x8x32xf32>
    %172 = arith.mulf %169, %171 : vector<2x8x32xf32>
    %173 = vector.shape_cast %149 : vector<1x32xf32> to vector<1x1x32xf32>
    %174 = vector.broadcast %173 : vector<1x1x32xf32> to vector<2x8x32xf32>
    %175 = arith.addf %172, %174 : vector<2x8x32xf32>
    %c1_76 = arith.constant 1 : index
    %c0_77 = arith.constant 0 : index
    %c0_78 = arith.constant 0 : index
    %176 = vector.load %arg4[%c1_76, %c0_77, %c0_78] : memref<2x1x32xf32, #tpu.memory_space<vmem>>, vector<1x1x32xf32>
    %177 = vector.shape_cast %176 : vector<1x1x32xf32> to vector<1x32xf32>
    %178 = vector.shape_cast %177 : vector<1x32xf32> to vector<1x1x32xf32>
    %179 = vector.broadcast %178 : vector<1x1x32xf32> to vector<2x8x32xf32>
    %180 = arith.mulf %175, %179 : vector<2x8x32xf32>
    %cst_79 = arith.constant dense<0.000000e+00> : vector<2x8xf32>
    %181 = vector.multi_reduction <add>, %180, %cst_79 [2] : vector<2x8x32xf32> to vector<2x8xf32>
    %182 = vector.shape_cast %181 : vector<2x8xf32> to vector<2x8x1xf32>
    %cst_80 = arith.constant dense<0xFF800000> : vector<2x1xf32>
    %183 = vector.multi_reduction <maximumf>, %182, %cst_80 [1] : vector<2x8x1xf32> to vector<2x1xf32>
    %184 = vector.shape_cast %183 : vector<2x1xf32> to vector<2x1x1xf32>
    %185 = vector.broadcast %184 : vector<2x1x1xf32> to vector<2x8x1xf32>
    %186 = arith.subf %182, %185 : vector<2x8x1xf32>
    %187 = math.exp %186 : vector<2x8x1xf32>
    %cst_81 = arith.constant dense<0.000000e+00> : vector<2x1xf32>
    %188 = vector.multi_reduction <add>, %187, %cst_81 [1] : vector<2x8x1xf32> to vector<2x1xf32>
    %189 = vector.shape_cast %188 : vector<2x1xf32> to vector<2x1x1xf32>
    %190 = tpu.reciprocal %189 {approx = true} : vector<2x1x1xf32> -> vector<2x1x1xf32>
    %191 = vector.broadcast %190 : vector<2x1x1xf32> to vector<2x8x1xf32>
    %192 = arith.mulf %187, %191 : vector<2x8x1xf32>
    %193 = vector.broadcast %192 : vector<2x8x1xf32> to vector<2x8x32xf32>
    %194 = arith.mulf %193, %175 : vector<2x8x32xf32>
    %cst_82 = arith.constant dense<0.000000e+00> : vector<2x32xf32>
    %195 = vector.multi_reduction <add>, %194, %cst_82 [1] : vector<2x8x32xf32> to vector<2x32xf32>
    %196 = vector.shape_cast %195 : vector<2x32xf32> to vector<2x1x32xf32>
    %197 = vector.shape_cast %196 : vector<2x1x32xf32> to vector<2x32xf32>
    %198 = arith.truncf %197 : vector<2x32xf32> to vector<2x32xbf16>
    %c1_83 = arith.constant 1 : index
    %c0_84 = arith.constant 0 : index
    %c0_85 = arith.constant 0 : index
    %199 = vector.load %arg5[%c1_83, %c0_84, %c0_85] : memref<2x32x32xbf16, #tpu.memory_space<vmem>>, vector<1x32x32xbf16>
    %200 = vector.shape_cast %199 : vector<1x32x32xbf16> to vector<32x32xbf16>
    %cst_86 = arith.constant dense<0.000000e+00> : vector<2x32xf32>
    %201 = tpu.matmul %198, %200, %cst_86 {dimension_numbers = #tpu.dot_dimension_numbers<[1], [0], [0], [1], [0, 0, 1, 1], [], []>} : vector<2x32xbf16>, vector<32x32xbf16>, vector<2x32xf32> -> vector<2x32xf32>
    %c1_87 = arith.constant 1 : index
    %c0_88 = arith.constant 0 : index
    %c0_89 = arith.constant 0 : index
    %202 = vector.load %arg6[%c1_87, %c0_88, %c0_89] : memref<2x1x32xf32, #tpu.memory_space<vmem>>, vector<1x1x32xf32>
    %203 = vector.shape_cast %202 : vector<1x1x32xf32> to vector<1x32xf32>
    %204 = vector.broadcast %203 : vector<1x32xf32> to vector<2x32xf32>
    %205 = arith.addf %201, %204 : vector<2x32xf32>
    %206 = arith.truncf %175 : vector<2x8x32xf32> to vector<2x8x32xbf16>
    %207 = vector.shape_cast %206 : vector<2x8x32xbf16> to vector<16x32xbf16>
    %c1_90 = arith.constant 1 : index
    %c0_91 = arith.constant 0 : index
    %c0_92 = arith.constant 0 : index
    %208 = vector.load %arg7[%c1_90, %c0_91, %c0_92] : memref<2x32x32xbf16, #tpu.memory_space<vmem>>, vector<1x32x32xbf16>
    %209 = vector.shape_cast %208 : vector<1x32x32xbf16> to vector<32x32xbf16>
    %cst_93 = arith.constant dense<0.000000e+00> : vector<16x32xf32>
    %210 = tpu.matmul %207, %209, %cst_93 {dimension_numbers = #tpu.dot_dimension_numbers<[1], [0], [0], [1], [0, 0, 1, 1], [], []>} : vector<16x32xbf16>, vector<32x32xbf16>, vector<16x32xf32> -> vector<16x32xf32>
    %211 = vector.shape_cast %210 : vector<16x32xf32> to vector<2x8x32xf32>
    %c1_94 = arith.constant 1 : index
    %c0_95 = arith.constant 0 : index
    %c0_96 = arith.constant 0 : index
    %212 = vector.load %arg8[%c1_94, %c0_95, %c0_96] : memref<2x1x32xf32, #tpu.memory_space<vmem>>, vector<1x1x32xf32>
    %213 = vector.shape_cast %212 : vector<1x1x32xf32> to vector<1x32xf32>
    %214 = vector.shape_cast %213 : vector<1x32xf32> to vector<1x1x32xf32>
    %215 = vector.broadcast %214 : vector<1x1x32xf32> to vector<2x8x32xf32>
    %216 = arith.addf %211, %215 : vector<2x8x32xf32>
    %217 = vector.shape_cast %205 : vector<2x32xf32> to vector<2x1x32xf32>
    %218 = vector.broadcast %217 : vector<2x1x32xf32> to vector<2x8x32xf32>
    %219 = arith.mulf %216, %218 : vector<2x8x32xf32>
    %220 = arith.truncf %219 : vector<2x8x32xf32> to vector<2x8x32xbf16>
    %221 = vector.shape_cast %220 : vector<2x8x32xbf16> to vector<16x32xbf16>
    %c1_97 = arith.constant 1 : index
    %c0_98 = arith.constant 0 : index
    %c0_99 = arith.constant 0 : index
    %222 = vector.load %arg9[%c1_97, %c0_98, %c0_99] : memref<2x32x32xbf16, #tpu.memory_space<vmem>>, vector<1x32x32xbf16>
    %223 = vector.shape_cast %222 : vector<1x32x32xbf16> to vector<32x32xbf16>
    %cst_100 = arith.constant dense<0.000000e+00> : vector<16x32xf32>
    %224 = tpu.matmul %221, %223, %cst_100 {dimension_numbers = #tpu.dot_dimension_numbers<[1], [0], [0], [1], [0, 0, 1, 1], [], []>} : vector<16x32xbf16>, vector<32x32xbf16>, vector<16x32xf32> -> vector<16x32xf32>
    %225 = vector.shape_cast %224 : vector<16x32xf32> to vector<2x8x32xf32>
    %226 = arith.addf %145, %225 : vector<2x8x32xf32>
    %c1_101 = arith.constant 1 : index
    %c0_102 = arith.constant 0 : index
    %c0_103 = arith.constant 0 : index
    %227 = vector.load %arg10[%c1_101, %c0_102, %c0_103] : memref<2x1x32xf32, #tpu.memory_space<vmem>>, vector<1x1x32xf32>
    %228 = vector.shape_cast %227 : vector<1x1x32xf32> to vector<1x32xf32>
    %229 = vector.shape_cast %228 : vector<1x32xf32> to vector<1x1x32xf32>
    %230 = vector.broadcast %229 : vector<1x1x32xf32> to vector<2x8x32xf32>
    %231 = arith.addf %226, %230 : vector<2x8x32xf32>
    %c1_104 = arith.constant 1 : index
    %c0_105 = arith.constant 0 : index
    %c0_106 = arith.constant 0 : index
    %232 = vector.load %arg11[%c1_104, %c0_105, %c0_106] : memref<2x1x32xf32, #tpu.memory_space<vmem>>, vector<1x1x32xf32>
    %233 = vector.shape_cast %232 : vector<1x1x32xf32> to vector<1x32xf32>
    %c1_107 = arith.constant 1 : index
    %c0_108 = arith.constant 0 : index
    %c0_109 = arith.constant 0 : index
    %234 = vector.load %arg12[%c1_107, %c0_108, %c0_109] : memref<2x1x32xf32, #tpu.memory_space<vmem>>, vector<1x1x32xf32>
    %235 = vector.shape_cast %234 : vector<1x1x32xf32> to vector<1x32xf32>
    %cst_110 = arith.constant dense<0.000000e+00> : vector<2x8xf32>
    %236 = vector.multi_reduction <add>, %231, %cst_110 [2] : vector<2x8x32xf32> to vector<2x8xf32>
    %237 = vector.shape_cast %236 : vector<2x8xf32> to vector<2x8x1xf32>
    %cst_111 = arith.constant 3.200000e+01 : f32
    %238 = vector.broadcast %cst_111 : f32 to vector<2x8x1xf32>
    %239 = arith.divf %237, %238 : vector<2x8x1xf32>
    %240 = vector.broadcast %239 : vector<2x8x1xf32> to vector<2x8x32xf32>
    %241 = arith.subf %231, %240 : vector<2x8x32xf32>
    %242 = vector.broadcast %239 : vector<2x8x1xf32> to vector<2x8x32xf32>
    %243 = arith.subf %231, %242 : vector<2x8x32xf32>
    %244 = arith.mulf %241, %243 : vector<2x8x32xf32>
    %cst_112 = arith.constant dense<0.000000e+00> : vector<2x8xf32>
    %245 = vector.multi_reduction <add>, %244, %cst_112 [2] : vector<2x8x32xf32> to vector<2x8xf32>
    %246 = vector.shape_cast %245 : vector<2x8xf32> to vector<2x8x1xf32>
    %cst_113 = arith.constant 3.200000e+01 : f32
    %247 = vector.broadcast %cst_113 : f32 to vector<2x8x1xf32>
    %248 = arith.divf %246, %247 : vector<2x8x1xf32>
    %249 = vector.broadcast %239 : vector<2x8x1xf32> to vector<2x8x32xf32>
    %250 = arith.subf %231, %249 : vector<2x8x32xf32>
    %cst_114 = arith.constant 9.99999974E-6 : f32
    %251 = vector.broadcast %cst_114 : f32 to vector<2x8x1xf32>
    %252 = arith.addf %248, %251 : vector<2x8x1xf32>
    %253 = math.rsqrt %252 : vector<2x8x1xf32>
    %254 = vector.broadcast %253 : vector<2x8x1xf32> to vector<2x8x32xf32>
    %255 = arith.mulf %250, %254 : vector<2x8x32xf32>
    %256 = vector.shape_cast %233 : vector<1x32xf32> to vector<1x1x32xf32>
    %257 = vector.broadcast %256 : vector<1x1x32xf32> to vector<2x8x32xf32>
    %258 = arith.mulf %255, %257 : vector<2x8x32xf32>
    %259 = vector.shape_cast %235 : vector<1x32xf32> to vector<1x1x32xf32>
    %260 = vector.broadcast %259 : vector<1x1x32xf32> to vector<2x8x32xf32>
    %261 = arith.addf %258, %260 : vector<2x8x32xf32>
    %262 = arith.truncf %261 : vector<2x8x32xf32> to vector<2x8x32xbf16>
    %263 = vector.shape_cast %262 : vector<2x8x32xbf16> to vector<16x32xbf16>
    %c1_115 = arith.constant 1 : index
    %c0_116 = arith.constant 0 : index
    %c0_117 = arith.constant 0 : index
    %264 = vector.load %arg13[%c1_115, %c0_116, %c0_117] : memref<2x32x64xbf16, #tpu.memory_space<vmem>>, vector<1x32x64xbf16>
    %265 = vector.shape_cast %264 : vector<1x32x64xbf16> to vector<32x64xbf16>
    %cst_118 = arith.constant dense<0.000000e+00> : vector<16x64xf32>
    %266 = tpu.matmul %263, %265, %cst_118 {dimension_numbers = #tpu.dot_dimension_numbers<[1], [0], [0], [1], [0, 0, 1, 1], [], []>} : vector<16x32xbf16>, vector<32x64xbf16>, vector<16x64xf32> -> vector<16x64xf32>
    %267 = vector.shape_cast %266 : vector<16x64xf32> to vector<2x8x64xf32>
    %c1_119 = arith.constant 1 : index
    %c0_120 = arith.constant 0 : index
    %c0_121 = arith.constant 0 : index
    %268 = vector.load %arg14[%c1_119, %c0_120, %c0_121] : memref<2x1x64xf32, #tpu.memory_space<vmem>>, vector<1x1x64xf32>
    %269 = vector.shape_cast %268 : vector<1x1x64xf32> to vector<1x64xf32>
    %270 = vector.shape_cast %269 : vector<1x64xf32> to vector<1x1x64xf32>
    %271 = vector.broadcast %270 : vector<1x1x64xf32> to vector<2x8x64xf32>
    %272 = arith.addf %267, %271 : vector<2x8x64xf32>
    %273 = arith.negf %272 : vector<2x8x64xf32>
    %274 = math.exp %273 : vector<2x8x64xf32>
    %cst_122 = arith.constant 1.000000e+00 : f32
    %275 = vector.broadcast %cst_122 : f32 to vector<2x8x64xf32>
    %276 = arith.addf %275, %274 : vector<2x8x64xf32>
    %277 = arith.divf %275, %276 : vector<2x8x64xf32>
    %278 = arith.mulf %272, %277 : vector<2x8x64xf32>
    %279 = arith.truncf %278 : vector<2x8x64xf32> to vector<2x8x64xbf16>
    %280 = vector.shape_cast %279 : vector<2x8x64xbf16> to vector<16x64xbf16>
    %c1_123 = arith.constant 1 : index
    %c0_124 = arith.constant 0 : index
    %c0_125 = arith.constant 0 : index
    %281 = vector.load %arg15[%c1_123, %c0_124, %c0_125] : memref<2x64x32xbf16, #tpu.memory_space<vmem>>, vector<1x64x32xbf16>
    %282 = vector.shape_cast %281 : vector<1x64x32xbf16> to vector<64x32xbf16>
    %cst_126 = arith.constant dense<0.000000e+00> : vector<16x32xf32>
    %283 = tpu.matmul %280, %282, %cst_126 {dimension_numbers = #tpu.dot_dimension_numbers<[1], [0], [0], [1], [0, 0, 1, 1], [], []>} : vector<16x64xbf16>, vector<64x32xbf16>, vector<16x32xf32> -> vector<16x32xf32>
    %284 = vector.shape_cast %283 : vector<16x32xf32> to vector<2x8x32xf32>
    %285 = arith.addf %231, %284 : vector<2x8x32xf32>
    %c1_127 = arith.constant 1 : index
    %c0_128 = arith.constant 0 : index
    %c0_129 = arith.constant 0 : index
    %286 = vector.load %arg16[%c1_127, %c0_128, %c0_129] : memref<2x1x32xf32, #tpu.memory_space<vmem>>, vector<1x1x32xf32>
    %287 = vector.shape_cast %286 : vector<1x1x32xf32> to vector<1x32xf32>
    %288 = vector.shape_cast %287 : vector<1x32xf32> to vector<1x1x32xf32>
    %289 = vector.broadcast %288 : vector<1x1x32xf32> to vector<2x8x32xf32>
    %290 = arith.addf %285, %289 : vector<2x8x32xf32>
    %c0_130 = arith.constant 0 : index
    %c0_131 = arith.constant 0 : index
    %c0_132 = arith.constant 0 : index
    %291 = vector.load %arg17[%c0_130, %c0_131, %c0_132] : memref<2x8x32xf32, #tpu.memory_space<vmem>>, vector<2x8x32xf32>
    tpu.vector_store %arg17[%c0_130, %c0_131, %c0_132], %290 {strides = array<i32>} : memref<2x8x32xf32, #tpu.memory_space<vmem>>, vector<2x8x32xf32>,
    return
  }
  func.func @transform_0(%arg0: i32) -> (i32, i32, i32) {
    %c0_i32 = arith.constant 0 : i32
    %c0_i32_0 = arith.constant 0 : i32
    %c0_i32_1 = arith.constant 0 : i32
    return %arg0, %c0_i32, %c0_i32_0 : i32, i32, i32
  }
  func.func @transform_1(%arg0: i32) -> (i32, i32, i32) {
    %c0_i32 = arith.constant 0 : i32
    %c0_i32_0 = arith.constant 0 : i32
    %c0_i32_1 = arith.constant 0 : i32
    %c0_i32_2 = arith.constant 0 : i32
    return %c0_i32, %c0_i32_0, %c0_i32_1 : i32, i32, i32
  }
  func.func @transform_2(%arg0: i32) -> (i32, i32, i32) {
    %c0_i32 = arith.constant 0 : i32
    %c0_i32_0 = arith.constant 0 : i32
    %c0_i32_1 = arith.constant 0 : i32
    %c0_i32_2 = arith.constant 0 : i32
    return %c0_i32, %c0_i32_0, %c0_i32_1 : i32, i32, i32
  }
  func.func @transform_3(%arg0: i32) -> (i32, i32, i32) {
    %c0_i32 = arith.constant 0 : i32
    %c0_i32_0 = arith.constant 0 : i32
    %c0_i32_1 = arith.constant 0 : i32
    %c0_i32_2 = arith.constant 0 : i32
    return %c0_i32, %c0_i32_0, %c0_i32_1 : i32, i32, i32
  }
  func.func @transform_4(%arg0: i32) -> (i32, i32, i32) {
    %c0_i32 = arith.constant 0 : i32
    %c0_i32_0 = arith.constant 0 : i32
    %c0_i32_1 = arith.constant 0 : i32
    %c0_i32_2 = arith.constant 0 : i32
    return %c0_i32, %c0_i32_0, %c0_i32_1 : i32, i32, i32
  }
  func.func @transform_5(%arg0: i32) -> (i32, i32, i32) {
    %c0_i32 = arith.constant 0 : i32
    %c0_i32_0 = arith.constant 0 : i32
    %c0_i32_1 = arith.constant 0 : i32
    %c0_i32_2 = arith.constant 0 : i32
    return %c0_i32, %c0_i32_0, %c0_i32_1 : i32, i32, i32
  }
  func.func @transform_6(%arg0: i32) -> (i32, i32, i32) {
    %c0_i32 = arith.constant 0 : i32
    %c0_i32_0 = arith.constant 0 : i32
    %c0_i32_1 = arith.constant 0 : i32
    %c0_i32_2 = arith.constant 0 : i32
    return %c0_i32, %c0_i32_0, %c0_i32_1 : i32, i32, i32
  }
  func.func @transform_7(%arg0: i32) -> (i32, i32, i32) {
    %c0_i32 = arith.constant 0 : i32
    %c0_i32_0 = arith.constant 0 : i32
    %c0_i32_1 = arith.constant 0 : i32
    %c0_i32_2 = arith.constant 0 : i32
    return %c0_i32, %c0_i32_0, %c0_i32_1 : i32, i32, i32
  }
  func.func @transform_8(%arg0: i32) -> (i32, i32, i32) {
    %c0_i32 = arith.constant 0 : i32
    %c0_i32_0 = arith.constant 0 : i32
    %c0_i32_1 = arith.constant 0 : i32
    %c0_i32_2 = arith.constant 0 : i32
    return %c0_i32, %c0_i32_0, %c0_i32_1 : i32, i32, i32
  }
  func.func @transform_9(%arg0: i32) -> (i32, i32, i32) {
    %c0_i32 = arith.constant 0 : i32
    %c0_i32_0 = arith.constant 0 : i32
    %c0_i32_1 = arith.constant 0 : i32
    %c0_i32_2 = arith.constant 0 : i32
    return %c0_i32, %c0_i32_0, %c0_i32_1 : i32, i32, i32
  }
  func.func @transform_10(%arg0: i32) -> (i32, i32, i32) {
    %c0_i32 = arith.constant 0 : i32
    %c0_i32_0 = arith.constant 0 : i32
    %c0_i32_1 = arith.constant 0 : i32
    %c0_i32_2 = arith.constant 0 : i32
    return %c0_i32, %c0_i32_0, %c0_i32_1 : i32, i32, i32
  }
  func.func @transform_11(%arg0: i32) -> (i32, i32, i32) {
    %c0_i32 = arith.constant 0 : i32
    %c0_i32_0 = arith.constant 0 : i32
    %c0_i32_1 = arith.constant 0 : i32
    %c0_i32_2 = arith.constant 0 : i32
    return %c0_i32, %c0_i32_0, %c0_i32_1 : i32, i32, i32
  }
  func.func @transform_12(%arg0: i32) -> (i32, i32, i32) {
    %c0_i32 = arith.constant 0 : i32
    %c0_i32_0 = arith.constant 0 : i32
    %c0_i32_1 = arith.constant 0 : i32
    %c0_i32_2 = arith.constant 0 : i32
    return %c0_i32, %c0_i32_0, %c0_i32_1 : i32, i32, i32
  }
  func.func @transform_13(%arg0: i32) -> (i32, i32, i32) {
    %c0_i32 = arith.constant 0 : i32
    %c0_i32_0 = arith.constant 0 : i32
    %c0_i32_1 = arith.constant 0 : i32
    %c0_i32_2 = arith.constant 0 : i32
    return %c0_i32, %c0_i32_0, %c0_i32_1 : i32, i32, i32
  }
  func.func @transform_14(%arg0: i32) -> (i32, i32, i32) {
    %c0_i32 = arith.constant 0 : i32
    %c0_i32_0 = arith.constant 0 : i32
    %c0_i32_1 = arith.constant 0 : i32
    %c0_i32_2 = arith.constant 0 : i32
    return %c0_i32, %c0_i32_0, %c0_i32_1 : i32, i32, i32
  }
  func.func @transform_15(%arg0: i32) -> (i32, i32, i32) {
    %c0_i32 = arith.constant 0 : i32
    %c0_i32_0 = arith.constant 0 : i32
    %c0_i32_1 = arith.constant 0 : i32
    %c0_i32_2 = arith.constant 0 : i32
    return %c0_i32, %c0_i32_0, %c0_i32_1 : i32, i32, i32
  }
  func.func @transform_16(%arg0: i32) -> (i32, i32, i32) {
    %c0_i32 = arith.constant 0 : i32
    %c0_i32_0 = arith.constant 0 : i32
    %c0_i32_1 = arith.constant 0 : i32
    return %arg0, %c0_i32, %c0_i32_0 : i32, i32, i32
  }
}

</mosaic_0001>

<bundles_post_ra>
// kernel: tpu_custom_call.1
= control target key start
LH: loop header
LB: loop body
LE: loop exit
PB: predicated region body
PF: predicated region fallthrough
CT: control target
= control target key end

     0   :  { %s1862_s0 = inlined_call_operand.hbm [shape: f32[2,8,32], index: 0, kind: input, shape index: {}, may-alias: {0,16}]   ;;  %s1863_s1 = inlined_call_operand.hbm [shape: f32[2,1,32], index: 1, kind: input, shape index: {}]   ;;  %s1864_s2 = inlined_call_operand.hbm [shape: f32[2,1,32], index: 2, kind: input, shape index: {}]   ;;  %s1865_s3 = inlined_call_operand.hbm [shape: f32[2,1,32], index: 3, kind: input, shape index: {}]   ;;  %s1866_s4 = inlined_call_operand.vmem [shape: bf16[2,32,32], index: 4, kind: input, shape index: {}]   ;;  %s1867_s5 = inlined_call_operand.vmem [shape: f32[2,1,32], index: 5, kind: input, shape index: {}]   ;;  %s1868_s6 = inlined_call_operand.vmem [shape: bf16[2,32,32], index: 6, kind: input, shape index: {}]   ;;  %s1869_s7 = inlined_call_operand.vmem [shape: f32[2,1,32], index: 7, kind: input, shape index: {}]   ;;  %s1870_s8 = inlined_call_operand.vmem [shape: bf16[2,32,32], index: 8, kind: input, shape index: {}]   ;;  %s1871_s9 = inlined_call_operand.vmem [shape: f32[2,1,32], index: 9, kind: input, shape index: {}]   ;;  %s1872_s10 = inlined_call_operand.vmem [shape: f32[2,1,32], index: 10, kind: input, shape index: {}]   ;;  %s1873_s11 = inlined_call_operand.hbm [shape: f32[2,1,32], index: 11, kind: input, shape index: {}]   ;;  %s1874_s12 = inlined_call_operand.vmem [shape: bf16[2,32,64], index: 12, kind: input, shape index: {}]   ;;  %s1875_s13 = inlined_call_operand.vmem [shape: f32[2,1,64], index: 13, kind: input, shape index: {}]   ;;  %s1876_s14 = inlined_call_operand.vmem [shape: bf16[2,64,32], index: 14, kind: input, shape index: {}]   ;;  %s1877_s15 = inlined_call_operand.vmem [shape: f32[2,1,32], index: 15, kind: input, shape index: {}]   ;;  %s1878_s16 = inlined_call_operand.hbm [shape: f32[2,8,32], index: 16, kind: output, shape index: {}, may-alias: {0,16}]  }
   0x1   :  { %1879 = sst [smem:[#allocation16_spill]] %s1862_s0 }
   0x2   :  { %21 = vsyncpa [#allocation3], 0 }
   0x3   :  { %22 = vsyncpa [#allocation6], 0 }
   0x4   :  { %23 = vsyncpa [#allocation9], 0  ;;  %s42_s23 = sshll.u32 %s1863_s1, 4  ;;  %s43_s23 = int_to_ptr.hbm [resolvable:$true] %s42_s23 }
   0x5   :  { %24 = vsyncpa [#allocation4], 0  ;;  %s1520_s24 = smov [#allocation5]   ;;  %s68_s28 = sshll.u32 %s1865_s3, 4  ;;  %s69_s28 = int_to_ptr.hbm [resolvable:$true] %s68_s28 }
   0x6   :  { %s44_s25 = sshll.u32 %s1520_s24, 4  ;;  %s1521_s29 = smov 16   ;;  %s45_s25 = int_to_ptr.vmem [resolvable:$true] %s44_s25 }
   0x7   :  { %s1522_s30 = smov 1   ;;  %s1523_s0 = smov [#allocation8]  }
   0x8   :  { %50 = dma.hbm_to_vmem [thread:$0]  %s43_s23, 32, %s45_s25, [#allocation6], %s1521_s29, %s1521_s29, %s1522_s30  }
   0x9   :  { %s70_s17 = sshll.u32 %s1523_s0, 4  ;;  %s1880_s19 = sld [smem:[#allocation16_spill]]  ;;  %s71_s17 = int_to_ptr.vmem [resolvable:$true] %s70_s17 }
   0xa   :  { %76 = dma.hbm_to_vmem [thread:$0]  %s69_s28, 32, %s71_s17, [#allocation9], %s1521_s29, %s1521_s29, %s1522_s30  }
   0xb   :  { %s1524_s3 = smov [#allocation2]   ;;  %s55_s23 = sshll.u32 %s1864_s2, 4  ;;  %s56_s23 = int_to_ptr.hbm [resolvable:$true] %s55_s23 }
   0xc   :  { %s31_s21 = sshll.u32 %s1524_s3, 4  ;;  %s1525_s25 = smov 128   ;;  %s32_s21 = int_to_ptr.vmem [resolvable:$true] %s31_s21 }
   0xd   :  { %s1526_s26 = smov 8   ;;  %s1527_s27 = smov [#allocation7]  }
   0xe   :  { %s57_s0 = sshll.u32 %s1527_s27, 4  ;;  %s95_s28 = sshll.u32 %s1873_s11, 4  ;;  %s58_s0 = int_to_ptr.vmem [resolvable:$true] %s57_s0  ;;  %s96_s28 = int_to_ptr.hbm [resolvable:$true] %s95_s28 }
   0xf   :  { %s29_s20 = sshll.u32 %s1880_s19, 4  ;;  %s1528_s2 = smov [#allocation10]   ;;  %s30_s20 = int_to_ptr.hbm [resolvable:$true] %s29_s20 }
  0x10   :  { %37 = dma.hbm_to_vmem [thread:$0]  %s30_s20, 256, %s32_s21, [#allocation3], %s1525_s25, %s1525_s25, %s1526_s26  }
  0x11   :  { %63 = dma.hbm_to_vmem [thread:$0]  %s56_s23, 32, %s58_s0, [#allocation6], %s1521_s29, %s1521_s29, %s1522_s30  }
  0x12   :  { %s97_s17 = sshll.u32 %s1528_s2, 4  ;;  %s98_s17 = int_to_ptr.vmem [resolvable:$true] %s97_s17 }
  0x13   :  { %103 = dma.hbm_to_vmem [thread:$0]  %s96_s28, 32, %s98_s17, [#allocation9], %s1521_s29, %s1521_s29, %s1522_s30  }
  0x14   :  { %1512 = dma.done.wait [#allocation3], 256  }
  0x15   :  { %1513 = vsyncadd [#allocation3], 4294967040 }
  0x16   :  { %1514 = dma.done.wait [#allocation6], 64  }
  0x17   :  { %1515 = vsyncadd [#allocation6], 4294967232 }
  0x18   :  { %1516 = dma.done.wait [#allocation9], 64  }
  0x19   :  { %1517 = vsyncadd [#allocation9], 4294967232  ;;  %vm137_vm0 = vcmask 261120   ;;  %v1646_v0 = vld [vmem:[#allocation2] sm:$0xff]  ;;  %v1648_v1 = vld [vmem:[#allocation2 + $0x8] sm:$0xff]  ;;  %v1529_v4 = vmov 32.0  }
  0x1a   :  { %v138_v2 = vsel %vm137_vm0, %v1646_v0, 0.0  ;;  %v141_v3 = vsel %vm137_vm0, %v1648_v1, 0.0  ;;  %1318 = vrcp.f32 %v1529_v4  ;;  %v1266_v22 = vld [vmem:[%s1868_s6 + $0x8] sm:$0xff]  ;;  %v1265_v24 = vld [vmem:[%s1868_s6] sm:$0xff]  ;;  %v1298_v37 = vld [vmem:[#allocation5] ss:$0 sm:$0xff] }
  0x1b   :  { %139 = vadd.xlane.f32.xlu0 %v138_v2  ;;  %338 = vmatpush.bf16.msra.mxu1 %v1266_v22  ;;  %v1299_v41 = vld [vmem:[#allocation7] ss:$0 sm:$0xff]  ;;  %v1300_v44 = vld [vmem:[#allocation8] ss:$0 sm:$0xff]  ;;  %vm275_vm8 = vcmask 1041409   ;;  %s1530_s23 = smov [#allocation11]  }
  0x1c   :  { %s1106_s27 = sshll.u32 %s1530_s23, 4  ;;  %s1108_s1 = sshll.u32 %s1878_s16, 4  ;;  %s1107_s27 = int_to_ptr.vmem [resolvable:$true] %s1106_s27  ;;  %s1109_s1 = int_to_ptr.hbm [resolvable:$true] %s1108_s1 }
  0x1f   :  { %339 = vmatpush.bf16.msra.mxu1 %v1265_v24 }
  0x20   :  { %v1319_v5 = vpop.eup %1318 }
  0x21   :  { %v145_v6 = vmul.f32 32.0, %v1319_v5  ;;  %vm149_vm1 = vweird.f32 %v1319_v5 }
  0x23   :  { %142 = vadd.xlane.f32.xlu0 %v141_v3  ;;  %v146_v7 = vsub.f32 1.0, %v145_v6 }
  0x25   :  { %v147_v8 = vmul.f32 %v1319_v5, %v146_v7 }
  0x27   :  { %v148_v9 = vadd.f32 %v1319_v5, %v147_v8 }
  0x29   :  { %v1654_v10 = vsel %vm149_vm1, %v1319_v5, %v148_v9  ;;  %v1264_v9 = vld [vmem:[%s1866_s4 + $0x8] sm:$0xff] }
  0x2a   :  { %299 = vmatpush.bf16.msra.mxu0 %v1264_v9 }
  0x8e   :  { %v140_v11 = vpop.xlane.xlu0 %139 }
  0x8f   :  { %v151_v12 = vmul.f32 %v1654_v10, %v140_v11 }
  0x91   :  { %v153_v13 = vsub.f32 %v1646_v0, %v151_v12 }
  0x93   :  { %v155_v14 = vmul.f32 %v153_v13, %v153_v13 }
  0x95   :  { %v157_v15 = vsel %vm137_vm0, %v155_v14, 0.0 }
  0x96   :  { %158 = vadd.xlane.f32.xlu1 %v157_v15  ;;  %v143_v16 = vpop.xlane.xlu0 %142 }
  0x97   :  { %v152_v17 = vmul.f32 %v1654_v10, %v143_v16 }
  0x99   :  { %v154_v18 = vsub.f32 %v1648_v1, %v152_v17 }
  0x9b   :  { %v156_v19 = vmul.f32 %v154_v18, %v154_v18 }
  0x9d   :  { %v160_v20 = vsel %vm137_vm0, %v156_v19, 0.0 }
  0x9e   :  { %161 = vadd.xlane.f32.xlu1 %v160_v20 }
 0x109   :  { %v159_v21 = vpop.xlane.xlu1 %158 }
 0x10a   :  { %v163_v23 = vmul.f32 %v159_v21, %v1654_v10 }
 0x10c   :  { %v165_v25 = vadd.f32 1e-05, %v163_v23 }
 0x10e   :  { %1320 = vrsqrt.f32 %v165_v25  ;;  %vm173_vm3 = vweird.f32 %v165_v25 }
 0x111   :  { %v162_v26 = vpop.xlane.xlu1 %161 }
 0x112   :  { %v164_v27 = vmul.f32 %v162_v26, %v1654_v10 }
 0x114   :  { %v1321_v28 = vpop.eup %1320  ;;  %v166_v29 = vadd.f32 1e-05, %v164_v27 }
 0x115   :  { %v168_v30 = vmul.f32 %v1321_v28, %v165_v25  ;;  %vm174_vm2 = vweird.f32 %v1321_v28 }
 0x116   :  { %1322 = vrsqrt.f32 %v166_v29  ;;  %vm175_vm4 = vmor %vm173_vm3, %vm174_vm2  ;;  %vm183_vm6 = vweird.f32 %v166_v29 }
 0x117   :  { %v169_v31 = vmul.f32 %v1321_v28, %v168_v30 }
 0x119   :  { %v170_v32 = vmul.f32 0.5, %v169_v31 }
 0x11b   :  { %v171_v33 = vsub.f32 1.5, %v170_v32 }
 0x11c   :  { %v1323_v34 = vpop.eup %1322 }
 0x11d   :  { %v172_v35 = vmul.f32 %v1321_v28, %v171_v33  ;;  %v178_v36 = vmul.f32 %v1323_v34, %v166_v29  ;;  %vm184_vm5 = vweird.f32 %v1323_v34 }
 0x11e   :  { %vm185_vm7 = vmor %vm183_vm6, %vm184_vm5 }
 0x11f   :  { %v176_v38 = vsel %vm175_vm4, %v1321_v28, %v172_v35  ;;  %v179_v39 = vmul.f32 %v1323_v34, %v178_v36 }
 0x120   :  { %v187_v40 = vmul.f32 %v176_v38, %v153_v13  ;;  %v1263_v13 = vld [vmem:[%s1866_s4] sm:$0xff] }
 0x121   :  { %v180_v42 = vmul.f32 0.5, %v179_v39  ;;  %300 = vmatpush.bf16.msra.mxu0 %v1263_v13 }
 0x122   :  { %v192_v43 = vmul.f32 %v1298_v37, %v187_v40 }
 0x123   :  { %v181_v45 = vsub.f32 1.5, %v180_v42 }
 0x124   :  { %v197_v46 = vadd.f32 %v1299_v41, %v192_v43 }
 0x125   :  { %v182_v47 = vmul.f32 %v1323_v34, %v181_v45 }
 0x126   :  { %v203_v48 = vmul.f32 %v1300_v44, %v197_v46  ;;  %v306_v54 = vpack.c.bf16 %v197_v46, %v197_v46 }
 0x127   :  { %v186_v49 = vsel %vm185_vm7, %v1323_v34, %v182_v47 }
 0x128   :  { %v188_v50 = vmul.f32 %v186_v49, %v154_v18  ;;  %v205_v51 = vsel %vm137_vm0, %v203_v48, 0.0  ;;  %v314_v58 = vunpack.c.l.b16 %v306_v54 }
 0x129   :  { %206 = vadd.xlane.f32.xlu2 %v205_v51 }
 0x12a   :  { %v193_v52 = vmul.f32 %v1298_v37, %v188_v50 }
 0x12c   :  { %v198_v53 = vadd.f32 %v1299_v41, %v193_v52 }
 0x12e   :  { %v204_v55 = vmul.f32 %v1300_v44, %v198_v53  ;;  %v307_v56 = vpack.c.bf16 %v198_v53, %v198_v53 }
 0x130   :  { %v208_v57 = vsel %vm137_vm0, %v204_v55, 0.0  ;;  %v315_v59 = vunpack.c.l.b16 %v307_v56 }
 0x131   :  { %209 = vadd.xlane.f32.xlu2 %v208_v57 }
 0x132   :  { %v316_v60 = vpack.c.b16 %v315_v59, %v314_v58 }
 0x134   :  { %1140 = vmatmul.msk.bf16.vlgmr.msra.gmra.mxu1 %vm137_vm0, %v316_v60 }
 0x19c   :  { %v207_v61 = vpop.xlane.xlu2 %206 }
 0x19d   :  { %v211_v62 = vrot.slane %v207_v61, 4 }
 0x19f   :  { %v212_v63 = vmax.f32 %v207_v61, %v211_v62 }
 0x1a1   :  { %v213_v2 = vrot.slane %v212_v63, 2 }
 0x1a3   :  { %v214_v3 = vmax.f32 %v212_v63, %v213_v2  ;;  %v1302_v63 = vld [vmem:[%s1867_s5] ss:$0 sm:$0xff] }
 0x1a4   :  { %v210_v4 = vpop.xlane.xlu2 %209  ;;  %v1301_v2 = vld [vmem:[%s1869_s7] ss:$0 sm:$0xff] }
 0x1a5   :  { %v215_v5 = vrot.slane %v214_v3, 1  ;;  %v217_v6 = vrot.slane %v210_v4, 4 }
 0x1a7   :  { %v216_v7 = vmax.f32 %v214_v3, %v215_v5  ;;  %v218_v8 = vmax.f32 %v210_v4, %v217_v6 }
 0x1a9   :  { %v223_v11 = vsub.f32 %v207_v61, %v216_v7  ;;  %v219_v12 = vrot.slane %v218_v8, 2  ;;  %v1267_v61 = vld [vmem:[%s1870_s8] sm:$0xff] }
 0x1ab   :  { %v225_v14 = vmul.f32 1.442695, %v223_v11  ;;  %v220_v15 = vmax.f32 %v218_v8, %v219_v12 }
 0x1ad   :  { %1324 = vpow2.f32 %v225_v14  ;;  %v221_v16 = vrot.slane %v220_v15, 1 }
 0x1af   :  { %v222_v17 = vmax.f32 %v220_v15, %v221_v16 }
 0x1b1   :  { %v224_v18 = vsub.f32 %v210_v4, %v222_v17  ;;  %v341_v62 = vpop.f32.mrf.mxu1 }
 0x1b2   :  { %v350_v6 = vadd.f32 %v1301_v2, %v341_v62 }
 0x1b3   :  { %v1325_v19 = vpop.eup %1324  ;;  %v227_v20 = vmul.f32 1.442695, %v224_v18 }
 0x1b4   :  { %v229_v21 = vrot.slane %v1325_v19, 4 }
 0x1b5   :  { %1326 = vpow2.f32 %v227_v20  ;;  %v1303_v20 = vld [vmem:[%s1871_s9] ss:$0 sm:$0xff] }
 0x1b6   :  { %v230_v22 = vadd.f32 %v1325_v19, %v229_v21 }
 0x1b8   :  { %v231_v23 = vrot.slane %v230_v22, 2 }
 0x1b9   :  { %v343_v5 = vpop.f32.mrf.mxu1 }
 0x1ba   :  { %v232_v24 = vadd.f32 %v231_v23, %v230_v22  ;;  %v351_v9 = vadd.f32 %v1301_v2, %v343_v5 }
 0x1bb   :  { %v1327_v25 = vpop.eup %1326 }
 0x1bc   :  { %v233_v26 = vrot.slane %v232_v24, 1  ;;  %v235_v27 = vrot.slane %v1327_v25, 4 }
 0x1be   :  { %v234_v28 = vadd.f32 %v233_v26, %v232_v24  ;;  %v236_v29 = vadd.f32 %v1327_v25, %v235_v27 }
 0x1c0   :  { %1328 = vrcp.f32 %v234_v28  ;;  %v237_v30 = vrot.slane %v236_v29, 2 }
 0x1c2   :  { %v238_v31 = vadd.f32 %v237_v30, %v236_v29 }
 0x1c4   :  { %v239_v32 = vrot.slane %v238_v31, 1 }
 0x1c6   :  { %v1329_v33 = vpop.eup %1328  ;;  %v240_v34 = vadd.f32 %v239_v32, %v238_v31 }
 0x1c7   :  { %v243_v35 = vmul.f32 %v1329_v33, %v1325_v19 }
 0x1c8   :  { %1330 = vrcp.f32 %v240_v34 }
 0x1c9   :  { %v245_v36 = vmul.f32 %v243_v35, %v197_v46 }
 0x1cb   :  { %v247_v37 = vsel %vm137_vm0, %v245_v36, 0.0 }
 0x1cc   :  { %v248_v38 = vrot.slane %v247_v37, 4 }
 0x1ce   :  { %v1331_v39 = vpop.eup %1330  ;;  %v249_v40 = vadd.f32 %v248_v38, %v247_v37  ;;  %v1270_v37 = vld [vmem:[%s1874_s12 + $0x8] sm:$0xff] }
 0x1cf   :  { %v244_v41 = vmul.f32 %v1331_v39, %v1327_v25  ;;  %496 = vmatpush.bf16.msra.mxu3 %v1270_v37 }
 0x1d0   :  { %v250_v42 = vrot.slane %v249_v40, 2 }
 0x1d1   :  { %v246_v43 = vmul.f32 %v244_v41, %v198_v53  ;;  %v1268_v53 = vld [vmem:[%s1870_s8 + $0x8] sm:$0xff] }
 0x1d2   :  { %v251_v44 = vadd.f32 %v250_v42, %v249_v40  ;;  %392 = vmatpush.bf16.msra.mxu2 %v1268_v53  ;;  %v1269_v40 = vld [vmem:[%s1874_s12] sm:$0xff]  ;;  %v1305_v53 = vld [vmem:[#allocation10] ss:$0 sm:$0xff] }
 0x1d3   :  { %v254_v45 = vsel %vm137_vm0, %v246_v43, 0.0  ;;  %497 = vmatpush.bf16.msra.mxu3 %v1269_v40 }
 0x1d4   :  { %v255_v47 = vrot.slane %v254_v45, 4  ;;  %v252_v48 = vrot.slane %v251_v44, 1 }
 0x1d6   :  { %v256_v49 = vadd.f32 %v255_v47, %v254_v45  ;;  %v253_v51 = vadd.f32 %v252_v48, %v251_v44  ;;  %393 = vmatpush.bf16.msra.mxu2 %v1267_v61 }
 0x1d8   :  { %v257_v50 = vrot.slane %v256_v49, 2  ;;  %v261_v46 = vpack.c.bf16 %v253_v51, %v253_v51 }
 0x1da   :  { %v258_v52 = vadd.f32 %v257_v50, %v256_v49  ;;  %v273_v57 = vunpack.c.l.b16 %v261_v46 }
 0x1dc   :  { %v259_v54 = vrot.slane %v258_v52, 1 }
 0x1de   :  { %v260_v55 = vadd.f32 %v259_v54, %v258_v52 }
 0x1e0   :  { %v262_v56 = vpack.c.bf16 %v260_v55, %v260_v55 }
 0x1e2   :  { %v274_v58 = vunpack.c.l.b16 %v262_v56 }
 0x1e4   :  { %v276_v59 = vsel %vm275_vm8, %v274_v58, %v273_v57  ;;  %v1304_v57 = vld [vmem:[%s1872_s10] ss:$0 sm:$0xff] }
 0x1e5   :  { %v277_v60 = vpack.c.b16 %v276_v59, %v276_v59 }
 0x1e7   :  { %1131 = vmatmul.msk.bf16.vlgmr.msra.gmra.mxu0 %vm137_vm0, %v277_v60 }
 0x264   :  { %v302_v3 = vpop.f32.mrf.mxu0 }
 0x265   :  { %v303_v4 = vadd.f32 %v1302_v63, %v302_v3 }
 0x267   :  { %v353_v7 = vrot.slane %v303_v4, 1  ;;  %v354_v8 = vperm.slane %v303_v4, 0 }
 0x269   :  { %v355_v11 = vperm.slane %v353_v7, 0  ;;  %v358_v12 = vmul.f32 %v354_v8, %v350_v6 }
 0x26b   :  { %v359_v13 = vmul.f32 %v355_v11, %v351_v9  ;;  %v360_v14 = vpack.c.bf16 %v358_v12, %v358_v12  ;;  %v1306_v11 = vld [vmem:[%s1875_s13] ss:$0 sm:$0xff]  ;;  %v1274_v12 = vld [vmem:[%s1876_s14 + $0x18] sm:$0xff] }
 0x26c   :  { %v304_v15 = vpop.f32.mrf.mxu0  ;;  %597 = vmatpush.bf16.msrb.mxu0 %v1274_v12  ;;  %v1277_v12 = vld [vmem:[%s1868_s6 + $0x10] sm:$0xff] }
 0x26d   :  { %v361_v16 = vpack.c.bf16 %v359_v13, %v359_v13  ;;  %v368_v17 = vunpack.c.l.b16 %v360_v14  ;;  %v1273_v15 = vld [vmem:[%s1876_s14 + $0x10] sm:$0xff] }
 0x26f   :  { %v369_v18 = vunpack.c.l.b16 %v361_v16 }
 0x270   :  { %598 = vmatpush.bf16.msrb.mxu0 %v1273_v15 }
 0x271   :  { %v370_v19 = vpack.c.b16 %v369_v18, %v368_v17  ;;  %v1272_v17 = vld [vmem:[%s1876_s14 + $0x8] sm:$0xff] }
 0x273   :  { %1149 = vmatmul.msk.bf16.vlgmr.msra.gmra.mxu2 %vm137_vm0, %v370_v19 }
 0x274   :  { %599 = vmatpush.bf16.msrb.mxu0 %v1272_v17 }
 0x2f6   :  { %v395_v21 = vpop.f32.mrf.mxu2 }
 0x2f7   :  { %v400_v22 = vadd.f32 %v395_v21, %v1646_v0 }
 0x2f9   :  { %v1700_v23 = vadd.f32 %v1303_v20, %v400_v22 }
 0x2fb   :  { %v410_v24 = vsel %vm137_vm0, %v1700_v23, 0.0 }
 0x2fc   :  { %411 = vadd.xlane.f32.xlu0 %v410_v24 }
 0x2fe   :  { %v397_v25 = vpop.f32.mrf.mxu2 }
 0x2ff   :  { %v401_v26 = vadd.f32 %v397_v25, %v1648_v1 }
 0x301   :  { %v1705_v27 = vadd.f32 %v1303_v20, %v401_v26  ;;  %v1271_v20 = vld [vmem:[%s1876_s14] sm:$0xff] }
 0x302   :  { %600 = vmatpush.bf16.msrb.mxu0 %v1271_v20 }
 0x303   :  { %v413_v28 = vsel %vm137_vm0, %v1705_v27, 0.0 }
 0x304   :  { %414 = vadd.xlane.f32.xlu1 %v413_v28 }
 0x36f   :  { %v412_v29 = vpop.xlane.xlu0 %411 }
 0x370   :  { %v416_v30 = vmul.f32 %v412_v29, %v1654_v10 }
 0x372   :  { %v418_v0 = vsub.f32 %v1700_v23, %v416_v30 }
 0x374   :  { %v420_v31 = vmul.f32 %v418_v0, %v418_v0 }
 0x376   :  { %v422_v32 = vsel %vm137_vm0, %v420_v31, 0.0 }
 0x377   :  { %423 = vadd.xlane.f32.xlu2 %v422_v32  ;;  %v415_v33 = vpop.xlane.xlu1 %414 }
 0x378   :  { %v417_v34 = vmul.f32 %v415_v33, %v1654_v10 }
 0x37a   :  { %v419_v1 = vsub.f32 %v1705_v27, %v417_v34 }
 0x37c   :  { %v421_v35 = vmul.f32 %v419_v1, %v419_v1 }
 0x37e   :  { %v425_v36 = vsel %vm137_vm0, %v421_v35, 0.0 }
 0x37f   :  { %426 = vadd.xlane.f32.xlu0 %v425_v36 }
 0x3ea   :  { %v424_v38 = vpop.xlane.xlu2 %423 }
 0x3eb   :  { %v428_v39 = vmul.f32 %v424_v38, %v1654_v10 }
 0x3ed   :  { %v430_v41 = vadd.f32 1e-05, %v428_v39 }
 0x3ef   :  { %1332 = vrsqrt.f32 %v430_v41  ;;  %vm438_vm10 = vweird.f32 %v430_v41 }
 0x3f2   :  { %v427_v42 = vpop.xlane.xlu0 %426 }
 0x3f3   :  { %v429_v43 = vmul.f32 %v427_v42, %v1654_v10 }
 0x3f5   :  { %v1333_v44 = vpop.eup %1332  ;;  %v431_v45 = vadd.f32 1e-05, %v429_v43 }
 0x3f6   :  { %v433_v47 = vmul.f32 %v1333_v44, %v430_v41  ;;  %vm439_vm9 = vweird.f32 %v1333_v44 }
 0x3f7   :  { %1334 = vrsqrt.f32 %v431_v45  ;;  %vm440_vm11 = vmor %vm438_vm10, %vm439_vm9  ;;  %vm448_vm13 = vweird.f32 %v431_v45  ;;  %vm589_vm9 = vcmask 523264  }
 0x3f8   :  { %v434_v48 = vmul.f32 %v1333_v44, %v433_v47 }
 0x3fa   :  { %v435_v49 = vmul.f32 0.5, %v434_v48 }
 0x3fc   :  { %v436_v50 = vsub.f32 1.5, %v435_v49 }
 0x3fd   :  { %v1335_v51 = vpop.eup %1334 }
 0x3fe   :  { %v437_v52 = vmul.f32 %v1333_v44, %v436_v50  ;;  %v443_v54 = vmul.f32 %v1335_v51, %v431_v45  ;;  %vm449_vm12 = vweird.f32 %v1335_v51 }
 0x3ff   :  { %vm450_vm14 = vmor %vm448_vm13, %vm449_vm12 }
 0x400   :  { %v441_v55 = vsel %vm440_vm11, %v1333_v44, %v437_v52  ;;  %v444_v46 = vmul.f32 %v1335_v51, %v443_v54 }
 0x401   :  { %v452_v56 = vmul.f32 %v441_v55, %v418_v0  ;;  %v1307_v55 = vld [vmem:[%s1877_s15] ss:$0 sm:$0xff] }
 0x402   :  { %v445_v58 = vmul.f32 0.5, %v444_v46 }
 0x403   :  { %v457_v60 = vmul.f32 %v1304_v57, %v452_v56 }
 0x404   :  { %v446_v59 = vsub.f32 1.5, %v445_v58 }
 0x405   :  { %v462_v2 = vadd.f32 %v1305_v53, %v457_v60 }
 0x406   :  { %v447_v61 = vmul.f32 %v1335_v51, %v446_v59 }
 0x407   :  { %v464_v5 = vpack.c.bf16 %v462_v2, %v462_v2 }
 0x408   :  { %v451_v62 = vsel %vm450_vm14, %v1335_v51, %v447_v61 }
 0x409   :  { %v453_v63 = vmul.f32 %v451_v62, %v419_v1  ;;  %v472_v7 = vunpack.c.l.b16 %v464_v5 }
 0x40b   :  { %v458_v3 = vmul.f32 %v1304_v57, %v453_v63 }
 0x40d   :  { %v463_v4 = vadd.f32 %v1305_v53, %v458_v3 }
 0x40f   :  { %v465_v6 = vpack.c.bf16 %v463_v4, %v463_v4 }
 0x411   :  { %v473_v8 = vunpack.c.l.b16 %v465_v6 }
 0x413   :  { %v474_v9 = vpack.c.b16 %v473_v8, %v472_v7 }
 0x415   :  { %1158 = vmatmul.msk.bf16.vlgmr.msra.gmra.mxu3 %vm137_vm0, %v474_v9  ;;  %v1278_v9 = vld [vmem:[%s1868_s6 + $0x18] sm:$0xff] }
 0x416   :  { %815 = vmatpush.bf16.msrb.mxu2 %v1278_v9 }
 0x41a   :  { %816 = vmatpush.bf16.msrb.mxu2 %v1277_v12 }
 0x498   :  { %v499_v13 = vpop.f32.mrf.mxu3 }
 0x499   :  { %v508_v14 = vadd.f32 %v1306_v11, %v499_v13 }
 0x49b   :  { %v1159_v16 = vmul.f32 -1.442695, %v508_v14 }
 0x49d   :  { %1336 = vpow2.f32 %v1159_v16 }
 0x4a0   :  { %v501_v18 = vpop.f32.mrf.mxu3 }
 0x4a1   :  { %v509_v19 = vadd.f32 %v1306_v11, %v501_v18 }
 0x4a3   :  { %v1337_v21 = vpop.eup %1336  ;;  %v1160_v22 = vmul.f32 -1.442695, %v509_v19 }
 0x4a4   :  { %v516_v24 = vadd.f32 1.0, %v1337_v21 }
 0x4a5   :  { %1338 = vpow2.f32 %v1160_v22 }
 0x4a6   :  { %1340 = vrcp.f32 %v516_v24  ;;  %v529_v31 = vand.u32 2147483648, %v516_v24  ;;  %vm523_vm1 = vweird.f32 %v516_v24  ;;  %v527_v33 = vand.u32 2147483647, %v516_v24 }
 0x4a8   :  { %v530_v36 = vor.u32 1.1754944e-38, %v529_v31  ;;  %vm528_vm3 = vcmp.eq.f32.partialorder %v527_v33, 8.507059e+37  ;;  %v1310_v33 = vld [vmem:[#allocation8 + $0x1] ss:$0 sm:$0xff] }
 0x4ab   :  { %v1339_v25 = vpop.eup %1338 }
 0x4ac   :  { %v1341_v26 = vpop.eup %1340  ;;  %v517_v28 = vadd.f32 1.0, %v1339_v25 }
 0x4ad   :  { %v519_v29 = vmul.f32 %v1341_v26, %v516_v24  ;;  %vm524_vm15 = vweird.f32 %v1341_v26 }
 0x4ae   :  { %1342 = vrcp.f32 %v517_v28  ;;  %vm525_vm2 = vmor %vm523_vm1, %vm524_vm15  ;;  %v544_v39 = vand.u32 2147483648, %v517_v28  ;;  %v542_v41 = vand.u32 2147483647, %v517_v28  ;;  %vm538_vm5 = vweird.f32 %v517_v28 }
 0x4af   :  { %v520_v30 = vsub.f32 1.0, %v519_v29 }
 0x4b0   :  { %v545_v44 = vor.u32 1.1754944e-38, %v544_v39  ;;  %vm543_vm7 = vcmp.eq.f32.partialorder %v542_v41, 8.507059e+37 }
 0x4b1   :  { %v521_v0 = vmul.f32 %v1341_v26, %v520_v30 }
 0x4b3   :  { %v522_v32 = vadd.f32 %v1341_v26, %v521_v0  ;;  %v1309_v0 = vld [vmem:[#allocation7 + $0x1] ss:$0 sm:$0xff] }
 0x4b4   :  { %v1343_v34 = vpop.eup %1342 }
 0x4b5   :  { %v526_v1 = vsel %vm525_vm2, %v1341_v26, %v522_v32  ;;  %v534_v35 = vmul.f32 %v1343_v34, %v517_v28  ;;  %vm539_vm4 = vweird.f32 %v1343_v34  ;;  %v1308_v26 = vld [vmem:[#allocation5 + $0x1] ss:$0 sm:$0xff] }
 0x4b6   :  { %v531_v38 = vsel %vm528_vm3, %v530_v36, %v526_v1  ;;  %vm540_vm6 = vmor %vm538_vm5, %vm539_vm4 }
 0x4b7   :  { %v535_v37 = vsub.f32 1.0, %v534_v35  ;;  %v548_v42 = vmul.f32 %v531_v38, %v508_v14 }
 0x4b9   :  { %v536_v40 = vmul.f32 %v1343_v34, %v535_v37  ;;  %v550_v48 = vpack.c.bf16 %v548_v42, %v548_v42 }
 0x4bb   :  { %v537_v43 = vadd.f32 %v1343_v34, %v536_v40  ;;  %v562_v51 = vunpack.c.l.b16 %v550_v48 }
 0x4bd   :  { %v541_v45 = vsel %vm540_vm6, %v1343_v34, %v537_v43 }
 0x4be   :  { %v546_v47 = vsel %vm543_vm7, %v545_v44, %v541_v45 }
 0x4bf   :  { %v549_v49 = vmul.f32 %v546_v47, %v509_v19 }
 0x4c1   :  { %v551_v50 = vpack.c.bf16 %v549_v49, %v549_v49 }
 0x4c3   :  { %v563_v52 = vunpack.c.l.b16 %v551_v50 }
 0x4c5   :  { %v564_v54 = vpack.c.b16 %v563_v52, %v562_v51 }
 0x4c7   :  { %1177 = vmatmul.msk.bf16.vlgmr.msrb.gmra.mxu0 %vm589_vm9, %v564_v54 }
 0x544   :  { %v602_v46 = vpop.f32.mrf.mxu0 }
 0x545   :  { %v607_v56 = vadd.f32 %v602_v46, %v1700_v23 }
 0x547   :  { %v1747_v57 = vadd.f32 %v1307_v55, %v607_v56 }
 0x549   :  { %v619_v58 = vsel %vm137_vm0, %v1747_v57, 0.0 }
 0x54a   :  { %620 = vadd.xlane.f32.xlu1 %v619_v58 }
 0x54c   :  { %v604_v59 = vpop.f32.mrf.mxu0 }
 0x54d   :  { %v608_v60 = vadd.f32 %v604_v59, %v1705_v27 }
 0x54f   :  { %v1752_v53 = vadd.f32 %v1307_v55, %v608_v60 }
 0x551   :  { %v622_v61 = vsel %vm137_vm0, %v1752_v53, 0.0 }
 0x552   :  { %623 = vadd.xlane.f32.xlu2 %v622_v61 }
 0x5bd   :  { %v621_v62 = vpop.xlane.xlu1 %620 }
 0x5be   :  { %v625_v63 = vmul.f32 %v621_v62, %v1654_v10 }
 0x5c0   :  { %v627_v23 = vsub.f32 %v1747_v57, %v625_v63 }
 0x5c2   :  { %v629_v2 = vmul.f32 %v627_v23, %v627_v23 }
 0x5c4   :  { %v631_v3 = vsel %vm137_vm0, %v629_v2, 0.0 }
 0x5c5   :  { %632 = vadd.xlane.f32.xlu0 %v631_v3  ;;  %v624_v4 = vpop.xlane.xlu2 %623 }
 0x5c6   :  { %v626_v5 = vmul.f32 %v624_v4, %v1654_v10  ;;  %v1276_v4 = vld [vmem:[%s1866_s4 + $0x18] sm:$0xff] }
 0x5c7   :  { %775 = vmatpush.bf16.msrb.mxu1 %v1276_v4 }
 0x5c8   :  { %v628_v27 = vsub.f32 %v1752_v53, %v626_v5 }
 0x5ca   :  { %v630_v6 = vmul.f32 %v628_v27, %v628_v27 }
 0x5cc   :  { %v634_v7 = vsel %vm137_vm0, %v630_v6, 0.0 }
 0x5cd   :  { %635 = vadd.xlane.f32.xlu1 %v634_v7 }
 0x638   :  { %v633_v8 = vpop.xlane.xlu0 %632 }
 0x639   :  { %v637_v11 = vmul.f32 %v633_v8, %v1654_v10 }
 0x63b   :  { %v639_v13 = vadd.f32 1e-05, %v637_v11 }
 0x63d   :  { %1344 = vrsqrt.f32 %v639_v13  ;;  %vm647_vm11 = vweird.f32 %v639_v13 }
 0x640   :  { %v636_v14 = vpop.xlane.xlu1 %635 }
 0x641   :  { %v638_v15 = vmul.f32 %v636_v14, %v1654_v10 }
 0x643   :  { %v1345_v16 = vpop.eup %1344  ;;  %v640_v17 = vadd.f32 1e-05, %v638_v15 }
 0x644   :  { %v642_v18 = vmul.f32 %v1345_v16, %v639_v13  ;;  %vm648_vm10 = vweird.f32 %v1345_v16 }
 0x645   :  { %1346 = vrsqrt.f32 %v640_v17  ;;  %vm649_vm12 = vmor %vm647_vm11, %vm648_vm10  ;;  %vm657_vm14 = vweird.f32 %v640_v17 }
 0x646   :  { %v643_v19 = vmul.f32 %v1345_v16, %v642_v18 }
 0x648   :  { %v644_v20 = vmul.f32 0.5, %v643_v19 }
 0x64a   :  { %v645_v21 = vsub.f32 1.5, %v644_v20 }
 0x64b   :  { %v1347_v22 = vpop.eup %1346 }
 0x64c   :  { %v646_v24 = vmul.f32 %v1345_v16, %v645_v21  ;;  %v652_v25 = vmul.f32 %v1347_v22, %v640_v17  ;;  %vm658_vm13 = vweird.f32 %v1347_v22 }
 0x64d   :  { %vm659_vm15 = vmor %vm657_vm14, %vm658_vm13 }
 0x64e   :  { %v650_v28 = vsel %vm649_vm12, %v1345_v16, %v646_v24  ;;  %v653_v29 = vmul.f32 %v1347_v22, %v652_v25  ;;  %v1280_v25 = vld [vmem:[%s1870_s8 + $0x18] sm:$0xff] }
 0x64f   :  { %v661_v30 = vmul.f32 %v650_v28, %v627_v23  ;;  %871 = vmatpush.bf16.msrb.mxu3 %v1280_v25 }
 0x650   :  { %v654_v31 = vmul.f32 0.5, %v653_v29 }
 0x651   :  { %v666_v32 = vmul.f32 %v1308_v26, %v661_v30 }
 0x652   :  { %v655_v34 = vsub.f32 1.5, %v654_v31 }
 0x653   :  { %v1770_v1 = vadd.f32 %v1309_v0, %v666_v32 }
 0x654   :  { %v656_v35 = vmul.f32 %v1347_v22, %v655_v34 }
 0x655   :  { %v678_v36 = vmul.f32 %v1310_v33, %v1770_v1  ;;  %v782_v42 = vpack.c.bf16 %v1770_v1, %v1770_v1 }
 0x656   :  { %v660_v37 = vsel %vm659_vm15, %v1347_v22, %v656_v35 }
 0x657   :  { %v662_v38 = vmul.f32 %v660_v37, %v628_v27  ;;  %v680_v39 = vsel %vm137_vm0, %v678_v36, 0.0  ;;  %v791_v47 = vunpack.c.l.b16 %v782_v42  ;;  %v1275_v27 = vld [vmem:[%s1866_s4 + $0x10] sm:$0xff] }
 0x658   :  { %681 = vadd.xlane.f32.xlu2 %v680_v39  ;;  %776 = vmatpush.bf16.msrb.mxu1 %v1275_v27 }
 0x659   :  { %v667_v40 = vmul.f32 %v1308_v26, %v662_v38 }
 0x65b   :  { %v672_v41 = vadd.f32 %v1309_v0, %v667_v40 }
 0x65d   :  { %v679_v43 = vmul.f32 %v1310_v33, %v672_v41  ;;  %v783_v44 = vpack.c.bf16 %v672_v41, %v672_v41 }
 0x65f   :  { %v683_v45 = vsel %vm137_vm0, %v679_v43, 0.0  ;;  %v792_v48 = vunpack.c.l.b16 %v783_v44 }
 0x660   :  { %684 = vadd.xlane.f32.xlu0 %v683_v45 }
 0x661   :  { %v793_v49 = vpack.c.b16 %v792_v48, %v791_v47 }
 0x663   :  { %1204 = vmatmul.msk.bf16.vlgmr.msrb.gmra.mxu2 %vm137_vm0, %v793_v49 }
 0x6cb   :  { %v682_v50 = vpop.xlane.xlu2 %681 }
 0x6cc   :  { %v686_v51 = vrot.slane %v682_v50, 4 }
 0x6ce   :  { %v687_v52 = vmax.f32 %v682_v50, %v686_v51 }
 0x6d0   :  { %v688_v54 = vrot.slane %v687_v52, 2 }
 0x6d2   :  { %v689_v55 = vmax.f32 %v687_v52, %v688_v54  ;;  %v1312_v52 = vld [vmem:[%s1867_s5 + $0x1] ss:$0 sm:$0xff] }
 0x6d3   :  { %v685_v46 = vpop.xlane.xlu0 %684  ;;  %v1311_v54 = vld [vmem:[%s1869_s7 + $0x1] ss:$0 sm:$0xff] }
 0x6d4   :  { %v690_v56 = vrot.slane %v689_v55, 1  ;;  %v692_v58 = vrot.slane %v685_v46, 4 }
 0x6d6   :  { %v691_v59 = vmax.f32 %v689_v55, %v690_v56  ;;  %v693_v60 = vmax.f32 %v685_v46, %v692_v58 }
 0x6d8   :  { %v698_v61 = vsub.f32 %v682_v50, %v691_v59  ;;  %v694_v62 = vrot.slane %v693_v60, 2 }
 0x6da   :  { %v700_v63 = vmul.f32 1.442695, %v698_v61  ;;  %v695_v23 = vmax.f32 %v693_v60, %v694_v62 }
 0x6dc   :  { %1348 = vpow2.f32 %v700_v63  ;;  %v696_v2 = vrot.slane %v695_v23, 1 }
 0x6de   :  { %v697_v3 = vmax.f32 %v695_v23, %v696_v2 }
 0x6e0   :  { %v699_v5 = vsub.f32 %v685_v46, %v697_v3 }
 0x6e2   :  { %v1349_v6 = vpop.eup %1348  ;;  %v702_v7 = vmul.f32 1.442695, %v699_v5 }
 0x6e3   :  { %v704_v8 = vrot.slane %v1349_v6, 4 }
 0x6e4   :  { %1350 = vpow2.f32 %v702_v7  ;;  %v1313_v7 = vld [vmem:[%s1871_s9 + $0x1] ss:$0 sm:$0xff] }
 0x6e5   :  { %v705_v9 = vadd.f32 %v1349_v6, %v704_v8 }
 0x6e6   :  { %v818_v51 = vpop.f32.mrf.mxu2 }
 0x6e7   :  { %v706_v11 = vrot.slane %v705_v9, 2  ;;  %v828_v58 = vadd.f32 %v1311_v54, %v818_v51 }
 0x6e9   :  { %v707_v12 = vadd.f32 %v706_v11, %v705_v9 }
 0x6ea   :  { %v1351_v13 = vpop.eup %1350 }
 0x6eb   :  { %v708_v14 = vrot.slane %v707_v12, 1  ;;  %v710_v15 = vrot.slane %v1351_v13, 4 }
 0x6ed   :  { %v709_v16 = vadd.f32 %v708_v14, %v707_v12  ;;  %v711_v17 = vadd.f32 %v1351_v13, %v710_v15 }
 0x6ee   :  { %v820_v56 = vpop.f32.mrf.mxu2 }
 0x6ef   :  { %1352 = vrcp.f32 %v709_v16  ;;  %v712_v18 = vrot.slane %v711_v17, 2  ;;  %v829_v61 = vadd.f32 %v1311_v54, %v820_v56 }
 0x6f1   :  { %v713_v19 = vadd.f32 %v712_v18, %v711_v17 }
 0x6f3   :  { %v714_v20 = vrot.slane %v713_v19, 1 }
 0x6f5   :  { %v1353_v21 = vpop.eup %1352  ;;  %v715_v22 = vadd.f32 %v714_v20, %v713_v19 }
 0x6f6   :  { %v718_v24 = vmul.f32 %v1353_v21, %v1349_v6 }
 0x6f7   :  { %1354 = vrcp.f32 %v715_v22 }
 0x6f8   :  { %v720_v26 = vmul.f32 %v718_v24, %v1770_v1 }
 0x6fa   :  { %v722_v28 = vsel %vm137_vm0, %v720_v26, 0.0 }
 0x6fb   :  { %v723_v29 = vrot.slane %v722_v28, 4 }
 0x6fd   :  { %v1355_v30 = vpop.eup %1354  ;;  %v724_v0 = vadd.f32 %v723_v29, %v722_v28  ;;  %v1282_v29 = vld [vmem:[%s1874_s12 + $0x18] sm:$0xff] }
 0x6fe   :  { %v719_v31 = vmul.f32 %v1355_v30, %v1351_v13  ;;  %979 = vmatpush.bf16.msra.mxu0 %v1282_v29 }
 0x6ff   :  { %v725_v32 = vrot.slane %v724_v0, 2 }
 0x700   :  { %v721_v33 = vmul.f32 %v719_v31, %v672_v41  ;;  %v1279_v41 = vld [vmem:[%s1870_s8 + $0x10] sm:$0xff] }
 0x701   :  { %v726_v34 = vadd.f32 %v725_v32, %v724_v0  ;;  %872 = vmatpush.bf16.msrb.mxu3 %v1279_v41  ;;  %v1281_v0 = vld [vmem:[%s1874_s12 + $0x10] sm:$0xff] }
 0x702   :  { %v729_v35 = vsel %vm137_vm0, %v721_v33, 0.0  ;;  %980 = vmatpush.bf16.msra.mxu0 %v1281_v0 }
 0x703   :  { %v730_v36 = vrot.slane %v729_v35, 4  ;;  %v727_v37 = vrot.slane %v726_v34, 1 }
 0x705   :  { %v731_v38 = vadd.f32 %v730_v36, %v729_v35  ;;  %v728_v40 = vadd.f32 %v727_v37, %v726_v34 }
 0x707   :  { %v732_v39 = vrot.slane %v731_v38, 2  ;;  %v736_v44 = vpack.c.bf16 %v728_v40, %v728_v40 }
 0x709   :  { %v733_v42 = vadd.f32 %v732_v39, %v731_v38  ;;  %v750_v47 = vunpack.c.l.b16 %v736_v44  ;;  %v1314_v44 = vld [vmem:[%s1872_s10 + $0x1] ss:$0 sm:$0xff] }
 0x70b   :  { %v734_v43 = vrot.slane %v733_v42, 1 }
 0x70d   :  { %v735_v1 = vadd.f32 %v734_v43, %v733_v42 }
 0x70f   :  { %v737_v45 = vpack.c.bf16 %v735_v1, %v735_v1 }
 0x711   :  { %v751_v48 = vunpack.c.l.b16 %v737_v45 }
 0x713   :  { %v752_v49 = vsel %vm275_vm8, %v751_v48, %v750_v47  ;;  %v1315_v48 = vld [vmem:[#allocation10 + $0x1] ss:$0 sm:$0xff] }
 0x714   :  { %v753_v50 = vpack.c.b16 %v752_v49, %v752_v49 }
 0x716   :  { %1191 = vmatmul.msk.bf16.vlgmr.msrb.gmra.mxu1 %vm137_vm0, %v753_v50 }
 0x793   :  { %v778_v55 = vpop.f32.mrf.mxu1 }
 0x794   :  { %v779_v46 = vadd.f32 %v1312_v52, %v778_v55 }
 0x796   :  { %v831_v59 = vrot.slane %v779_v46, 1  ;;  %v832_v60 = vperm.slane %v779_v46, 0 }
 0x798   :  { %v833_v62 = vperm.slane %v831_v59, 0  ;;  %v836_v63 = vmul.f32 %v832_v60, %v828_v58 }
 0x79a   :  { %v837_v23 = vmul.f32 %v833_v62, %v829_v61  ;;  %v838_v2 = vpack.c.bf16 %v836_v63, %v836_v63  ;;  %v1316_v61 = vld [vmem:[%s1875_s13 + $0x1] ss:$0 sm:$0xff]  ;;  %v1286_v62 = vld [vmem:[%s1876_s14 + $0x38] sm:$0xff] }
 0x79b   :  { %v780_v3 = vpop.f32.mrf.mxu1  ;;  %1081 = vmatpush.bf16.msra.mxu1 %v1286_v62 }
 0x79c   :  { %v839_v4 = vpack.c.bf16 %v837_v23, %v837_v23  ;;  %v847_v5 = vunpack.c.l.b16 %v838_v2  ;;  %v1285_v2 = vld [vmem:[%s1876_s14 + $0x30] sm:$0xff] }
 0x79e   :  { %v848_v27 = vunpack.c.l.b16 %v839_v4  ;;  %v1284_v4 = vld [vmem:[%s1876_s14 + $0x28] sm:$0xff] }
 0x79f   :  { %1082 = vmatpush.bf16.msra.mxu1 %v1285_v2 }
 0x7a0   :  { %v849_v6 = vpack.c.b16 %v848_v27, %v847_v5 }
 0x7a2   :  { %1218 = vmatmul.msk.bf16.vlgmr.msrb.gmra.mxu3 %vm137_vm0, %v849_v6  ;;  %v1283_v6 = vld [vmem:[%s1876_s14 + $0x20] sm:$0xff] }
 0x7a3   :  { %1083 = vmatpush.bf16.msra.mxu1 %v1284_v4 }
 0x7a7   :  { %1084 = vmatpush.bf16.msra.mxu1 %v1283_v6 }
 0x825   :  { %v874_v8 = vpop.f32.mrf.mxu3 }
 0x826   :  { %v879_v9 = vadd.f32 %v874_v8, %v1747_v57 }
 0x828   :  { %v1806_v11 = vadd.f32 %v1313_v7, %v879_v9 }
 0x82a   :  { %v892_v12 = vsel %vm137_vm0, %v1806_v11, 0.0 }
 0x82b   :  { %893 = vadd.xlane.f32.xlu1 %v892_v12 }
 0x82d   :  { %v876_v13 = vpop.f32.mrf.mxu3 }
 0x82e   :  { %v880_v14 = vadd.f32 %v876_v13, %v1752_v53 }
 0x830   :  { %v1811_v15 = vadd.f32 %v1313_v7, %v880_v14 }
 0x832   :  { %v895_v16 = vsel %vm137_vm0, %v1811_v15, 0.0 }
 0x833   :  { %896 = vadd.xlane.f32.xlu2 %v895_v16 }
 0x89e   :  { %v894_v17 = vpop.xlane.xlu1 %893 }
 0x89f   :  { %v898_v18 = vmul.f32 %v894_v17, %v1654_v10 }
 0x8a1   :  { %v900_v57 = vsub.f32 %v1806_v11, %v898_v18 }
 0x8a3   :  { %v902_v19 = vmul.f32 %v900_v57, %v900_v57 }
 0x8a5   :  { %v904_v20 = vsel %vm137_vm0, %v902_v19, 0.0 }
 0x8a6   :  { %905 = vadd.xlane.f32.xlu0 %v904_v20  ;;  %v897_v21 = vpop.xlane.xlu2 %896 }
 0x8a7   :  { %v899_v22 = vmul.f32 %v897_v21, %v1654_v10 }
 0x8a9   :  { %v901_v53 = vsub.f32 %v1811_v15, %v899_v22 }
 0x8ab   :  { %v903_v24 = vmul.f32 %v901_v53, %v901_v53 }
 0x8ad   :  { %v907_v25 = vsel %vm137_vm0, %v903_v24, 0.0 }
 0x8ae   :  { %908 = vadd.xlane.f32.xlu1 %v907_v25 }
 0x919   :  { %v906_v26 = vpop.xlane.xlu0 %905 }
 0x91a   :  { %v910_v28 = vmul.f32 %v906_v26, %v1654_v10 }
 0x91c   :  { %v912_v30 = vadd.f32 1e-05, %v910_v28 }
 0x91e   :  { %1356 = vrsqrt.f32 %v912_v30  ;;  %vm920_vm1 = vweird.f32 %v912_v30 }
 0x921   :  { %v909_v31 = vpop.xlane.xlu1 %908 }
 0x922   :  { %v911_v32 = vmul.f32 %v909_v31, %v1654_v10 }
 0x924   :  { %v1357_v33 = vpop.eup %1356  ;;  %v913_v34 = vadd.f32 1e-05, %v911_v32 }
 0x925   :  { %v915_v35 = vmul.f32 %v1357_v33, %v912_v30  ;;  %vm921_vm8 = vweird.f32 %v1357_v33 }
 0x926   :  { %1358 = vrsqrt.f32 %v913_v34  ;;  %vm922_vm2 = vmor %vm920_vm1, %vm921_vm8  ;;  %vm930_vm4 = vweird.f32 %v913_v34 }
 0x927   :  { %v916_v36 = vmul.f32 %v1357_v33, %v915_v35 }
 0x929   :  { %v917_v37 = vmul.f32 0.5, %v916_v36 }
 0x92b   :  { %v918_v38 = vsub.f32 1.5, %v917_v37 }
 0x92c   :  { %v1359_v39 = vpop.eup %1358 }
 0x92d   :  { %v919_v40 = vmul.f32 %v1357_v33, %v918_v38  ;;  %v925_v42 = vmul.f32 %v1359_v39, %v913_v34  ;;  %vm931_vm3 = vweird.f32 %v1359_v39 }
 0x92e   :  { %vm932_vm5 = vmor %vm930_vm4, %vm931_vm3 }
 0x92f   :  { %v923_v43 = vsel %vm922_vm2, %v1357_v33, %v919_v40  ;;  %v926_v1 = vmul.f32 %v1359_v39, %v925_v42  ;;  %v1317_v42 = vld [vmem:[%s1877_s15 + $0x1] ss:$0 sm:$0xff] }
 0x930   :  { %v934_v10 = vmul.f32 %v923_v43, %v900_v57 }
 0x931   :  { %v927_v45 = vmul.f32 0.5, %v926_v1 }
 0x932   :  { %v939_v49 = vmul.f32 %v1314_v44, %v934_v10 }
 0x933   :  { %v928_v47 = vsub.f32 1.5, %v927_v45 }
 0x934   :  { %v944_v51 = vadd.f32 %v1315_v48, %v939_v49 }
 0x935   :  { %v929_v50 = vmul.f32 %v1359_v39, %v928_v47 }
 0x936   :  { %v946_v55 = vpack.c.bf16 %v944_v51, %v944_v51 }
 0x937   :  { %v933_v41 = vsel %vm932_vm5, %v1359_v39, %v929_v50 }
 0x938   :  { %v935_v52 = vmul.f32 %v933_v41, %v901_v53  ;;  %v955_v58 = vunpack.c.l.b16 %v946_v55 }
 0x93a   :  { %v940_v54 = vmul.f32 %v1314_v44, %v935_v52 }
 0x93c   :  { %v945_v46 = vadd.f32 %v1315_v48, %v940_v54 }
 0x93e   :  { %v947_v56 = vpack.c.bf16 %v945_v46, %v945_v46 }
 0x940   :  { %v956_v59 = vunpack.c.l.b16 %v947_v56 }
 0x942   :  { %v957_v60 = vpack.c.b16 %v956_v59, %v955_v58 }
 0x944   :  { %1233 = vmatmul.msk.bf16.vlgmr.msra.gmra.mxu0 %vm137_vm0, %v957_v60 }
 0x9c1   :  { %v982_v63 = vpop.f32.mrf.mxu0 }
 0x9c2   :  { %v992_v23 = vadd.f32 %v1316_v61, %v982_v63 }
 0x9c4   :  { %v1235_v3 = vmul.f32 -1.442695, %v992_v23 }
 0x9c6   :  { %1360 = vpow2.f32 %v1235_v3 }
 0x9c9   :  { %v984_v5 = vpop.f32.mrf.mxu0 }
 0x9ca   :  { %v993_v27 = vadd.f32 %v1316_v61, %v984_v5 }
 0x9cc   :  { %v1361_v7 = vpop.eup %1360  ;;  %v1236_v8 = vmul.f32 -1.442695, %v993_v27 }
 0x9cd   :  { %v1000_v9 = vadd.f32 1.0, %v1361_v7 }
 0x9ce   :  { %1362 = vpow2.f32 %v1236_v8 }
 0x9cf   :  { %1364 = vrcp.f32 %v1000_v9  ;;  %v1013_v57 = vand.u32 2147483648, %v1000_v9  ;;  %vm1007_vm7 = vweird.f32 %v1000_v9  ;;  %v1011_v20 = vand.u32 2147483647, %v1000_v9 }
 0x9d1   :  { %v1014_v24 = vor.u32 1.1754944e-38, %v1013_v57  ;;  %vm1012_vm11 = vcmp.eq.f32.partialorder %v1011_v20, 8.507059e+37 }
 0x9d4   :  { %v1363_v12 = vpop.eup %1362 }
 0x9d5   :  { %v1365_v13 = vpop.eup %1364  ;;  %v1001_v14 = vadd.f32 1.0, %v1363_v12 }
 0x9d6   :  { %v1003_v16 = vmul.f32 %v1365_v13, %v1000_v9  ;;  %vm1008_vm6 = vweird.f32 %v1365_v13 }
 0x9d7   :  { %1366 = vrcp.f32 %v1001_v14  ;;  %vm1009_vm10 = vmor %vm1007_vm7, %vm1008_vm6  ;;  %v1028_v28 = vand.u32 2147483648, %v1001_v14  ;;  %v1026_v30 = vand.u32 2147483647, %v1001_v14  ;;  %vm1022_vm13 = vweird.f32 %v1001_v14 }
 0x9d8   :  { %v1004_v17 = vsub.f32 1.0, %v1003_v16 }
 0x9d9   :  { %v1029_v32 = vor.u32 1.1754944e-38, %v1028_v28  ;;  %vm1027_vm15 = vcmp.eq.f32.partialorder %v1026_v30, 8.507059e+37 }
 0x9da   :  { %v1005_v18 = vmul.f32 %v1365_v13, %v1004_v17 }
 0x9dc   :  { %v1006_v19 = vadd.f32 %v1365_v13, %v1005_v18 }
 0x9dd   :  { %v1367_v21 = vpop.eup %1366 }
 0x9de   :  { %v1010_v22 = vsel %vm1009_vm10, %v1365_v13, %v1006_v19  ;;  %v1018_v53 = vmul.f32 %v1367_v21, %v1001_v14  ;;  %vm1023_vm12 = vweird.f32 %v1367_v21 }
 0x9df   :  { %v1015_v26 = vsel %vm1012_vm11, %v1014_v24, %v1010_v22  ;;  %vm1024_vm14 = vmor %vm1022_vm13, %vm1023_vm12 }
 0x9e0   :  { %v1019_v25 = vsub.f32 1.0, %v1018_v53  ;;  %v1032_v0 = vmul.f32 %v1015_v26, %v992_v23 }
 0x9e2   :  { %v1020_v29 = vmul.f32 %v1367_v21, %v1019_v25  ;;  %v1034_v35 = vpack.c.bf16 %v1032_v0, %v1032_v0 }
 0x9e4   :  { %v1021_v31 = vadd.f32 %v1367_v21, %v1020_v29  ;;  %v1047_v38 = vunpack.c.l.b16 %v1034_v35 }
 0x9e6   :  { %v1025_v33 = vsel %vm1024_vm14, %v1367_v21, %v1021_v31 }
 0x9e7   :  { %v1030_v34 = vsel %vm1027_vm15, %v1029_v32, %v1025_v33 }
 0x9e8   :  { %v1033_v36 = vmul.f32 %v1030_v34, %v993_v27 }
 0x9ea   :  { %v1035_v37 = vpack.c.bf16 %v1033_v36, %v1033_v36 }
 0x9ec   :  { %v1048_v39 = vunpack.c.l.b16 %v1035_v37 }
 0x9ee   :  { %v1049_v40 = vpack.c.b16 %v1048_v39, %v1047_v38 }
 0x9f0   :  { %1261 = vmatmul.msk.bf16.vlgmr.msra.gmra.mxu1 %vm589_vm9, %v1049_v40 }
 0xa6d   :  { %v1086_v43 = vpop.f32.mrf.mxu1 }
 0xa6e   :  { %v1091_v1 = vadd.f32 %v1086_v43, %v1806_v11 }
 0xa70   :  { %v1098_v44 = vadd.f32 %v1317_v42, %v1091_v1 }
 0xa72   :  { %1100 = vst.msk [vmem:[#allocation11] sm:$0xff] %vm137_vm0, %v1098_v44 }
 0xa75   :  { %v1088_v10 = vpop.f32.mrf.mxu1 }
 0xa76   :  { %v1092_v45 = vadd.f32 %v1088_v10, %v1811_v15 }
 0xa78   :  { %v1099_v47 = vadd.f32 %v1317_v42, %v1092_v45 }
 0xa7a   :  { %1101 = vst.msk [vmem:[#allocation11 + $0x8] sm:$0xff] %vm137_vm0, %v1099_v47 }
 0xa7b   :  { %1114 = dma.vmem_to_hbm [thread:$0]  %s1107_s27, 256, %s1109_s1, [#allocation4], %s1525_s25, %s1525_s25, %s1526_s26  }
 0xa7c   :  { %1518 = dma.done.wait [#allocation4], 256  }
 0xa7d   :  { %1519 = vsyncadd [#allocation4], 4294967040 }
 0xa7e   :  { %1119 = vsyncpa [#allocation3], 1 }
 0xa7f   :  { %1120 = vsyncpa [#allocation6], 1 }
 0xa80   :  { %1121 = vsyncpa [#allocation9], 1 }
 0xa81   :  { %1122 = vsyncpa [#allocation4], 1 }

// kernel: tpu_custom_call.1
= control target key start
LH: loop header
LB: loop body
LE: loop exit
PB: predicated region body
PF: predicated region fallthrough
CT: control target
= control target key end

     0   :  { %s1862_s0 = inlined_call_operand.hbm [shape: f32[2,8,32], index: 0, kind: input, shape index: {}, may-alias: {0,16}]   ;;  %s1863_s1 = inlined_call_operand.hbm [shape: f32[2,1,32], index: 1, kind: input, shape index: {}]   ;;  %s1864_s2 = inlined_call_operand.hbm [shape: f32[2,1,32], index: 2, kind: input, shape index: {}]   ;;  %s1865_s3 = inlined_call_operand.hbm [shape: f32[2,1,32], index: 3, kind: input, shape index: {}]   ;;  %s1866_s4 = inlined_call_operand.vmem [shape: bf16[2,32,32], index: 4, kind: input, shape index: {}]   ;;  %s1867_s5 = inlined_call_operand.vmem [shape: f32[2,1,32], index: 5, kind: input, shape index: {}]   ;;  %s1868_s6 = inlined_call_operand.vmem [shape: bf16[2,32,32], index: 6, kind: input, shape index: {}]   ;;  %s1869_s7 = inlined_call_operand.vmem [shape: f32[2,1,32], index: 7, kind: input, shape index: {}]   ;;  %s1870_s8 = inlined_call_operand.vmem [shape: bf16[2,32,32], index: 8, kind: input, shape index: {}]   ;;  %s1871_s9 = inlined_call_operand.vmem [shape: f32[2,1,32], index: 9, kind: input, shape index: {}]   ;;  %s1872_s10 = inlined_call_operand.vmem [shape: f32[2,1,32], index: 10, kind: input, shape index: {}]   ;;  %s1873_s11 = inlined_call_operand.hbm [shape: f32[2,1,32], index: 11, kind: input, shape index: {}]   ;;  %s1874_s12 = inlined_call_operand.vmem [shape: bf16[2,32,64], index: 12, kind: input, shape index: {}]   ;;  %s1875_s13 = inlined_call_operand.vmem [shape: f32[2,1,64], index: 13, kind: input, shape index: {}]   ;;  %s1876_s14 = inlined_call_operand.vmem [shape: bf16[2,64,32], index: 14, kind: input, shape index: {}]   ;;  %s1877_s15 = inlined_call_operand.vmem [shape: f32[2,1,32], index: 15, kind: input, shape index: {}]   ;;  %s1878_s16 = inlined_call_operand.hbm [shape: f32[2,8,32], index: 16, kind: output, shape index: {}, may-alias: {0,16}]  }
   0x1   :  { %1879 = sst [smem:[#allocation16_spill]] %s1862_s0 }
   0x2   :  { %21 = vsyncpa [#allocation3], 0 }
   0x3   :  { %22 = vsyncpa [#allocation6], 0 }
   0x4   :  { %23 = vsyncpa [#allocation9], 0  ;;  %s42_s23 = sshll.u32 %s1863_s1, 4  ;;  %s43_s23 = int_to_ptr.hbm [resolvable:$true] %s42_s23 }
   0x5   :  { %24 = vsyncpa [#allocation4], 0  ;;  %s1520_s24 = smov [#allocation5]   ;;  %s68_s28 = sshll.u32 %s1865_s3, 4  ;;  %s69_s28 = int_to_ptr.hbm [resolvable:$true] %s68_s28 }
   0x6   :  { %s44_s25 = sshll.u32 %s1520_s24, 4  ;;  %s1521_s29 = smov 16   ;;  %s45_s25 = int_to_ptr.vmem [resolvable:$true] %s44_s25 }
   0x7   :  { %s1522_s30 = smov 1   ;;  %s1523_s0 = smov [#allocation8]  }
   0x8   :  { %50 = dma.hbm_to_vmem [thread:$0]  %s43_s23, 32, %s45_s25, [#allocation6], %s1521_s29, %s1521_s29, %s1522_s30  }
   0x9   :  { %s70_s17 = sshll.u32 %s1523_s0, 4  ;;  %s1880_s19 = sld [smem:[#allocation16_spill]]  ;;  %s71_s17 = int_to_ptr.vmem [resolvable:$true] %s70_s17 }
   0xa   :  { %76 = dma.hbm_to_vmem [thread:$0]  %s69_s28, 32, %s71_s17, [#allocation9], %s1521_s29, %s1521_s29, %s1522_s30  }
   0xb   :  { %s1524_s3 = smov [#allocation2]   ;;  %s55_s23 = sshll.u32 %s1864_s2, 4  ;;  %s56_s23 = int_to_ptr.hbm [resolvable:$true] %s55_s23 }
   0xc   :  { %s31_s21 = sshll.u32 %s1524_s3, 4  ;;  %s1525_s25 = smov 128   ;;  %s32_s21 = int_to_ptr.vmem [resolvable:$true] %s31_s21 }
   0xd   :  { %s1526_s26 = smov 8   ;;  %s1527_s27 = smov [#allocation7]  }
   0xe   :  { %s57_s0 = sshll.u32 %s1527_s27, 4  ;;  %s95_s28 = sshll.u32 %s1873_s11, 4  ;;  %s58_s0 = int_to_ptr.vmem [resolvable:$true] %s57_s0  ;;  %s96_s28 = int_to_ptr.hbm [resolvable:$true] %s95_s28 }
   0xf   :  { %s29_s20 = sshll.u32 %s1880_s19, 4  ;;  %s1528_s2 = smov [#allocation10]   ;;  %s30_s20 = int_to_ptr.hbm [resolvable:$true] %s29_s20 }
  0x10   :  { %37 = dma.hbm_to_vmem [thread:$0]  %s30_s20, 256, %s32_s21, [#allocation3], %s1525_s25, %s1525_s25, %s1526_s26  }
  0x11   :  { %63 = dma.hbm_to_vmem [thread:$0]  %s56_s23, 32, %s58_s0, [#allocation6], %s1521_s29, %s1521_s29, %s1522_s30  }
  0x12   :  { %s97_s17 = sshll.u32 %s1528_s2, 4  ;;  %s98_s17 = int_to_ptr.vmem [resolvable:$true] %s97_s17 }
  0x13   :  { %103 = dma.hbm_to_vmem [thread:$0]  %s96_s28, 32, %s98_s17, [#allocation9], %s1521_s29, %s1521_s29, %s1522_s30  }
  0x14   :  { %1512 = dma.done.wait [#allocation3], 256  }
  0x15   :  { %1513 = vsyncadd [#allocation3], 4294967040 }
  0x16   :  { %1514 = dma.done.wait [#allocation6], 64  }
  0x17   :  { %1515 = vsyncadd [#allocation6], 4294967232 }
  0x18   :  { %1516 = dma.done.wait [#allocation9], 64  }
  0x19   :  { %1517 = vsyncadd [#allocation9], 4294967232  ;;  %vm137_vm0 = vcmask 261120   ;;  %v1646_v0 = vld [vmem:[#allocation2] sm:$0xff]  ;;  %v1648_v1 = vld [vmem:[#allocation2 + $0x8] sm:$0xff]  ;;  %v1529_v4 = vmov 32.0  }
  0x1a   :  { %v138_v2 = vsel %vm137_vm0, %v1646_v0, 0.0  ;;  %v141_v3 = vsel %vm137_vm0, %v1648_v1, 0.0  ;;  %1318 = vrcp.f32 %v1529_v4  ;;  %v1266_v22 = vld [vmem:[%s1868_s6 + $0x8] sm:$0xff]  ;;  %v1265_v24 = vld [vmem:[%s1868_s6] sm:$0xff]  ;;  %v1298_v37 = vld [vmem:[#allocation5] ss:$0 sm:$0xff] }
  0x1b   :  { %139 = vadd.xlane.f32.xlu0 %v138_v2  ;;  %338 = vmatpush.bf16.msra.mxu1 %v1266_v22  ;;  %v1299_v41 = vld [vmem:[#allocation7] ss:$0 sm:$0xff]  ;;  %v1300_v44 = vld [vmem:[#allocation8] ss:$0 sm:$0xff]  ;;  %vm275_vm8 = vcmask 1041409   ;;  %s1530_s23 = smov [#allocation11]  }
  0x1c   :  { %s1106_s27 = sshll.u32 %s1530_s23, 4  ;;  %s1108_s1 = sshll.u32 %s1878_s16, 4  ;;  %s1107_s27 = int_to_ptr.vmem [resolvable:$true] %s1106_s27  ;;  %s1109_s1 = int_to_ptr.hbm [resolvable:$true] %s1108_s1 }
  0x1f   :  { %339 = vmatpush.bf16.msra.mxu1 %v1265_v24 }
  0x20   :  { %v1319_v5 = vpop.eup %1318 }
  0x21   :  { %v145_v6 = vmul.f32 32.0, %v1319_v5  ;;  %vm149_vm1 = vweird.f32 %v1319_v5 }
  0x23   :  { %142 = vadd.xlane.f32.xlu0 %v141_v3  ;;  %v146_v7 = vsub.f32 1.0, %v145_v6 }
  0x25   :  { %v147_v8 = vmul.f32 %v1319_v5, %v146_v7 }
  0x27   :  { %v148_v9 = vadd.f32 %v1319_v5, %v147_v8 }
  0x29   :  { %v1654_v10 = vsel %vm149_vm1, %v1319_v5, %v148_v9  ;;  %v1264_v9 = vld [vmem:[%s1866_s4 + $0x8] sm:$0xff] }
  0x2a   :  { %299 = vmatpush.bf16.msra.mxu0 %v1264_v9 }
  0x8e   :  { %v140_v11 = vpop.xlane.xlu0 %139 }
  0x8f   :  { %v151_v12 = vmul.f32 %v1654_v10, %v140_v11 }
  0x91   :  { %v153_v13 = vsub.f32 %v1646_v0, %v151_v12 }
  0x93   :  { %v155_v14 = vmul.f32 %v153_v13, %v153_v13 }
  0x95   :  { %v157_v15 = vsel %vm137_vm0, %v155_v14, 0.0 }
  0x96   :  { %158 = vadd.xlane.f32.xlu1 %v157_v15  ;;  %v143_v16 = vpop.xlane.xlu0 %142 }
  0x97   :  { %v152_v17 = vmul.f32 %v1654_v10, %v143_v16 }
  0x99   :  { %v154_v18 = vsub.f32 %v1648_v1, %v152_v17 }
  0x9b   :  { %v156_v19 = vmul.f32 %v154_v18, %v154_v18 }
  0x9d   :  { %v160_v20 = vsel %vm137_vm0, %v156_v19, 0.0 }
  0x9e   :  { %161 = vadd.xlane.f32.xlu1 %v160_v20 }
 0x109   :  { %v159_v21 = vpop.xlane.xlu1 %158 }
 0x10a   :  { %v163_v23 = vmul.f32 %v159_v21, %v1654_v10 }
 0x10c   :  { %v165_v25 = vadd.f32 1e-05, %v163_v23 }
 0x10e   :  { %1320 = vrsqrt.f32 %v165_v25  ;;  %vm173_vm3 = vweird.f32 %v165_v25 }
 0x111   :  { %v162_v26 = vpop.xlane.xlu1 %161 }
 0x112   :  { %v164_v27 = vmul.f32 %v162_v26, %v1654_v10 }
 0x114   :  { %v1321_v28 = vpop.eup %1320  ;;  %v166_v29 = vadd.f32 1e-05, %v164_v27 }
 0x115   :  { %v168_v30 = vmul.f32 %v1321_v28, %v165_v25  ;;  %vm174_vm2 = vweird.f32 %v1321_v28 }
 0x116   :  { %1322 = vrsqrt.f32 %v166_v29  ;;  %vm175_vm4 = vmor %vm173_vm3, %vm174_vm2  ;;  %vm183_vm6 = vweird.f32 %v166_v29 }
 0x117   :  { %v169_v31 = vmul.f32 %v1321_v28, %v168_v30 }
 0x119   :  { %v170_v32 = vmul.f32 0.5, %v169_v31 }
 0x11b   :  { %v171_v33 = vsub.f32 1.5, %v170_v32 }
 0x11c   :  { %v1323_v34 = vpop.eup %1322 }
 0x11d   :  { %v172_v35 = vmul.f32 %v1321_v28, %v171_v33  ;;  %v178_v36 = vmul.f32 %v1323_v34, %v166_v29  ;;  %vm184_vm5 = vweird.f32 %v1323_v34 }
 0x11e   :  { %vm185_vm7 = vmor %vm183_vm6, %vm184_vm5 }
 0x11f   :  { %v176_v38 = vsel %vm175_vm4, %v1321_v28, %v172_v35  ;;  %v179_v39 = vmul.f32 %v1323_v34, %v178_v36 }
 0x120   :  { %v187_v40 = vmul.f32 %v176_v38, %v153_v13  ;;  %v1263_v13 = vld [vmem:[%s1866_s4] sm:$0xff] }
 0x121   :  { %v180_v42 = vmul.f32 0.5, %v179_v39  ;;  %300 = vmatpush.bf16.msra.mxu0 %v1263_v13 }
 0x122   :  { %v192_v43 = vmul.f32 %v1298_v37, %v187_v40 }
 0x123   :  { %v181_v45 = vsub.f32 1.5, %v180_v42 }
 0x124   :  { %v197_v46 = vadd.f32 %v1299_v41, %v192_v43 }
 0x125   :  { %v182_v47 = vmul.f32 %v1323_v34, %v181_v45 }
 0x126   :  { %v203_v48 = vmul.f32 %v1300_v44, %v197_v46  ;;  %v306_v54 = vpack.c.bf16 %v197_v46, %v197_v46 }
 0x127   :  { %v186_v49 = vsel %vm185_vm7, %v1323_v34, %v182_v47 }
 0x128   :  { %v188_v50 = vmul.f32 %v186_v49, %v154_v18  ;;  %v205_v51 = vsel %vm137_vm0, %v203_v48, 0.0  ;;  %v314_v58 = vunpack.c.l.b16 %v306_v54 }
 0x129   :  { %206 = vadd.xlane.f32.xlu2 %v205_v51 }
 0x12a   :  { %v193_v52 = vmul.f32 %v1298_v37, %v188_v50 }
 0x12c   :  { %v198_v53 = vadd.f32 %v1299_v41, %v193_v52 }
 0x12e   :  { %v204_v55 = vmul.f32 %v1300_v44, %v198_v53  ;;  %v307_v56 = vpack.c.bf16 %v198_v53, %v198_v53 }
 0x130   :  { %v208_v57 = vsel %vm137_vm0, %v204_v55, 0.0  ;;  %v315_v59 = vunpack.c.l.b16 %v307_v56 }
 0x131   :  { %209 = vadd.xlane.f32.xlu2 %v208_v57 }
 0x132   :  { %v316_v60 = vpack.c.b16 %v315_v59, %v314_v58 }
 0x134   :  { %1140 = vmatmul.msk.bf16.vlgmr.msra.gmra.mxu1 %vm137_vm0, %v316_v60 }
 0x19c   :  { %v207_v61 = vpop.xlane.xlu2 %206 }
 0x19d   :  { %v211_v62 = vrot.slane %v207_v61, 4 }
 0x19f   :  { %v212_v63 = vmax.f32 %v207_v61, %v211_v62 }
 0x1a1   :  { %v213_v2 = vrot.slane %v212_v63, 2 }
 0x1a3   :  { %v214_v3 = vmax.f32 %v212_v63, %v213_v2  ;;  %v1302_v63 = vld [vmem:[%s1867_s5] ss:$0 sm:$0xff] }
 0x1a4   :  { %v210_v4 = vpop.xlane.xlu2 %209  ;;  %v1301_v2 = vld [vmem:[%s1869_s7] ss:$0 sm:$0xff] }
 0x1a5   :  { %v215_v5 = vrot.slane %v214_v3, 1  ;;  %v217_v6 = vrot.slane %v210_v4, 4 }
 0x1a7   :  { %v216_v7 = vmax.f32 %v214_v3, %v215_v5  ;;  %v218_v8 = vmax.f32 %v210_v4, %v217_v6 }
 0x1a9   :  { %v223_v11 = vsub.f32 %v207_v61, %v216_v7  ;;  %v219_v12 = vrot.slane %v218_v8, 2  ;;  %v1267_v61 = vld [vmem:[%s1870_s8] sm:$0xff] }
 0x1ab   :  { %v225_v14 = vmul.f32 1.442695, %v223_v11  ;;  %v220_v15 = vmax.f32 %v218_v8, %v219_v12 }
 0x1ad   :  { %1324 = vpow2.f32 %v225_v14  ;;  %v221_v16 = vrot.slane %v220_v15, 1 }
 0x1af   :  { %v222_v17 = vmax.f32 %v220_v15, %v221_v16 }
 0x1b1   :  { %v224_v18 = vsub.f32 %v210_v4, %v222_v17  ;;  %v341_v62 = vpop.f32.mrf.mxu1 }
 0x1b2   :  { %v350_v6 = vadd.f32 %v1301_v2, %v341_v62 }
 0x1b3   :  { %v1325_v19 = vpop.eup %1324  ;;  %v227_v20 = vmul.f32 1.442695, %v224_v18 }
 0x1b4   :  { %v229_v21 = vrot.slane %v1325_v19, 4 }
 0x1b5   :  { %1326 = vpow2.f32 %v227_v20  ;;  %v1303_v20 = vld [vmem:[%s1871_s9] ss:$0 sm:$0xff] }
 0x1b6   :  { %v230_v22 = vadd.f32 %v1325_v19, %v229_v21 }
 0x1b8   :  { %v231_v23 = vrot.slane %v230_v22, 2 }
 0x1b9   :  { %v343_v5 = vpop.f32.mrf.mxu1 }
 0x1ba   :  { %v232_v24 = vadd.f32 %v231_v23, %v230_v22  ;;  %v351_v9 = vadd.f32 %v1301_v2, %v343_v5 }
 0x1bb   :  { %v1327_v25 = vpop.eup %1326 }
 0x1bc   :  { %v233_v26 = vrot.slane %v232_v24, 1  ;;  %v235_v27 = vrot.slane %v1327_v25, 4 }
 0x1be   :  { %v234_v28 = vadd.f32 %v233_v26, %v232_v24  ;;  %v236_v29 = vadd.f32 %v1327_v25, %v235_v27 }
 0x1c0   :  { %1328 = vrcp.f32 %v234_v28  ;;  %v237_v30 = vrot.slane %v236_v29, 2 }
 0x1c2   :  { %v238_v31 = vadd.f32 %v237_v30, %v236_v29 }
 0x1c4   :  { %v239_v32 = vrot.slane %v238_v31, 1 }
 0x1c6   :  { %v1329_v33 = vpop.eup %1328  ;;  %v240_v34 = vadd.f32 %v239_v32, %v238_v31 }
 0x1c7   :  { %v243_v35 = vmul.f32 %v1329_v33, %v1325_v19 }
 0x1c8   :  { %1330 = vrcp.f32 %v240_v34 }
 0x1c9   :  { %v245_v36 = vmul.f32 %v243_v35, %v197_v46 }
 0x1cb   :  { %v247_v37 = vsel %vm137_vm0, %v245_v36, 0.0 }
 0x1cc   :  { %v248_v38 = vrot.slane %v247_v37, 4 }
 0x1ce   :  { %v1331_v39 = vpop.eup %1330  ;;  %v249_v40 = vadd.f32 %v248_v38, %v247_v37  ;;  %v1270_v37 = vld [vmem:[%s1874_s12 + $0x8] sm:$0xff] }
 0x1cf   :  { %v244_v41 = vmul.f32 %v1331_v39, %v1327_v25  ;;  %496 = vmatpush.bf16.msra.mxu3 %v1270_v37 }
 0x1d0   :  { %v250_v42 = vrot.slane %v249_v40, 2 }
 0x1d1   :  { %v246_v43 = vmul.f32 %v244_v41, %v198_v53  ;;  %v1268_v53 = vld [vmem:[%s1870_s8 + $0x8] sm:$0xff] }
 0x1d2   :  { %v251_v44 = vadd.f32 %v250_v42, %v249_v40  ;;  %392 = vmatpush.bf16.msra.mxu2 %v1268_v53  ;;  %v1269_v40 = vld [vmem:[%s1874_s12] sm:$0xff]  ;;  %v1305_v53 = vld [vmem:[#allocation10] ss:$0 sm:$0xff] }
 0x1d3   :  { %v254_v45 = vsel %vm137_vm0, %v246_v43, 0.0  ;;  %497 = vmatpush.bf16.msra.mxu3 %v1269_v40 }
 0x1d4   :  { %v255_v47 = vrot.slane %v254_v45, 4  ;;  %v252_v48 = vrot.slane %v251_v44, 1 }
 0x1d6   :  { %v256_v49 = vadd.f32 %v255_v47, %v254_v45  ;;  %v253_v51 = vadd.f32 %v252_v48, %v251_v44  ;;  %393 = vmatpush.bf16.msra.mxu2 %v1267_v61 }
 0x1d8   :  { %v257_v50 = vrot.slane %v256_v49, 2  ;;  %v261_v46 = vpack.c.bf16 %v253_v51, %v253_v51 }
 0x1da   :  { %v258_v52 = vadd.f32 %v257_v50, %v256_v49  ;;  %v273_v57 = vunpack.c.l.b16 %v261_v46 }
 0x1dc   :  { %v259_v54 = vrot.slane %v258_v52, 1 }
 0x1de   :  { %v260_v55 = vadd.f32 %v259_v54, %v258_v52 }
 0x1e0   :  { %v262_v56 = vpack.c.bf16 %v260_v55, %v260_v55 }
 0x1e2   :  { %v274_v58 = vunpack.c.l.b16 %v262_v56 }
 0x1e4   :  { %v276_v59 = vsel %vm275_vm8, %v274_v58, %v273_v57  ;;  %v1304_v57 = vld [vmem:[%s1872_s10] ss:$0 sm:$0xff] }
 0x1e5   :  { %v277_v60 = vpack.c.b16 %v276_v59, %v276_v59 }
 0x1e7   :  { %1131 = vmatmul.msk.bf16.vlgmr.msra.gmra.mxu0 %vm137_vm0, %v277_v60 }
 0x264   :  { %v302_v3 = vpop.f32.mrf.mxu0 }
 0x265   :  { %v303_v4 = vadd.f32 %v1302_v63, %v302_v3 }
 0x267   :  { %v353_v7 = vrot.slane %v303_v4, 1  ;;  %v354_v8 = vperm.slane %v303_v4, 0 }
 0x269   :  { %v355_v11 = vperm.slane %v353_v7, 0  ;;  %v358_v12 = vmul.f32 %v354_v8, %v350_v6 }
 0x26b   :  { %v359_v13 = vmul.f32 %v355_v11, %v351_v9  ;;  %v360_v14 = vpack.c.bf16 %v358_v12, %v358_v12  ;;  %v1306_v11 = vld [vmem:[%s1875_s13] ss:$0 sm:$0xff]  ;;  %v1274_v12 = vld [vmem:[%s1876_s14 + $0x18] sm:$0xff] }
 0x26c   :  { %v304_v15 = vpop.f32.mrf.mxu0  ;;  %597 = vmatpush.bf16.msrb.mxu0 %v1274_v12  ;;  %v1277_v12 = vld [vmem:[%s1868_s6 + $0x10] sm:$0xff] }
 0x26d   :  { %v361_v16 = vpack.c.bf16 %v359_v13, %v359_v13  ;;  %v368_v17 = vunpack.c.l.b16 %v360_v14  ;;  %v1273_v15 = vld [vmem:[%s1876_s14 + $0x10] sm:$0xff] }
 0x26f   :  { %v369_v18 = vunpack.c.l.b16 %v361_v16 }
 0x270   :  { %598 = vmatpush.bf16.msrb.mxu0 %v1273_v15 }
 0x271   :  { %v370_v19 = vpack.c.b16 %v369_v18, %v368_v17  ;;  %v1272_v17 = vld [vmem:[%s1876_s14 + $0x8] sm:$0xff] }
 0x273   :  { %1149 = vmatmul.msk.bf16.vlgmr.msra.gmra.mxu2 %vm137_vm0, %v370_v19 }
 0x274   :  { %599 = vmatpush.bf16.msrb.mxu0 %v1272_v17 }
 0x2f6   :  { %v395_v21 = vpop.f32.mrf.mxu2 }
 0x2f7   :  { %v400_v22 = vadd.f32 %v395_v21, %v1646_v0 }
 0x2f9   :  { %v1700_v23 = vadd.f32 %v1303_v20, %v400_v22 }
 0x2fb   :  { %v410_v24 = vsel %vm137_vm0, %v1700_v23, 0.0 }
 0x2fc   :  { %411 = vadd.xlane.f32.xlu0 %v410_v24 }
 0x2fe   :  { %v397_v25 = vpop.f32.mrf.mxu2 }
 0x2ff   :  { %v401_v26 = vadd.f32 %v397_v25, %v1648_v1 }
 0x301   :  { %v1705_v27 = vadd.f32 %v1303_v20, %v401_v26  ;;  %v1271_v20 = vld [vmem:[%s1876_s14] sm:$0xff] }
 0x302   :  { %600 = vmatpush.bf16.msrb.mxu0 %v1271_v20 }
 0x303   :  { %v413_v28 = vsel %vm137_vm0, %v1705_v27, 0.0 }
 0x304   :  { %414 = vadd.xlane.f32.xlu1 %v413_v28 }
 0x36f   :  { %v412_v29 = vpop.xlane.xlu0 %411 }
 0x370   :  { %v416_v30 = vmul.f32 %v412_v29, %v1654_v10 }
 0x372   :  { %v418_v0 = vsub.f32 %v1700_v23, %v416_v30 }
 0x374   :  { %v420_v31 = vmul.f32 %v418_v0, %v418_v0 }
 0x376   :  { %v422_v32 = vsel %vm137_vm0, %v420_v31, 0.0 }
 0x377   :  { %423 = vadd.xlane.f32.xlu2 %v422_v32  ;;  %v415_v33 = vpop.xlane.xlu1 %414 }
 0x378   :  { %v417_v34 = vmul.f32 %v415_v33, %v1654_v10 }
 0x37a   :  { %v419_v1 = vsub.f32 %v1705_v27, %v417_v34 }
 0x37c   :  { %v421_v35 = vmul.f32 %v419_v1, %v419_v1 }
 0x37e   :  { %v425_v36 = vsel %vm137_vm0, %v421_v35, 0.0 }
 0x37f   :  { %426 = vadd.xlane.f32.xlu0 %v425_v36 }
 0x3ea   :  { %v424_v38 = vpop.xlane.xlu2 %423 }
 0x3eb   :  { %v428_v39 = vmul.f32 %v424_v38, %v1654_v10 }
 0x3ed   :  { %v430_v41 = vadd.f32 1e-05, %v428_v39 }
 0x3ef   :  { %1332 = vrsqrt.f32 %v430_v41  ;;  %vm438_vm10 = vweird.f32 %v430_v41 }
 0x3f2   :  { %v427_v42 = vpop.xlane.xlu0 %426 }
 0x3f3   :  { %v429_v43 = vmul.f32 %v427_v42, %v1654_v10 }
 0x3f5   :  { %v1333_v44 = vpop.eup %1332  ;;  %v431_v45 = vadd.f32 1e-05, %v429_v43 }
 0x3f6   :  { %v433_v47 = vmul.f32 %v1333_v44, %v430_v41  ;;  %vm439_vm9 = vweird.f32 %v1333_v44 }
 0x3f7   :  { %1334 = vrsqrt.f32 %v431_v45  ;;  %vm440_vm11 = vmor %vm438_vm10, %vm439_vm9  ;;  %vm448_vm13 = vweird.f32 %v431_v45  ;;  %vm589_vm9 = vcmask 523264  }
 0x3f8   :  { %v434_v48 = vmul.f32 %v1333_v44, %v433_v47 }
 0x3fa   :  { %v435_v49 = vmul.f32 0.5, %v434_v48 }
 0x3fc   :  { %v436_v50 = vsub.f32 1.5, %v435_v49 }
 0x3fd   :  { %v1335_v51 = vpop.eup %1334 }
 0x3fe   :  { %v437_v52 = vmul.f32 %v1333_v44, %v436_v50  ;;  %v443_v54 = vmul.f32 %v1335_v51, %v431_v45  ;;  %vm449_vm12 = vweird.f32 %v1335_v51 }
 0x3ff   :  { %vm450_vm14 = vmor %vm448_vm13, %vm449_vm12 }
 0x400   :  { %v441_v55 = vsel %vm440_vm11, %v1333_v44, %v437_v52  ;;  %v444_v46 = vmul.f32 %v1335_v51, %v443_v54 }
 0x401   :  { %v452_v56 = vmul.f32 %v441_v55, %v418_v0  ;;  %v1307_v55 = vld [vmem:[%s1877_s15] ss:$0 sm:$0xff] }
 0x402   :  { %v445_v58 = vmul.f32 0.5, %v444_v46 }
 0x403   :  { %v457_v60 = vmul.f32 %v1304_v57, %v452_v56 }
 0x404   :  { %v446_v59 = vsub.f32 1.5, %v445_v58 }
 0x405   :  { %v462_v2 = vadd.f32 %v1305_v53, %v457_v60 }
 0x406   :  { %v447_v61 = vmul.f32 %v1335_v51, %v446_v59 }
 0x407   :  { %v464_v5 = vpack.c.bf16 %v462_v2, %v462_v2 }
 0x408   :  { %v451_v62 = vsel %vm450_vm14, %v1335_v51, %v447_v61 }
 0x409   :  { %v453_v63 = vmul.f32 %v451_v62, %v419_v1  ;;  %v472_v7 = vunpack.c.l.b16 %v464_v5 }
 0x40b   :  { %v458_v3 = vmul.f32 %v1304_v57, %v453_v63 }
 0x40d   :  { %v463_v4 = vadd.f32 %v1305_v53, %v458_v3 }
 0x40f   :  { %v465_v6 = vpack.c.bf16 %v463_v4, %v463_v4 }
 0x411   :  { %v473_v8 = vunpack.c.l.b16 %v465_v6 }
 0x413   :  { %v474_v9 = vpack.c.b16 %v473_v8, %v472_v7 }
 0x415   :  { %1158 = vmatmul.msk.bf16.vlgmr.msra.gmra.mxu3 %vm137_vm0, %v474_v9  ;;  %v1278_v9 = vld [vmem:[%s1868_s6 + $0x18] sm:$0xff] }
 0x416   :  { %815 = vmatpush.bf16.msrb.mxu2 %v1278_v9 }
 0x41a   :  { %816 = vmatpush.bf16.msrb.mxu2 %v1277_v12 }
 0x498   :  { %v499_v13 = vpop.f32.mrf.mxu3 }
 0x499   :  { %v508_v14 = vadd.f32 %v1306_v11, %v499_v13 }
 0x49b   :  { %v1159_v16 = vmul.f32 -1.442695, %v508_v14 }
 0x49d   :  { %1336 = vpow2.f32 %v1159_v16 }
 0x4a0   :  { %v501_v18 = vpop.f32.mrf.mxu3 }
 0x4a1   :  { %v509_v19 = vadd.f32 %v1306_v11, %v501_v18 }
 0x4a3   :  { %v1337_v21 = vpop.eup %1336  ;;  %v1160_v22 = vmul.f32 -1.442695, %v509_v19 }
 0x4a4   :  { %v516_v24 = vadd.f32 1.0, %v1337_v21 }
 0x4a5   :  { %1338 = vpow2.f32 %v1160_v22 }
 0x4a6   :  { %1340 = vrcp.f32 %v516_v24  ;;  %v529_v31 = vand.u32 2147483648, %v516_v24  ;;  %vm523_vm1 = vweird.f32 %v516_v24  ;;  %v527_v33 = vand.u32 2147483647, %v516_v24 }
 0x4a8   :  { %v530_v36 = vor.u32 1.1754944e-38, %v529_v31  ;;  %vm528_vm3 = vcmp.eq.f32.partialorder %v527_v33, 8.507059e+37  ;;  %v1310_v33 = vld [vmem:[#allocation8 + $0x1] ss:$0 sm:$0xff] }
 0x4ab   :  { %v1339_v25 = vpop.eup %1338 }
 0x4ac   :  { %v1341_v26 = vpop.eup %1340  ;;  %v517_v28 = vadd.f32 1.0, %v1339_v25 }
 0x4ad   :  { %v519_v29 = vmul.f32 %v1341_v26, %v516_v24  ;;  %vm524_vm15 = vweird.f32 %v1341_v26 }
 0x4ae   :  { %1342 = vrcp.f32 %v517_v28  ;;  %vm525_vm2 = vmor %vm523_vm1, %vm524_vm15  ;;  %v544_v39 = vand.u32 2147483648, %v517_v28  ;;  %v542_v41 = vand.u32 2147483647, %v517_v28  ;;  %vm538_vm5 = vweird.f32 %v517_v28 }
 0x4af   :  { %v520_v30 = vsub.f32 1.0, %v519_v29 }
 0x4b0   :  { %v545_v44 = vor.u32 1.1754944e-38, %v544_v39  ;;  %vm543_vm7 = vcmp.eq.f32.partialorder %v542_v41, 8.507059e+37 }
 0x4b1   :  { %v521_v0 = vmul.f32 %v1341_v26, %v520_v30 }
 0x4b3   :  { %v522_v32 = vadd.f32 %v1341_v26, %v521_v0  ;;  %v1309_v0 = vld [vmem:[#allocation7 + $0x1] ss:$0 sm:$0xff] }
 0x4b4   :  { %v1343_v34 = vpop.eup %1342 }
 0x4b5   :  { %v526_v1 = vsel %vm525_vm2, %v1341_v26, %v522_v32  ;;  %v534_v35 = vmul.f32 %v1343_v34, %v517_v28  ;;  %vm539_vm4 = vweird.f32 %v1343_v34  ;;  %v1308_v26 = vld [vmem:[#allocation5 + $0x1] ss:$0 sm:$0xff] }
 0x4b6   :  { %v531_v38 = vsel %vm528_vm3, %v530_v36, %v526_v1  ;;  %vm540_vm6 = vmor %vm538_vm5, %vm539_vm4 }
 0x4b7   :  { %v535_v37 = vsub.f32 1.0, %v534_v35  ;;  %v548_v42 = vmul.f32 %v531_v38, %v508_v14 }
 0x4b9   :  { %v536_v40 = vmul.f32 %v1343_v34, %v535_v37  ;;  %v550_v48 = vpack.c.bf16 %v548_v42, %v548_v42 }
 0x4bb   :  { %v537_v43 = vadd.f32 %v1343_v34, %v536_v40  ;;  %v562_v51 = vunpack.c.l.b16 %v550_v48 }
 0x4bd   :  { %v541_v45 = vsel %vm540_vm6, %v1343_v34, %v537_v43 }
 0x4be   :  { %v546_v47 = vsel %vm543_vm7, %v545_v44, %v541_v45 }
 0x4bf   :  { %v549_v49 = vmul.f32 %v546_v47, %v509_v19 }
 0x4c1   :  { %v551_v50 = vpack.c.bf16 %v549_v49, %v549_v49 }
 0x4c3   :  { %v563_v52 = vunpack.c.l.b16 %v551_v50 }
 0x4c5   :  { %v564_v54 = vpack.c.b16 %v563_v52, %v562_v51 }
 0x4c7   :  { %1177 = vmatmul.msk.bf16.vlgmr.msrb.gmra.mxu0 %vm589_vm9, %v564_v54 }
 0x544   :  { %v602_v46 = vpop.f32.mrf.mxu0 }
 0x545   :  { %v607_v56 = vadd.f32 %v602_v46, %v1700_v23 }
 0x547   :  { %v1747_v57 = vadd.f32 %v1307_v55, %v607_v56 }
 0x549   :  { %v619_v58 = vsel %vm137_vm0, %v1747_v57, 0.0 }
 0x54a   :  { %620 = vadd.xlane.f32.xlu1 %v619_v58 }
 0x54c   :  { %v604_v59 = vpop.f32.mrf.mxu0 }
 0x54d   :  { %v608_v60 = vadd.f32 %v604_v59, %v1705_v27 }
 0x54f   :  { %v1752_v53 = vadd.f32 %v1307_v55, %v608_v60 }
 0x551   :  { %v622_v61 = vsel %vm137_vm0, %v1752_v53, 0.0 }
 0x552   :  { %623 = vadd.xlane.f32.xlu2 %v622_v61 }
 0x5bd   :  { %v621_v62 = vpop.xlane.xlu1 %620 }
 0x5be   :  { %v625_v63 = vmul.f32 %v621_v62, %v1654_v10 }
 0x5c0   :  { %v627_v23 = vsub.f32 %v1747_v57, %v625_v63 }
 0x5c2   :  { %v629_v2 = vmul.f32 %v627_v23, %v627_v23 }
 0x5c4   :  { %v631_v3 = vsel %vm137_vm0, %v629_v2, 0.0 }
 0x5c5   :  { %632 = vadd.xlane.f32.xlu0 %v631_v3  ;;  %v624_v4 = vpop.xlane.xlu2 %623 }
 0x5c6   :  { %v626_v5 = vmul.f32 %v624_v4, %v1654_v10  ;;  %v1276_v4 = vld [vmem:[%s1866_s4 + $0x18] sm:$0xff] }
 0x5c7   :  { %775 = vmatpush.bf16.msrb.mxu1 %v1276_v4 }
 0x5c8   :  { %v628_v27 = vsub.f32 %v1752_v53, %v626_v5 }
 0x5ca   :  { %v630_v6 = vmul.f32 %v628_v27, %v628_v27 }
 0x5cc   :  { %v634_v7 = vsel %vm137_vm0, %v630_v6, 0.0 }
 0x5cd   :  { %635 = vadd.xlane.f32.xlu1 %v634_v7 }
 0x638   :  { %v633_v8 = vpop.xlane.xlu0 %632 }
 0x639   :  { %v637_v11 = vmul.f32 %v633_v8, %v1654_v10 }
 0x63b   :  { %v639_v13 = vadd.f32 1e-05, %v637_v11 }
 0x63d   :  { %1344 = vrsqrt.f32 %v639_v13  ;;  %vm647_vm11 = vweird.f32 %v639_v13 }
 0x640   :  { %v636_v14 = vpop.xlane.xlu1 %635 }
 0x641   :  { %v638_v15 = vmul.f32 %v636_v14, %v1654_v10 }
 0x643   :  { %v1345_v16 = vpop.eup %1344  ;;  %v640_v17 = vadd.f32 1e-05, %v638_v15 }
 0x644   :  { %v642_v18 = vmul.f32 %v1345_v16, %v639_v13  ;;  %vm648_vm10 = vweird.f32 %v1345_v16 }
 0x645   :  { %1346 = vrsqrt.f32 %v640_v17  ;;  %vm649_vm12 = vmor %vm647_vm11, %vm648_vm10  ;;  %vm657_vm14 = vweird.f32 %v640_v17 }
 0x646   :  { %v643_v19 = vmul.f32 %v1345_v16, %v642_v18 }
 0x648   :  { %v644_v20 = vmul.f32 0.5, %v643_v19 }
 0x64a   :  { %v645_v21 = vsub.f32 1.5, %v644_v20 }
 0x64b   :  { %v1347_v22 = vpop.eup %1346 }
 0x64c   :  { %v646_v24 = vmul.f32 %v1345_v16, %v645_v21  ;;  %v652_v25 = vmul.f32 %v1347_v22, %v640_v17  ;;  %vm658_vm13 = vweird.f32 %v1347_v22 }
 0x64d   :  { %vm659_vm15 = vmor %vm657_vm14, %vm658_vm13 }
 0x64e   :  { %v650_v28 = vsel %vm649_vm12, %v1345_v16, %v646_v24  ;;  %v653_v29 = vmul.f32 %v1347_v22, %v652_v25  ;;  %v1280_v25 = vld [vmem:[%s1870_s8 + $0x18] sm:$0xff] }
 0x64f   :  { %v661_v30 = vmul.f32 %v650_v28, %v627_v23  ;;  %871 = vmatpush.bf16.msrb.mxu3 %v1280_v25 }
 0x650   :  { %v654_v31 = vmul.f32 0.5, %v653_v29 }
 0x651   :  { %v666_v32 = vmul.f32 %v1308_v26, %v661_v30 }
 0x652   :  { %v655_v34 = vsub.f32 1.5, %v654_v31 }
 0x653   :  { %v1770_v1 = vadd.f32 %v1309_v0, %v666_v32 }
 0x654   :  { %v656_v35 = vmul.f32 %v1347_v22, %v655_v34 }
 0x655   :  { %v678_v36 = vmul.f32 %v1310_v33, %v1770_v1  ;;  %v782_v42 = vpack.c.bf16 %v1770_v1, %v1770_v1 }
 0x656   :  { %v660_v37 = vsel %vm659_vm15, %v1347_v22, %v656_v35 }
 0x657   :  { %v662_v38 = vmul.f32 %v660_v37, %v628_v27  ;;  %v680_v39 = vsel %vm137_vm0, %v678_v36, 0.0  ;;  %v791_v47 = vunpack.c.l.b16 %v782_v42  ;;  %v1275_v27 = vld [vmem:[%s1866_s4 + $0x10] sm:$0xff] }
 0x658   :  { %681 = vadd.xlane.f32.xlu2 %v680_v39  ;;  %776 = vmatpush.bf16.msrb.mxu1 %v1275_v27 }
 0x659   :  { %v667_v40 = vmul.f32 %v1308_v26, %v662_v38 }
 0x65b   :  { %v672_v41 = vadd.f32 %v1309_v0, %v667_v40 }
 0x65d   :  { %v679_v43 = vmul.f32 %v1310_v33, %v672_v41  ;;  %v783_v44 = vpack.c.bf16 %v672_v41, %v672_v41 }
 0x65f   :  { %v683_v45 = vsel %vm137_vm0, %v679_v43, 0.0  ;;  %v792_v48 = vunpack.c.l.b16 %v783_v44 }
 0x660   :  { %684 = vadd.xlane.f32.xlu0 %v683_v45 }
 0x661   :  { %v793_v49 = vpack.c.b16 %v792_v48, %v791_v47 }
 0x663   :  { %1204 = vmatmul.msk.bf16.vlgmr.msrb.gmra.mxu2 %vm137_vm0, %v793_v49 }
 0x6cb   :  { %v682_v50 = vpop.xlane.xlu2 %681 }
 0x6cc   :  { %v686_v51 = vrot.slane %v682_v50, 4 }
 0x6ce   :  { %v687_v52 = vmax.f32 %v682_v50, %v686_v51 }
 0x6d0   :  { %v688_v54 = vrot.slane %v687_v52, 2 }
 0x6d2   :  { %v689_v55 = vmax.f32 %v687_v52, %v688_v54  ;;  %v1312_v52 = vld [vmem:[%s1867_s5 + $0x1] ss:$0 sm:$0xff] }
 0x6d3   :  { %v685_v46 = vpop.xlane.xlu0 %684  ;;  %v1311_v54 = vld [vmem:[%s1869_s7 + $0x1] ss:$0 sm:$0xff] }
 0x6d4   :  { %v690_v56 = vrot.slane %v689_v55, 1  ;;  %v692_v58 = vrot.slane %v685_v46, 4 }
 0x6d6   :  { %v691_v59 = vmax.f32 %v689_v55, %v690_v56  ;;  %v693_v60 = vmax.f32 %v685_v46, %v692_v58 }
 0x6d8   :  { %v698_v61 = vsub.f32 %v682_v50, %v691_v59  ;;  %v694_v62 = vrot.slane %v693_v60, 2 }
 0x6da   :  { %v700_v63 = vmul.f32 1.442695, %v698_v61  ;;  %v695_v23 = vmax.f32 %v693_v60, %v694_v62 }
 0x6dc   :  { %1348 = vpow2.f32 %v700_v63  ;;  %v696_v2 = vrot.slane %v695_v23, 1 }
 0x6de   :  { %v697_v3 = vmax.f32 %v695_v23, %v696_v2 }
 0x6e0   :  { %v699_v5 = vsub.f32 %v685_v46, %v697_v3 }
 0x6e2   :  { %v1349_v6 = vpop.eup %1348  ;;  %v702_v7 = vmul.f32 1.442695, %v699_v5 }
 0x6e3   :  { %v704_v8 = vrot.slane %v1349_v6, 4 }
 0x6e4   :  { %1350 = vpow2.f32 %v702_v7  ;;  %v1313_v7 = vld [vmem:[%s1871_s9 + $0x1] ss:$0 sm:$0xff] }
 0x6e5   :  { %v705_v9 = vadd.f32 %v1349_v6, %v704_v8 }
 0x6e6   :  { %v818_v51 = vpop.f32.mrf.mxu2 }
 0x6e7   :  { %v706_v11 = vrot.slane %v705_v9, 2  ;;  %v828_v58 = vadd.f32 %v1311_v54, %v818_v51 }
 0x6e9   :  { %v707_v12 = vadd.f32 %v706_v11, %v705_v9 }
 0x6ea   :  { %v1351_v13 = vpop.eup %1350 }
 0x6eb   :  { %v708_v14 = vrot.slane %v707_v12, 1  ;;  %v710_v15 = vrot.slane %v1351_v13, 4 }
 0x6ed   :  { %v709_v16 = vadd.f32 %v708_v14, %v707_v12  ;;  %v711_v17 = vadd.f32 %v1351_v13, %v710_v15 }
 0x6ee   :  { %v820_v56 = vpop.f32.mrf.mxu2 }
 0x6ef   :  { %1352 = vrcp.f32 %v709_v16  ;;  %v712_v18 = vrot.slane %v711_v17, 2  ;;  %v829_v61 = vadd.f32 %v1311_v54, %v820_v56 }
 0x6f1   :  { %v713_v19 = vadd.f32 %v712_v18, %v711_v17 }
 0x6f3   :  { %v714_v20 = vrot.slane %v713_v19, 1 }
 0x6f5   :  { %v1353_v21 = vpop.eup %1352  ;;  %v715_v22 = vadd.f32 %v714_v20, %v713_v19 }
 0x6f6   :  { %v718_v24 = vmul.f32 %v1353_v21, %v1349_v6 }
 0x6f7   :  { %1354 = vrcp.f32 %v715_v22 }
 0x6f8   :  { %v720_v26 = vmul.f32 %v718_v24, %v1770_v1 }
 0x6fa   :  { %v722_v28 = vsel %vm137_vm0, %v720_v26, 0.0 }
 0x6fb   :  { %v723_v29 = vrot.slane %v722_v28, 4 }
 0x6fd   :  { %v1355_v30 = vpop.eup %1354  ;;  %v724_v0 = vadd.f32 %v723_v29, %v722_v28  ;;  %v1282_v29 = vld [vmem:[%s1874_s12 + $0x18] sm:$0xff] }
 0x6fe   :  { %v719_v31 = vmul.f32 %v1355_v30, %v1351_v13  ;;  %979 = vmatpush.bf16.msra.mxu0 %v1282_v29 }
 0x6ff   :  { %v725_v32 = vrot.slane %v724_v0, 2 }
 0x700   :  { %v721_v33 = vmul.f32 %v719_v31, %v672_v41  ;;  %v1279_v41 = vld [vmem:[%s1870_s8 + $0x10] sm:$0xff] }
 0x701   :  { %v726_v34 = vadd.f32 %v725_v32, %v724_v0  ;;  %872 = vmatpush.bf16.msrb.mxu3 %v1279_v41  ;;  %v1281_v0 = vld [vmem:[%s1874_s12 + $0x10] sm:$0xff] }
 0x702   :  { %v729_v35 = vsel %vm137_vm0, %v721_v33, 0.0  ;;  %980 = vmatpush.bf16.msra.mxu0 %v1281_v0 }
 0x703   :  { %v730_v36 = vrot.slane %v729_v35, 4  ;;  %v727_v37 = vrot.slane %v726_v34, 1 }
 0x705   :  { %v731_v38 = vadd.f32 %v730_v36, %v729_v35  ;;  %v728_v40 = vadd.f32 %v727_v37, %v726_v34 }
 0x707   :  { %v732_v39 = vrot.slane %v731_v38, 2  ;;  %v736_v44 = vpack.c.bf16 %v728_v40, %v728_v40 }
 0x709   :  { %v733_v42 = vadd.f32 %v732_v39, %v731_v38  ;;  %v750_v47 = vunpack.c.l.b16 %v736_v44  ;;  %v1314_v44 = vld [vmem:[%s1872_s10 + $0x1] ss:$0 sm:$0xff] }
 0x70b   :  { %v734_v43 = vrot.slane %v733_v42, 1 }
 0x70d   :  { %v735_v1 = vadd.f32 %v734_v43, %v733_v42 }
 0x70f   :  { %v737_v45 = vpack.c.bf16 %v735_v1, %v735_v1 }
 0x711   :  { %v751_v48 = vunpack.c.l.b16 %v737_v45 }
 0x713   :  { %v752_v49 = vsel %vm275_vm8, %v751_v48, %v750_v47  ;;  %v1315_v48 = vld [vmem:[#allocation10 + $0x1] ss:$0 sm:$0xff] }
 0x714   :  { %v753_v50 = vpack.c.b16 %v752_v49, %v752_v49 }
 0x716   :  { %1191 = vmatmul.msk.bf16.vlgmr.msrb.gmra.mxu1 %vm137_vm0, %v753_v50 }
 0x793   :  { %v778_v55 = vpop.f32.mrf.mxu1 }
 0x794   :  { %v779_v46 = vadd.f32 %v1312_v52, %v778_v55 }
 0x796   :  { %v831_v59 = vrot.slane %v779_v46, 1  ;;  %v832_v60 = vperm.slane %v779_v46, 0 }
 0x798   :  { %v833_v62 = vperm.slane %v831_v59, 0  ;;  %v836_v63 = vmul.f32 %v832_v60, %v828_v58 }
 0x79a   :  { %v837_v23 = vmul.f32 %v833_v62, %v829_v61  ;;  %v838_v2 = vpack.c.bf16 %v836_v63, %v836_v63  ;;  %v1316_v61 = vld [vmem:[%s1875_s13 + $0x1] ss:$0 sm:$0xff]  ;;  %v1286_v62 = vld [vmem:[%s1876_s14 + $0x38] sm:$0xff] }
 0x79b   :  { %v780_v3 = vpop.f32.mrf.mxu1  ;;  %1081 = vmatpush.bf16.msra.mxu1 %v1286_v62 }
 0x79c   :  { %v839_v4 = vpack.c.bf16 %v837_v23, %v837_v23  ;;  %v847_v5 = vunpack.c.l.b16 %v838_v2  ;;  %v1285_v2 = vld [vmem:[%s1876_s14 + $0x30] sm:$0xff] }
 0x79e   :  { %v848_v27 = vunpack.c.l.b16 %v839_v4  ;;  %v1284_v4 = vld [vmem:[%s1876_s14 + $0x28] sm:$0xff] }
 0x79f   :  { %1082 = vmatpush.bf16.msra.mxu1 %v1285_v2 }
 0x7a0   :  { %v849_v6 = vpack.c.b16 %v848_v27, %v847_v5 }
 0x7a2   :  { %1218 = vmatmul.msk.bf16.vlgmr.msrb.gmra.mxu3 %vm137_vm0, %v849_v6  ;;  %v1283_v6 = vld [vmem:[%s1876_s14 + $0x20] sm:$0xff] }
 0x7a3   :  { %1083 = vmatpush.bf16.msra.mxu1 %v1284_v4 }
 0x7a7   :  { %1084 = vmatpush.bf16.msra.mxu1 %v1283_v6 }
 0x825   :  { %v874_v8 = vpop.f32.mrf.mxu3 }
 0x826   :  { %v879_v9 = vadd.f32 %v874_v8, %v1747_v57 }
 0x828   :  { %v1806_v11 = vadd.f32 %v1313_v7, %v879_v9 }
 0x82a   :  { %v892_v12 = vsel %vm137_vm0, %v1806_v11, 0.0 }
 0x82b   :  { %893 = vadd.xlane.f32.xlu1 %v892_v12 }
 0x82d   :  { %v876_v13 = vpop.f32.mrf.mxu3 }
 0x82e   :  { %v880_v14 = vadd.f32 %v876_v13, %v1752_v53 }
 0x830   :  { %v1811_v15 = vadd.f32 %v1313_v7, %v880_v14 }
 0x832   :  { %v895_v16 = vsel %vm137_vm0, %v1811_v15, 0.0 }
 0x833   :  { %896 = vadd.xlane.f32.xlu2 %v895_v16 }
 0x89e   :  { %v894_v17 = vpop.xlane.xlu1 %893 }
 0x89f   :  { %v898_v18 = vmul.f32 %v894_v17, %v1654_v10 }
 0x8a1   :  { %v900_v57 = vsub.f32 %v1806_v11, %v898_v18 }
 0x8a3   :  { %v902_v19 = vmul.f32 %v900_v57, %v900_v57 }
 0x8a5   :  { %v904_v20 = vsel %vm137_vm0, %v902_v19, 0.0 }
 0x8a6   :  { %905 = vadd.xlane.f32.xlu0 %v904_v20  ;;  %v897_v21 = vpop.xlane.xlu2 %896 }
 0x8a7   :  { %v899_v22 = vmul.f32 %v897_v21, %v1654_v10 }
 0x8a9   :  { %v901_v53 = vsub.f32 %v1811_v15, %v899_v22 }
 0x8ab   :  { %v903_v24 = vmul.f32 %v901_v53, %v901_v53 }
 0x8ad   :  { %v907_v25 = vsel %vm137_vm0, %v903_v24, 0.0 }
 0x8ae   :  { %908 = vadd.xlane.f32.xlu1 %v907_v25 }
 0x919   :  { %v906_v26 = vpop.xlane.xlu0 %905 }
 0x91a   :  { %v910_v28 = vmul.f32 %v906_v26, %v1654_v10 }
 0x91c   :  { %v912_v30 = vadd.f32 1e-05, %v910_v28 }
 0x91e   :  { %1356 = vrsqrt.f32 %v912_v30  ;;  %vm920_vm1 = vweird.f32 %v912_v30 }
 0x921   :  { %v909_v31 = vpop.xlane.xlu1 %908 }
 0x922   :  { %v911_v32 = vmul.f32 %v909_v31, %v1654_v10 }
 0x924   :  { %v1357_v33 = vpop.eup %1356  ;;  %v913_v34 = vadd.f32 1e-05, %v911_v32 }
 0x925   :  { %v915_v35 = vmul.f32 %v1357_v33, %v912_v30  ;;  %vm921_vm8 = vweird.f32 %v1357_v33 }
 0x926   :  { %1358 = vrsqrt.f32 %v913_v34  ;;  %vm922_vm2 = vmor %vm920_vm1, %vm921_vm8  ;;  %vm930_vm4 = vweird.f32 %v913_v34 }
 0x927   :  { %v916_v36 = vmul.f32 %v1357_v33, %v915_v35 }
 0x929   :  { %v917_v37 = vmul.f32 0.5, %v916_v36 }
 0x92b   :  { %v918_v38 = vsub.f32 1.5, %v917_v37 }
 0x92c   :  { %v1359_v39 = vpop.eup %1358 }
 0x92d   :  { %v919_v40 = vmul.f32 %v1357_v33, %v918_v38  ;;  %v925_v42 = vmul.f32 %v1359_v39, %v913_v34  ;;  %vm931_vm3 = vweird.f32 %v1359_v39 }
 0x92e   :  { %vm932_vm5 = vmor %vm930_vm4, %vm931_vm3 }
 0x92f   :  { %v923_v43 = vsel %vm922_vm2, %v1357_v33, %v919_v40  ;;  %v926_v1 = vmul.f32 %v1359_v39, %v925_v42  ;;  %v1317_v42 = vld [vmem:[%s1877_s15 + $0x1] ss:$0 sm:$0xff] }
 0x930   :  { %v934_v10 = vmul.f32 %v923_v43, %v900_v57 }
 0x931   :  { %v927_v45 = vmul.f32 0.5, %v926_v1 }
 0x932   :  { %v939_v49 = vmul.f32 %v1314_v44, %v934_v10 }
 0x933   :  { %v928_v47 = vsub.f32 1.5, %v927_v45 }
 0x934   :  { %v944_v51 = vadd.f32 %v1315_v48, %v939_v49 }
 0x935   :  { %v929_v50 = vmul.f32 %v1359_v39, %v928_v47 }
 0x936   :  { %v946_v55 = vpack.c.bf16 %v944_v51, %v944_v51 }
 0x937   :  { %v933_v41 = vsel %vm932_vm5, %v1359_v39, %v929_v50 }
 0x938   :  { %v935_v52 = vmul.f32 %v933_v41, %v901_v53  ;;  %v955_v58 = vunpack.c.l.b16 %v946_v55 }
 0x93a   :  { %v940_v54 = vmul.f32 %v1314_v44, %v935_v52 }
 0x93c   :  { %v945_v46 = vadd.f32 %v1315_v48, %v940_v54 }
 0x93e   :  { %v947_v56 = vpack.c.bf16 %v945_v46, %v945_v46 }
 0x940   :  { %v956_v59 = vunpack.c.l.b16 %v947_v56 }
 0x942   :  { %v957_v60 = vpack.c.b16 %v956_v59, %v955_v58 }
 0x944   :  { %1233 = vmatmul.msk.bf16.vlgmr.msra.gmra.mxu0 %vm137_vm0, %v957_v60 }
 0x9c1   :  { %v982_v63 = vpop.f32.mrf.mxu0 }
 0x9c2   :  { %v992_v23 = vadd.f32 %v1316_v61, %v982_v63 }
 0x9c4   :  { %v1235_v3 = vmul.f32 -1.442695, %v992_v23 }
 0x9c6   :  { %1360 = vpow2.f32 %v1235_v3 }
 0x9c9   :  { %v984_v5 = vpop.f32.mrf.mxu0 }
 0x9ca   :  { %v993_v27 = vadd.f32 %v1316_v61, %v984_v5 }
 0x9cc   :  { %v1361_v7 = vpop.eup %1360  ;;  %v1236_v8 = vmul.f32 -1.442695, %v993_v27 }
 0x9cd   :  { %v1000_v9 = vadd.f32 1.0, %v1361_v7 }
 0x9ce   :  { %1362 = vpow2.f32 %v1236_v8 }
 0x9cf   :  { %1364 = vrcp.f32 %v1000_v9  ;;  %v1013_v57 = vand.u32 2147483648, %v1000_v9  ;;  %vm1007_vm7 = vweird.f32 %v1000_v9  ;;  %v1011_v20 = vand.u32 2147483647, %v1000_v9 }
 0x9d1   :  { %v1014_v24 = vor.u32 1.1754944e-38, %v1013_v57  ;;  %vm1012_vm11 = vcmp.eq.f32.partialorder %v1011_v20, 8.507059e+37 }
 0x9d4   :  { %v1363_v12 = vpop.eup %1362 }
 0x9d5   :  { %v1365_v13 = vpop.eup %1364  ;;  %v1001_v14 = vadd.f32 1.0, %v1363_v12 }
 0x9d6   :  { %v1003_v16 = vmul.f32 %v1365_v13, %v1000_v9  ;;  %vm1008_vm6 = vweird.f32 %v1365_v13 }
 0x9d7   :  { %1366 = vrcp.f32 %v1001_v14  ;;  %vm1009_vm10 = vmor %vm1007_vm7, %vm1008_vm6  ;;  %v1028_v28 = vand.u32 2147483648, %v1001_v14  ;;  %v1026_v30 = vand.u32 2147483647, %v1001_v14  ;;  %vm1022_vm13 = vweird.f32 %v1001_v14 }
 0x9d8   :  { %v1004_v17 = vsub.f32 1.0, %v1003_v16 }
 0x9d9   :  { %v1029_v32 = vor.u32 1.1754944e-38, %v1028_v28  ;;  %vm1027_vm15 = vcmp.eq.f32.partialorder %v1026_v30, 8.507059e+37 }
 0x9da   :  { %v1005_v18 = vmul.f32 %v1365_v13, %v1004_v17 }
 0x9dc   :  { %v1006_v19 = vadd.f32 %v1365_v13, %v1005_v18 }
 0x9dd   :  { %v1367_v21 = vpop.eup %1366 }
 0x9de   :  { %v1010_v22 = vsel %vm1009_vm10, %v1365_v13, %v1006_v19  ;;  %v1018_v53 = vmul.f32 %v1367_v21, %v1001_v14  ;;  %vm1023_vm12 = vweird.f32 %v1367_v21 }
 0x9df   :  { %v1015_v26 = vsel %vm1012_vm11, %v1014_v24, %v1010_v22  ;;  %vm1024_vm14 = vmor %vm1022_vm13, %vm1023_vm12 }
 0x9e0   :  { %v1019_v25 = vsub.f32 1.0, %v1018_v53  ;;  %v1032_v0 = vmul.f32 %v1015_v26, %v992_v23 }
 0x9e2   :  { %v1020_v29 = vmul.f32 %v1367_v21, %v1019_v25  ;;  %v1034_v35 = vpack.c.bf16 %v1032_v0, %v1032_v0 }
 0x9e4   :  { %v1021_v31 = vadd.f32 %v1367_v21, %v1020_v29  ;;  %v1047_v38 = vunpack.c.l.b16 %v1034_v35 }
 0x9e6   :  { %v1025_v33 = vsel %vm1024_vm14, %v1367_v21, %v1021_v31 }
 0x9e7   :  { %v1030_v34 = vsel %vm1027_vm15, %v1029_v32, %v1025_v33 }
 0x9e8   :  { %v1033_v36 = vmul.f32 %v1030_v34, %v993_v27 }
 0x9ea   :  { %v1035_v37 = vpack.c.bf16 %v1033_v36, %v1033_v36 }
 0x9ec   :  { %v1048_v39 = vunpack.c.l.b16 %v1035_v37 }
 0x9ee   :  { %v1049_v40 = vpack.c.b16 %v1048_v39, %v1047_v38 }
 0x9f0   :  { %1261 = vmatmul.msk.bf16.vlgmr.msra.gmra.mxu1 %vm589_vm9, %v1049_v40 }
 0xa6d   :  { %v1086_v43 = vpop.f32.mrf.mxu1 }
 0xa6e   :  { %v1091_v1 = vadd.f32 %v1086_v43, %v1806_v11 }
 0xa70   :  { %v1098_v44 = vadd.f32 %v1317_v42, %v1091_v1 }
 0xa72   :  { %1100 = vst.msk [vmem:[#allocation11] sm:$0xff] %vm137_vm0, %v1098_v44 }
 0xa75   :  { %v1088_v10 = vpop.f32.mrf.mxu1 }
 0xa76   :  { %v1092_v45 = vadd.f32 %v1088_v10, %v1811_v15 }
 0xa78   :  { %v1099_v47 = vadd.f32 %v1317_v42, %v1092_v45 }
 0xa7a   :  { %1101 = vst.msk [vmem:[#allocation11 + $0x8] sm:$0xff] %vm137_vm0, %v1099_v47 }
 0xa7b   :  { %1114 = dma.vmem_to_hbm [thread:$0]  %s1107_s27, 256, %s1109_s1, [#allocation4], %s1525_s25, %s1525_s25, %s1526_s26  }
 0xa7c   :  { %1518 = dma.done.wait [#allocation4], 256  }
 0xa7d   :  { %1519 = vsyncadd [#allocation4], 4294967040 }
 0xa7e   :  { %1119 = vsyncpa [#allocation3], 1 }
 0xa7f   :  { %1120 = vsyncpa [#allocation6], 1 }
 0xa80   :  { %1121 = vsyncpa [#allocation9], 1 }
 0xa81   :  { %1122 = vsyncpa [#allocation4], 1 }

</bundles_post_ra>
